<compile_context>
chip_gen: v7x
topology: tpu7x:2x2x1
jax: 0.10.0
libtpu: 0.0.40
codegen_flags: <defaults>
</compile_context>

<pallas_src>
import functools

import jax
import jax.numpy as jnp
from jax.experimental import pallas as pl
from jax.experimental.pallas import tpu as pltpu


LANE = 128                      # channels padded to a multiple of the lane dim
MXU_DTYPE = jnp.bfloat16        # MXU matmul input dtype (f32 accumulation)
ACT_DTYPE = jnp.bfloat16        # inter-kernel activation dtype


# ----------------------------------------------------------------------------
# Small helpers
# ----------------------------------------------------------------------------
def _round_up(n, m):
    return ((n + m - 1) // m) * m


def _pad_to(arr, axis, size):
    if arr.shape[axis] == size:
        return arr
    pad = [(0, 0)] * arr.ndim
    pad[axis] = (0, size - arr.shape[axis])
    return jnp.pad(arr, pad)


def _vmem_limit_bytes():
    """Generation-aware scoped-VMEM budget (v5e/v6e ~96 MiB, v7x ~48 MiB)."""
    try:
        cap = int(pltpu.get_tpu_info().vmem_capacity_bytes)
    except Exception:                      # non-TPU backend / older API
        cap = 64 * 1024 * 1024
    return min((cap * 3) // 4, 100 * 1024 * 1024)


VMEM_LIMIT = _vmem_limit_bytes()


def _pick_row_tile(ho, wo, c, acc_bytes=128 * 1024, max_rows=32):
    """Largest divisor of `ho` keeping the f32 depthwise accumulator register
    resident (<= acc_bytes, i.e. ~32 vregs)."""
    cap = max(1, acc_bytes // max(1, wo * c * 4))
    upper = max(1, min(max_rows, cap, ho))
    for cand in range(upper, 0, -1):
        if ho % cand == 0:
            return cand
    return 1


def _pick_hw_tile(hw, target=512):
    """Largest multiple-of-8 divisor of `hw` <= target (>= 2 steps if possible)."""
    upper = min(target, hw // 2 if hw // 2 >= 8 else hw)
    for cand in range(upper, 7, -1):
        if hw % cand == 0 and cand % 8 == 0:
            return cand
    return hw


# ----------------------------------------------------------------------------
# Kernel A: expand 1x1 conv + depthwise conv + BN/swish + SE-pool partials
# ----------------------------------------------------------------------------
def expand_dw_se_kernel(*refs, H, W, k, stride, Wo, TH, TH_in, PADL,
                        has_expand):
    """Grid: (batch, output-row tiles).  Builds a per-tile bf16 expanded slab
    (with row/col halo) in VMEM, then runs the depthwise conv on it."""
    if has_expand:
        x_ref, w1_ref, b1_ref, w2_ref, b2_ref, dw_ref, se_ref, exp_ref = refs
    else:
        x_ref, w2_ref, b2_ref, dw_ref, se_ref, exp_ref = refs

    pad = k // 2
    shift = PADL - pad                  # padded-col -> scratch-col offset
    t = pl.program_id(1)
    row0 = t * (TH * stride)            # first padded input row of this tile

    # ---- per-tile expanded slab (bf16 scratch, zero halo) ------------------
    exp_ref[...] = jnp.zeros_like(exp_ref)
    # x is H-zero-padded outside the kernel, so the row window is in-bounds.
    xw = x_ref[0, pl.ds(row0, TH_in)]                     # (TH_in, W, Cin) bf16
    if has_expand:
        # Row-chunked MXU matmul: M = TH_in * W rows per push.
        y = jnp.dot(xw.reshape(TH_in * W, xw.shape[-1]), w1_ref[...],
                    preferred_element_type=jnp.float32)
        y = y + b1_ref[...]                               # BN1 (scale folded in w1)
        y = y * jax.nn.sigmoid(y)                         # swish
        y = y.reshape(TH_in, W, -1)
        # Re-zero the H-halo rows: zero-padded input rows pick up the BN bias,
        # but the depthwise conv's padding must be exact zeros.
        ridx = row0 + jax.lax.broadcasted_iota(jnp.int32, (TH_in, 1, 1), 0)
        y = jnp.where((ridx >= pad) & (ridx < pad + H), y, 0.0)
        exp_ref[:, PADL:PADL + W, :] = y.astype(exp_ref.dtype)
    else:
        exp_ref[:, PADL:PADL + W, :] = xw.astype(exp_ref.dtype)

    # ---- depthwise k x k conv (BN2 scale folded into the taps) -------------
    C = dw_ref.shape[-1]
    w2 = w2_ref[...]                                      # (k*k, C)
    if stride == 1:
        acc = jnp.zeros((TH, Wo, C), jnp.float32)
        for ky in range(k):
            for kx in range(k):
                c0 = shift + kx
                patch = exp_ref[ky:ky + TH, c0:c0 + Wo, :]
                acc = acc + patch.astype(jnp.float32) * w2[ky * k + kx]
    else:
        # Accumulate over contiguous columns; subsample once after the taps to
        # avoid strided sublane reads inside the k*k loop.
        We = (Wo - 1) * stride + 1
        accf = jnp.zeros((TH, We, C), jnp.float32)
        for ky in range(k):
            for kx in range(k):
                c0 = shift + kx
                patch = exp_ref[pl.ds(ky, TH, stride), c0:c0 + We, :]
                accf = accf + patch.astype(jnp.float32) * w2[ky * k + kx]
        acc = accf[:, ::stride, :]
    y = acc + b2_ref[...]                                 # BN2 bias
    y = y * jax.nn.sigmoid(y)                             # swish
    dw_ref[0] = y.astype(dw_ref.dtype)

    # ---- SE global-average-pool: per-tile partial sums (no carried state) --
    se_ref[0, 0] = jnp.sum(jnp.sum(y, axis=0), axis=0, keepdims=True)


def fused_expand_dw_se(x, params, *, k, stride, expand, vmem_limit):
    N, H, W, Cin_p = x.shape
    pad = k // 2
    Ho = (H + 2 * pad - k) // stride + 1
    Wo = (W + 2 * pad - k) // stride + 1
    Ce_p = params["w2"].shape[1]
    TH = _pick_row_tile(Ho, Wo, Ce_p)
    n_t = Ho // TH
    TH_in = (TH - 1) * stride + k                 # input rows incl. halo
    PADL = 0 if pad == 0 else _round_up(pad, 16)  # sublane-aligned left halo
    Wp = _round_up(PADL + W + pad, 16)
    has_expand = expand != 1

    # Zero-pad H so every tile's input-row window is statically in-bounds.
    # TODO(synk): for very large H this jnp.pad copy could be removed with
    # in-kernel boundary handling of the first/last tiles.
    x_hpad = jnp.pad(x, ((0, 0), (pad, pad), (0, 0), (0, 0))) if pad else x
    Hp = H + 2 * pad

    kernel = functools.partial(
        expand_dw_se_kernel, H=H, W=W, k=k, stride=stride, Wo=Wo, TH=TH,
        TH_in=TH_in, PADL=PADL, has_expand=has_expand)

    args = [x_hpad]
    # Full-image x block per batch: the block index is constant across the
    # row-tile axis, so it is DMA'd once per image.
    in_specs = [pl.BlockSpec((1, Hp, W, Cin_p), lambda b, t: (b, 0, 0, 0))]
    if has_expand:
        args += [params["w1"], params["bn1_bias"]]
        in_specs += [pl.BlockSpec((Cin_p, Ce_p), lambda b, t: (0, 0)),
                     pl.BlockSpec((1, Ce_p), lambda b, t: (0, 0))]
    args += [params["w2"], params["bn2_bias"]]
    in_specs += [pl.BlockSpec((k * k, Ce_p), lambda b, t: (0, 0)),
                 pl.BlockSpec((1, Ce_p), lambda b, t: (0, 0))]

    dw_out, se_sums = pl.pallas_call(
        kernel,
        out_shape=(jax.ShapeDtypeStruct((N, Ho, Wo, Ce_p), ACT_DTYPE),
                   jax.ShapeDtypeStruct((N, n_t, 1, Ce_p), jnp.float32)),
        grid=(N, n_t),
        in_specs=in_specs,
        out_specs=(pl.BlockSpec((1, TH, Wo, Ce_p), lambda b, t: (b, t, 0, 0)),
                   pl.BlockSpec((1, 1, 1, Ce_p), lambda b, t: (b, t, 0, 0))),
        scratch_shapes=[pltpu.VMEM((TH_in, Wp, Ce_p), jnp.bfloat16)],
        compiler_params=pltpu.CompilerParams(
            dimension_semantics=("parallel", "parallel"),
            vmem_limit_bytes=vmem_limit),
    )(*args)
    return dw_out, se_sums


# ----------------------------------------------------------------------------
# Kernel B: SE gate * x -> 1x1 projection conv + folded BN (+ residual)
# ----------------------------------------------------------------------------
def se_project_kernel(*refs, has_res):
    if has_res:
        x_ref, g_ref, w_ref, b_ref, res_ref, o_ref = refs
    else:
        x_ref, g_ref, w_ref, b_ref, o_ref = refs
        res_ref = None
    xg = (x_ref[0].astype(jnp.float32) * g_ref[0]).astype(MXU_DTYPE)   # (T, Ce)
    y = jnp.dot(xg, w_ref[...], preferred_element_type=jnp.float32)
    y = y + b_ref[...]                                  # BN3 (scale folded in w3)
    if has_res:
        y = y + res_ref[0].astype(jnp.float32)
    o_ref[0] = y.astype(o_ref.dtype)


def se_project(dw_flat, gate3, w3, b3, res_flat, *, vmem_limit):
    N, HW, Ce_p = dw_flat.shape
    Cout_p = w3.shape[1]
    T = _pick_hw_tile(HW, target=1024 if vmem_limit >= (64 << 20) else 512)
    n_t = HW // T
    has_res = res_flat is not None

    kernel = functools.partial(se_project_kernel, has_res=has_res)
    args = [dw_flat, gate3, w3, b3]
    in_specs = [pl.BlockSpec((1, T, Ce_p), lambda b, t: (b, t, 0)),
                pl.BlockSpec((1, 1, Ce_p), lambda b, t: (b, 0, 0)),
                pl.BlockSpec((Ce_p, Cout_p), lambda b, t: (0, 0)),
                pl.BlockSpec((1, Cout_p), lambda b, t: (0, 0))]
    if has_res:
        args.append(res_flat)
        in_specs.append(pl.BlockSpec((1, T, Cout_p), lambda b, t: (b, t, 0)))

    return pl.pallas_call(
        kernel,
        out_shape=jax.ShapeDtypeStruct((N, HW, Cout_p), ACT_DTYPE),
        grid=(N, n_t),
        in_specs=in_specs,
        out_specs=pl.BlockSpec((1, T, Cout_p), lambda b, t: (b, t, 0)),
        compiler_params=pltpu.CompilerParams(
            dimension_semantics=("parallel", "parallel"),
            vmem_limit_bytes=vmem_limit),
    )(*args)


# ----------------------------------------------------------------------------
# Parameter initialization (deterministic, synthetic).
# BN running stats folded: scales multiplied into the conv weights, biases kept.
# ----------------------------------------------------------------------------
def _bn_folded(key, c, eps=1e-3):   # module uses eps=0.001
    k1, k2, k3, k4 = jax.random.split(key, 4)
    gamma = 1.0 + 0.1 * jax.random.normal(k1, (1, c), jnp.float32)
    beta = 0.1 * jax.random.normal(k2, (1, c), jnp.float32)
    mean = 0.1 * jax.random.normal(k3, (1, c), jnp.float32)
    var = 1.0 + 0.1 * jax.random.uniform(k4, (1, c), jnp.float32)
    scale = gamma / jnp.sqrt(var + eps)
    bias = beta - mean * scale
    return scale, bias


def init_bottleneck_params(key, cin, cout, k, expand, se_ratio):
    ce = cin * expand
    hid = int(ce * se_ratio)            # SEModule(in_channel * expand, ratio)
    cin_p = _round_up(cin, LANE)
    ce_p = _round_up(ce, LANE)
    cout_p = _round_up(cout, LANE)
    keys = jax.random.split(key, 8)
    p = {"cout": cout}
    if expand != 1:
        w1 = 0.3 * jax.random.normal(keys[0], (cin, ce), jnp.float32)
        s1, b1 = _bn_folded(keys[1], ce)
        w1 = w1 * s1                                    # fold BN1 scale
        p["w1"] = _pad_to(_pad_to(w1, 0, cin_p), 1, ce_p).astype(MXU_DTYPE)
        p["bn1_bias"] = _pad_to(b1, 1, ce_p)
    w2 = 0.3 * jax.random.normal(keys[2], (k * k, ce), jnp.float32)
    s2, b2 = _bn_folded(keys[3], ce)
    w2 = w2 * s2                                        # fold BN2 scale
    p["w2"] = _pad_to(w2, 1, ce_p)                      # f32 (VPU taps)
    p["bn2_bias"] = _pad_to(b2, 1, ce_p)
    p["se_w1"] = _pad_to(
        0.3 * jax.random.normal(keys[4], (ce, hid), jnp.float32), 0, ce_p)
    p["se_w2"] = _pad_to(
        0.3 * jax.random.normal(keys[5], (hid, ce), jnp.float32), 1, ce_p)
    w3 = 0.3 * jax.random.normal(keys[6], (ce, cout), jnp.float32)
    s3, b3 = _bn_folded(keys[7], cout)
    w3 = w3 * s3                                        # fold BN3 scale
    p["w3"] = _pad_to(_pad_to(w3, 0, ce_p), 1, cout_p).astype(MXU_DTYPE)
    p["bn3_bias"] = _pad_to(b3, 1, cout_p)
    return p


# ----------------------------------------------------------------------------
# Forward pass (Bottleneck / MBConv)
# ----------------------------------------------------------------------------
def bottleneck_forward(x, params, *, kernel_size, stride, expand, correct_dim,
                       vmem_limit):
    # x: (N, H, W, Cin_p) NHWC bf16, channels lane-padded (padded chans = 0).
    N, H, W, Cin_p = x.shape

    # Pass 1: expand PW + depthwise conv + BN/swish + SE pooled sums (fused).
    dw_out, se_sums = fused_expand_dw_se(x, params, k=kernel_size,
                                         stride=stride, expand=expand,
                                         vmem_limit=vmem_limit)
    _, Ho, Wo, Ce_p = dw_out.shape

    # SE squeeze/excite MLP: micro (N x Ce) matmuls -> plain JAX, no launch.
    pooled = jnp.sum(se_sums[:, :, 0, :], axis=1) / jnp.float32(Ho * Wo)
    h = pooled @ params["se_w1"]
    h = h * jax.nn.sigmoid(h)                          # swish
    gate = jax.nn.sigmoid(h @ params["se_w2"])         # (N, Ce_p) f32

    # Pass 2: SE gate * x -> 1x1 projection + BN (+ residual), bf16 out.
    dw_flat = dw_out.reshape(N, Ho * Wo, Ce_p)
    res_flat = x.reshape(N, H * W, Cin_p) if correct_dim else None
    out_flat = se_project(dw_flat, gate.reshape(N, 1, Ce_p), params["w3"],
                          params["bn3_bias"], res_flat, vmem_limit=vmem_limit)
    return out_flat.reshape(N, Ho, Wo, -1)


def make_mbconv(key, inplanes, planes, repeat, kernel_size, stride, expand,
                se_ratio):
    blocks = []
    keys = jax.random.split(key, repeat)
    cfg0 = dict(kernel_size=kernel_size, stride=stride, expand=expand,
                correct_dim=(stride == 1 and inplanes == planes))
    blocks.append((cfg0, init_bottleneck_params(keys[0], inplanes, planes,
                                                kernel_size, expand, se_ratio)))
    for i in range(1, repeat):
        cfg = dict(kernel_size=kernel_size, stride=1, expand=expand,
                   correct_dim=True)
        blocks.append((cfg, init_bottleneck_params(keys[i], planes, planes,
                                                   kernel_size, expand,
                                                   se_ratio)))
    return blocks


def mbconv_forward(x_nchw, blocks, vmem_limit=VMEM_LIMIT):
    # NCHW f32 at the API boundary (PyTorch); NHWC bf16 + lane-padded inside.
    N, C, H, W = x_nchw.shape
    x = jnp.transpose(x_nchw, (0, 2, 3, 1)).astype(ACT_DTYPE)
    x = _pad_to(x, 3, _round_up(C, LANE))
    for cfg, params in blocks:
        x = bottleneck_forward(x, params, vmem_limit=vmem_limit, **cfg)
    x = x[..., :blocks[-1][1]["cout"]].astype(jnp.float32)
    return jnp.transpose(x, (0, 3, 1, 2))


# ----------------------------------------------------------------------------
# Pure-JAX f32 reference (same folded/padded params) for tolerance checking.
# ----------------------------------------------------------------------------
def bottleneck_reference(x, params, *, kernel_size, stride, expand, correct_dim):
    k = kernel_size
    pad = k // 2
    n, h, w, _ = x.shape
    if expand != 1:
        y = jnp.einsum("nhwc,cd->nhwd", x, params["w1"].astype(jnp.float32))
        y = y + params["bn1_bias"][0]
        y = y * jax.nn.sigmoid(y)
    else:
        y = x
    ce = y.shape[-1]
    yp = jnp.pad(y, ((0, 0), (pad, pad), (pad, pad), (0, 0)))
    ho = (h + 2 * pad - k) // stride + 1
    wo = (w + 2 * pad - k) // stride + 1
    w2 = params["w2"]
    acc = jnp.zeros((n, ho, wo, ce), jnp.float32)
    for ky in range(k):
        for kx in range(k):
            patch = yp[:, ky:ky + (ho - 1) * stride + 1:stride,
                       kx:kx + (wo - 1) * stride + 1:stride, :]
            acc = acc + patch * w2[ky * k + kx]
    z = acc + params["bn2_bias"][0]
    z = z * jax.nn.sigmoid(z)
    pooled = jnp.mean(z, axis=(1, 2))
    hh = pooled @ params["se_w1"]
    hh = hh * jax.nn.sigmoid(hh)
    gate = jax.nn.sigmoid(hh @ params["se_w2"])
    out = jnp.einsum("nhwc,cd->nhwd", z * gate[:, None, None, :],
                     params["w3"].astype(jnp.float32))
    out = out + params["bn3_bias"][0]
    if correct_dim:
        out = out + x
    return out


def mbconv_reference(x_nchw, blocks):
    n, c, h, w = x_nchw.shape
    x = jnp.transpose(x_nchw, (0, 2, 3, 1))
    x = _pad_to(x, 3, _round_up(c, LANE))
    for cfg, params in blocks:
        x = bottleneck_reference(x, params, **cfg)
    x = x[..., :blocks[-1][1]["cout"]]
    return jnp.transpose(x, (0, 3, 1, 2))


# TODO(synk): training-mode stochastic depth (torch.bernoulli drop-path) and
# BatchNorm batch-statistics updates are training-only; inference semantics
# (prob=1.0, folded running stats) are implemented here.

if __name__ == "__main__":
    key = jax.random.PRNGKey(0)
    k_x, k_p = jax.random.split(key)

    # Small MBConv: inplanes=4, planes=4, repeat=2, k=3, stride=1, expand=2,
    # se_ratio=0.25  (SE hidden dim = int(8 * 0.25) = 2)
    blocks = make_mbconv(k_p, inplanes=4, planes=4, repeat=2, kernel_size=3,
                         stride=1, expand=2, se_ratio=0.25)

    x = jax.random.normal(k_x, (2, 4, 16, 16), jnp.float32)   # NCHW

    fwd = jax.jit(lambda v: mbconv_forward(v, blocks))
    out = fwd(x)
    jax.block_until_ready(out)
    assert out.shape == (2, 4, 16, 16), out.shape

    # Tolerance check vs. the f32 reference (kernel path uses bf16 activations
    # and bf16 MXU matmuls, so allow a few percent).
    ref = mbconv_reference(x, blocks)
    assert jnp.allclose(out, ref, atol=0.15, rtol=0.1), float(
        jnp.max(jnp.abs(out - ref)))

    print("KERNEL_OK")
</pallas_src>

<mosaic_0001>
module attributes {stable_mosaic.version = 11 : i64} {
  func.func @expand_dw_se_kernel(%arg0: i32, %arg1: i32, %arg2: memref<1x18x16x128xbf16, #tpu.memory_space<vmem>>, %arg3: memref<128x128xbf16, #tpu.memory_space<vmem>>, %arg4: memref<1x128xf32, #tpu.memory_space<vmem>>, %arg5: memref<9x128xf32, #tpu.memory_space<vmem>>, %arg6: memref<1x128xf32, #tpu.memory_space<vmem>>, %arg7: memref<1x16x16x128xbf16, #tpu.memory_space<vmem>>, %arg8: memref<1x1x1x128xf32, #tpu.memory_space<vmem>>, %arg9: memref<18x48x128xbf16, #tpu.memory_space<vmem>>) attributes {dimension_semantics = [#tpu.dimension_semantics<parallel>, #tpu.dimension_semantics<parallel>], iteration_bounds = array<i64: 2, 1>, scalar_prefetch = 0 : i64, scratch_operands = 1 : i64, tpu.core_type = #tpu.core_type<tc>, window_params = [{transform_indices = @transform_0, window_bounds = array<i64: 1, 18, 16, 128>}, {pipeline_mode = #tpu.pipeline_mode<synchronous>, transform_indices = @transform_1, window_bounds = array<i64: 128, 128>}, {pipeline_mode = #tpu.pipeline_mode<synchronous>, transform_indices = @transform_2, window_bounds = array<i64: 1, 128>}, {pipeline_mode = #tpu.pipeline_mode<synchronous>, transform_indices = @transform_3, window_bounds = array<i64: 9, 128>}, {pipeline_mode = #tpu.pipeline_mode<synchronous>, transform_indices = @transform_4, window_bounds = array<i64: 1, 128>}, {transform_indices = @transform_5, window_bounds = array<i64: 1, 16, 16, 128>}, {transform_indices = @transform_6, window_bounds = array<i64: 1, 1, 1, 128>}]} {
    %c16_i32 = arith.constant 16 : i32
    %0 = arith.muli %arg1, %c16_i32 : i32
    %cst = arith.constant 0.000000e+00 : bf16
    %1 = vector.broadcast %cst : bf16 to vector<18x48x128xbf16>
    %c0 = arith.constant 0 : index
    %c0_0 = arith.constant 0 : index
    %c0_1 = arith.constant 0 : index
    %2 = vector.load %arg9[%c0, %c0_0, %c0_1] : memref<18x48x128xbf16, #tpu.memory_space<vmem>>, vector<18x48x128xbf16>
    tpu.vector_store %arg9[%c0, %c0_0, %c0_1], %1 {strides = array<i32>} : memref<18x48x128xbf16, #tpu.memory_space<vmem>>, vector<18x48x128xbf16>,
    %c0_2 = arith.constant 0 : index
    %3 = arith.index_cast %0 : i32 to index
    %c0_3 = arith.constant 0 : index
    %c0_4 = arith.constant 0 : index
    %4 = vector.load %arg2[%c0_2, %3, %c0_3, %c0_4] : memref<1x18x16x128xbf16, #tpu.memory_space<vmem>>, vector<1x18x16x128xbf16>
    %5 = vector.shape_cast %4 : vector<1x18x16x128xbf16> to vector<18x16x128xbf16>
    %6 = vector.shape_cast %5 : vector<18x16x128xbf16> to vector<288x128xbf16>
    %c0_5 = arith.constant 0 : index
    %c0_6 = arith.constant 0 : index
    %7 = vector.load %arg3[%c0_5, %c0_6] : memref<128x128xbf16, #tpu.memory_space<vmem>>, vector<128x128xbf16>
    %cst_7 = arith.constant dense<0.000000e+00> : vector<288x128xf32>
    %8 = tpu.matmul %6, %7, %cst_7 {dimension_numbers = #tpu.dot_dimension_numbers<[1], [0], [0], [1], [0, 0, 1, 1], [], []>} : vector<288x128xbf16>, vector<128x128xbf16>, vector<288x128xf32> -> vector<288x128xf32>
    %c0_8 = arith.constant 0 : index
    %c0_9 = arith.constant 0 : index
    %9 = vector.load %arg4[%c0_8, %c0_9] : memref<1x128xf32, #tpu.memory_space<vmem>>, vector<1x128xf32>
    %10 = vector.broadcast %9 : vector<1x128xf32> to vector<288x128xf32>
    %11 = arith.addf %8, %10 : vector<288x128xf32>
    %12 = arith.negf %11 : vector<288x128xf32>
    %13 = math.exp %12 : vector<288x128xf32>
    %cst_10 = arith.constant 1.000000e+00 : f32
    %14 = vector.broadcast %cst_10 : f32 to vector<288x128xf32>
    %15 = arith.addf %14, %13 : vector<288x128xf32>
    %16 = arith.divf %14, %15 : vector<288x128xf32>
    %17 = arith.mulf %11, %16 : vector<288x128xf32>
    %18 = vector.shape_cast %17 : vector<288x128xf32> to vector<18x16x128xf32>
    %19 = tpu.iota {dimensions = array<i32: 0>} : vector<18x1x1xi32>
    %20 = vector.broadcast %0 : i32 to vector<18x1x1xi32>
    %21 = arith.addi %20, %19 : vector<18x1x1xi32>
    %c1_i32 = arith.constant 1 : i32
    %22 = vector.broadcast %c1_i32 : i32 to vector<18x1x1xi32>
    %23 = arith.cmpi sge, %21, %22 : vector<18x1x1xi32>
    %c17_i32 = arith.constant 17 : i32
    %24 = vector.broadcast %c17_i32 : i32 to vector<18x1x1xi32>
    %25 = arith.cmpi slt, %21, %24 : vector<18x1x1xi32>
    %26 = arith.andi %23, %25 : vector<18x1x1xi1>
    %cst_11 = arith.constant 0.000000e+00 : f32
    %27 = vector.shape_cast %26 : vector<18x1x1xi1> to vector<18x1x1xi1>
    %28 = vector.broadcast %27 : vector<18x1x1xi1> to vector<18x16x128xi1>
    %29 = vector.broadcast %cst_11 : f32 to vector<18x16x128xf32>
    %30 = arith.select %28, %18, %29 : vector<18x16x128xi1>, vector<18x16x128xf32>
    %31 = arith.truncf %30 : vector<18x16x128xf32> to vector<18x16x128xbf16>
    %c0_12 = arith.constant 0 : index
    %c16 = arith.constant 16 : index
    %c0_13 = arith.constant 0 : index
    %32 = vector.load %arg9[%c0_12, %c16, %c0_13] : memref<18x48x128xbf16, #tpu.memory_space<vmem>>, vector<18x16x128xbf16>
    tpu.vector_store %arg9[%c0_12, %c16, %c0_13], %31 {strides = array<i32>} : memref<18x48x128xbf16, #tpu.memory_space<vmem>>, vector<18x16x128xbf16>,
    %c0_14 = arith.constant 0 : index
    %c0_15 = arith.constant 0 : index
    %33 = vector.load %arg5[%c0_14, %c0_15] : memref<9x128xf32, #tpu.memory_space<vmem>>, vector<9x128xf32>
    %cst_16 = arith.constant 0.000000e+00 : f32
    %34 = vector.broadcast %cst_16 : f32 to vector<16x16x128xf32>
    %c0_17 = arith.constant 0 : index
    %c15 = arith.constant 15 : index
    %c0_18 = arith.constant 0 : index
    %35 = vector.load %arg9[%c0_17, %c15, %c0_18] : memref<18x48x128xbf16, #tpu.memory_space<vmem>>, vector<16x16x128xbf16>
    %36 = arith.extf %35 : vector<16x16x128xbf16> to vector<16x16x128xf32>
    %37 = vector.extract_strided_slice %33 {offsets = [0, 0], sizes = [1, 128], strides = [1, 1]} : vector<9x128xf32> to vector<1x128xf32>
    %38 = vector.shape_cast %37 : vector<1x128xf32> to vector<128xf32>
    %39 = vector.shape_cast %38 : vector<128xf32> to vector<1x1x128xf32>
    %40 = vector.broadcast %39 : vector<1x1x128xf32> to vector<16x16x128xf32>
    %41 = arith.mulf %36, %40 : vector<16x16x128xf32>
    %42 = arith.addf %34, %41 : vector<16x16x128xf32>
    %c0_19 = arith.constant 0 : index
    %c16_20 = arith.constant 16 : index
    %c0_21 = arith.constant 0 : index
    %43 = vector.load %arg9[%c0_19, %c16_20, %c0_21] : memref<18x48x128xbf16, #tpu.memory_space<vmem>>, vector<16x16x128xbf16>
    %44 = arith.extf %43 : vector<16x16x128xbf16> to vector<16x16x128xf32>
    %45 = vector.extract_strided_slice %33 {offsets = [1, 0], sizes = [1, 128], strides = [1, 1]} : vector<9x128xf32> to vector<1x128xf32>
    %46 = vector.shape_cast %45 : vector<1x128xf32> to vector<128xf32>
    %47 = vector.shape_cast %46 : vector<128xf32> to vector<1x1x128xf32>
    %48 = vector.broadcast %47 : vector<1x1x128xf32> to vector<16x16x128xf32>
    %49 = arith.mulf %44, %48 : vector<16x16x128xf32>
    %50 = arith.addf %42, %49 : vector<16x16x128xf32>
    %c0_22 = arith.constant 0 : index
    %c17 = arith.constant 17 : index
    %c0_23 = arith.constant 0 : index
    %51 = vector.load %arg9[%c0_22, %c17, %c0_23] : memref<18x48x128xbf16, #tpu.memory_space<vmem>>, vector<16x16x128xbf16>
    %52 = arith.extf %51 : vector<16x16x128xbf16> to vector<16x16x128xf32>
    %53 = vector.extract_strided_slice %33 {offsets = [2, 0], sizes = [1, 128], strides = [1, 1]} : vector<9x128xf32> to vector<1x128xf32>
    %54 = vector.shape_cast %53 : vector<1x128xf32> to vector<128xf32>
    %55 = vector.shape_cast %54 : vector<128xf32> to vector<1x1x128xf32>
    %56 = vector.broadcast %55 : vector<1x1x128xf32> to vector<16x16x128xf32>
    %57 = arith.mulf %52, %56 : vector<16x16x128xf32>
    %58 = arith.addf %50, %57 : vector<16x16x128xf32>
    %c1 = arith.constant 1 : index
    %c15_24 = arith.constant 15 : index
    %c0_25 = arith.constant 0 : index
    %59 = vector.load %arg9[%c1, %c15_24, %c0_25] : memref<18x48x128xbf16, #tpu.memory_space<vmem>>, vector<16x16x128xbf16>
    %60 = arith.extf %59 : vector<16x16x128xbf16> to vector<16x16x128xf32>
    %61 = vector.extract_strided_slice %33 {offsets = [3, 0], sizes = [1, 128], strides = [1, 1]} : vector<9x128xf32> to vector<1x128xf32>
    %62 = vector.shape_cast %61 : vector<1x128xf32> to vector<128xf32>
    %63 = vector.shape_cast %62 : vector<128xf32> to vector<1x1x128xf32>
    %64 = vector.broadcast %63 : vector<1x1x128xf32> to vector<16x16x128xf32>
    %65 = arith.mulf %60, %64 : vector<16x16x128xf32>
    %66 = arith.addf %58, %65 : vector<16x16x128xf32>
    %c1_26 = arith.constant 1 : index
    %c16_27 = arith.constant 16 : index
    %c0_28 = arith.constant 0 : index
    %67 = vector.load %arg9[%c1_26, %c16_27, %c0_28] : memref<18x48x128xbf16, #tpu.memory_space<vmem>>, vector<16x16x128xbf16>
    %68 = arith.extf %67 : vector<16x16x128xbf16> to vector<16x16x128xf32>
    %69 = vector.extract_strided_slice %33 {offsets = [4, 0], sizes = [1, 128], strides = [1, 1]} : vector<9x128xf32> to vector<1x128xf32>
    %70 = vector.shape_cast %69 : vector<1x128xf32> to vector<128xf32>
    %71 = vector.shape_cast %70 : vector<128xf32> to vector<1x1x128xf32>
    %72 = vector.broadcast %71 : vector<1x1x128xf32> to vector<16x16x128xf32>
    %73 = arith.mulf %68, %72 : vector<16x16x128xf32>
    %74 = arith.addf %66, %73 : vector<16x16x128xf32>
    %c1_29 = arith.constant 1 : index
    %c17_30 = arith.constant 17 : index
    %c0_31 = arith.constant 0 : index
    %75 = vector.load %arg9[%c1_29, %c17_30, %c0_31] : memref<18x48x128xbf16, #tpu.memory_space<vmem>>, vector<16x16x128xbf16>
    %76 = arith.extf %75 : vector<16x16x128xbf16> to vector<16x16x128xf32>
    %77 = vector.extract_strided_slice %33 {offsets = [5, 0], sizes = [1, 128], strides = [1, 1]} : vector<9x128xf32> to vector<1x128xf32>
    %78 = vector.shape_cast %77 : vector<1x128xf32> to vector<128xf32>
    %79 = vector.shape_cast %78 : vector<128xf32> to vector<1x1x128xf32>
    %80 = vector.broadcast %79 : vector<1x1x128xf32> to vector<16x16x128xf32>
    %81 = arith.mulf %76, %80 : vector<16x16x128xf32>
    %82 = arith.addf %74, %81 : vector<16x16x128xf32>
    %c2 = arith.constant 2 : index
    %c15_32 = arith.constant 15 : index
    %c0_33 = arith.constant 0 : index
    %83 = vector.load %arg9[%c2, %c15_32, %c0_33] : memref<18x48x128xbf16, #tpu.memory_space<vmem>>, vector<16x16x128xbf16>
    %84 = arith.extf %83 : vector<16x16x128xbf16> to vector<16x16x128xf32>
    %85 = vector.extract_strided_slice %33 {offsets = [6, 0], sizes = [1, 128], strides = [1, 1]} : vector<9x128xf32> to vector<1x128xf32>
    %86 = vector.shape_cast %85 : vector<1x128xf32> to vector<128xf32>
    %87 = vector.shape_cast %86 : vector<128xf32> to vector<1x1x128xf32>
    %88 = vector.broadcast %87 : vector<1x1x128xf32> to vector<16x16x128xf32>
    %89 = arith.mulf %84, %88 : vector<16x16x128xf32>
    %90 = arith.addf %82, %89 : vector<16x16x128xf32>
    %c2_34 = arith.constant 2 : index
    %c16_35 = arith.constant 16 : index
    %c0_36 = arith.constant 0 : index
    %91 = vector.load %arg9[%c2_34, %c16_35, %c0_36] : memref<18x48x128xbf16, #tpu.memory_space<vmem>>, vector<16x16x128xbf16>
    %92 = arith.extf %91 : vector<16x16x128xbf16> to vector<16x16x128xf32>
    %93 = vector.extract_strided_slice %33 {offsets = [7, 0], sizes = [1, 128], strides = [1, 1]} : vector<9x128xf32> to vector<1x128xf32>
    %94 = vector.shape_cast %93 : vector<1x128xf32> to vector<128xf32>
    %95 = vector.shape_cast %94 : vector<128xf32> to vector<1x1x128xf32>
    %96 = vector.broadcast %95 : vector<1x1x128xf32> to vector<16x16x128xf32>
    %97 = arith.mulf %92, %96 : vector<16x16x128xf32>
    %98 = arith.addf %90, %97 : vector<16x16x128xf32>
    %c2_37 = arith.constant 2 : index
    %c17_38 = arith.constant 17 : index
    %c0_39 = arith.constant 0 : index
    %99 = vector.load %arg9[%c2_37, %c17_38, %c0_39] : memref<18x48x128xbf16, #tpu.memory_space<vmem>>, vector<16x16x128xbf16>
    %100 = arith.extf %99 : vector<16x16x128xbf16> to vector<16x16x128xf32>
    %101 = vector.extract_strided_slice %33 {offsets = [8, 0], sizes = [1, 128], strides = [1, 1]} : vector<9x128xf32> to vector<1x128xf32>
    %102 = vector.shape_cast %101 : vector<1x128xf32> to vector<128xf32>
    %103 = vector.shape_cast %102 : vector<128xf32> to vector<1x1x128xf32>
    %104 = vector.broadcast %103 : vector<1x1x128xf32> to vector<16x16x128xf32>
    %105 = arith.mulf %100, %104 : vector<16x16x128xf32>
    %106 = arith.addf %98, %105 : vector<16x16x128xf32>
    %c0_40 = arith.constant 0 : index
    %c0_41 = arith.constant 0 : index
    %107 = vector.load %arg6[%c0_40, %c0_41] : memref<1x128xf32, #tpu.memory_space<vmem>>, vector<1x128xf32>
    %108 = vector.shape_cast %107 : vector<1x128xf32> to vector<1x1x128xf32>
    %109 = vector.broadcast %108 : vector<1x1x128xf32> to vector<16x16x128xf32>
    %110 = arith.addf %106, %109 : vector<16x16x128xf32>
    %111 = arith.negf %110 : vector<16x16x128xf32>
    %112 = math.exp %111 : vector<16x16x128xf32>
    %cst_42 = arith.constant 1.000000e+00 : f32
    %113 = vector.broadcast %cst_42 : f32 to vector<16x16x128xf32>
    %114 = arith.addf %113, %112 : vector<16x16x128xf32>
    %115 = arith.divf %113, %114 : vector<16x16x128xf32>
    %116 = arith.mulf %110, %115 : vector<16x16x128xf32>
    %117 = arith.truncf %116 : vector<16x16x128xf32> to vector<16x16x128xbf16>
    %c0_43 = arith.constant 0 : index
    %c0_44 = arith.constant 0 : index
    %c0_45 = arith.constant 0 : index
    %c0_46 = arith.constant 0 : index
    %118 = vector.load %arg7[%c0_43, %c0_44, %c0_45, %c0_46] : memref<1x16x16x128xbf16, #tpu.memory_space<vmem>>, vector<1x16x16x128xbf16>
    %119 = vector.shape_cast %118 : vector<1x16x16x128xbf16> to vector<16x16x128xbf16>
    %120 = vector.shape_cast %117 : vector<16x16x128xbf16> to vector<1x16x16x128xbf16>
    tpu.vector_store %arg7[%c0_43, %c0_44, %c0_45, %c0_46], %120 {strides = array<i32>} : memref<1x16x16x128xbf16, #tpu.memory_space<vmem>>, vector<1x16x16x128xbf16>,
    %cst_47 = arith.constant dense<0.000000e+00> : vector<16x128xf32>
    %121 = vector.multi_reduction <add>, %116, %cst_47 [0] : vector<16x16x128xf32> to vector<16x128xf32>
    %cst_48 = arith.constant dense<0.000000e+00> : vector<128xf32>
    %122 = vector.multi_reduction <add>, %121, %cst_48 [0] : vector<16x128xf32> to vector<128xf32>
    %123 = vector.shape_cast %122 : vector<128xf32> to vector<1x128xf32>
    %c0_49 = arith.constant 0 : index
    %c0_50 = arith.constant 0 : index
    %c0_51 = arith.constant 0 : index
    %c0_52 = arith.constant 0 : index
    %124 = vector.load %arg8[%c0_49, %c0_50, %c0_51, %c0_52] : memref<1x1x1x128xf32, #tpu.memory_space<vmem>>, vector<1x1x1x128xf32>
    %125 = vector.shape_cast %124 : vector<1x1x1x128xf32> to vector<1x128xf32>
    %126 = vector.shape_cast %123 : vector<1x128xf32> to vector<1x1x1x128xf32>
    tpu.vector_store %arg8[%c0_49, %c0_50, %c0_51, %c0_52], %126 {strides = array<i32>} : memref<1x1x1x128xf32, #tpu.memory_space<vmem>>, vector<1x1x1x128xf32>,
    return
  }
  func.func @transform_0(%arg0: i32, %arg1: i32) -> (i32, i32, i32, i32) {
    %c0_i32 = arith.constant 0 : i32
    %c0_i32_0 = arith.constant 0 : i32
    %c0_i32_1 = arith.constant 0 : i32
    %c0_i32_2 = arith.constant 0 : i32
    return %arg0, %c0_i32, %c0_i32_0, %c0_i32_1 : i32, i32, i32, i32
  }
  func.func @transform_1(%arg0: i32, %arg1: i32) -> (i32, i32) {
    %c0_i32 = arith.constant 0 : i32
    %c0_i32_0 = arith.constant 0 : i32
    %c0_i32_1 = arith.constant 0 : i32
    return %c0_i32, %c0_i32_0 : i32, i32
  }
  func.func @transform_2(%arg0: i32, %arg1: i32) -> (i32, i32) {
    %c0_i32 = arith.constant 0 : i32
    %c0_i32_0 = arith.constant 0 : i32
    %c0_i32_1 = arith.constant 0 : i32
    return %c0_i32, %c0_i32_0 : i32, i32
  }
  func.func @transform_3(%arg0: i32, %arg1: i32) -> (i32, i32) {
    %c0_i32 = arith.constant 0 : i32
    %c0_i32_0 = arith.constant 0 : i32
    %c0_i32_1 = arith.constant 0 : i32
    return %c0_i32, %c0_i32_0 : i32, i32
  }
  func.func @transform_4(%arg0: i32, %arg1: i32) -> (i32, i32) {
    %c0_i32 = arith.constant 0 : i32
    %c0_i32_0 = arith.constant 0 : i32
    %c0_i32_1 = arith.constant 0 : i32
    return %c0_i32, %c0_i32_0 : i32, i32
  }
  func.func @transform_5(%arg0: i32, %arg1: i32) -> (i32, i32, i32, i32) {
    %c0_i32 = arith.constant 0 : i32
    %c0_i32_0 = arith.constant 0 : i32
    %c0_i32_1 = arith.constant 0 : i32
    return %arg0, %arg1, %c0_i32, %c0_i32_0 : i32, i32, i32, i32
  }
  func.func @transform_6(%arg0: i32, %arg1: i32) -> (i32, i32, i32, i32) {
    %c0_i32 = arith.constant 0 : i32
    %c0_i32_0 = arith.constant 0 : i32
    %c0_i32_1 = arith.constant 0 : i32
    return %arg0, %arg1, %c0_i32, %c0_i32_0 : i32, i32, i32, i32
  }
}

module attributes {stable_mosaic.version = 11 : i64} {
  func.func @se_project_kernel(%arg0: i32, %arg1: i32, %arg2: memref<1x128x128xbf16, #tpu.memory_space<vmem>>, %arg3: memref<1x1x128xf32, #tpu.memory_space<vmem>>, %arg4: memref<128x128xbf16, #tpu.memory_space<vmem>>, %arg5: memref<1x128xf32, #tpu.memory_space<vmem>>, %arg6: memref<1x128x128xbf16, #tpu.memory_space<vmem>>, %arg7: memref<1x128x128xbf16, #tpu.memory_space<vmem>>) attributes {dimension_semantics = [#tpu.dimension_semantics<parallel>, #tpu.dimension_semantics<parallel>], iteration_bounds = array<i64: 2, 2>, scalar_prefetch = 0 : i64, scratch_operands = 0 : i64, tpu.core_type = #tpu.core_type<tc>, window_params = [{transform_indices = @transform_0, window_bounds = array<i64: 1, 128, 128>}, {transform_indices = @transform_1, window_bounds = array<i64: 1, 1, 128>}, {pipeline_mode = #tpu.pipeline_mode<synchronous>, transform_indices = @transform_2, window_bounds = array<i64: 128, 128>}, {pipeline_mode = #tpu.pipeline_mode<synchronous>, transform_indices = @transform_3, window_bounds = array<i64: 1, 128>}, {transform_indices = @transform_4, window_bounds = array<i64: 1, 128, 128>}, {transform_indices = @transform_5, window_bounds = array<i64: 1, 128, 128>}]} {
    %c0 = arith.constant 0 : index
    %c0_0 = arith.constant 0 : index
    %c0_1 = arith.constant 0 : index
    %0 = vector.load %arg2[%c0, %c0_0, %c0_1] : memref<1x128x128xbf16, #tpu.memory_space<vmem>>, vector<1x128x128xbf16>
    %1 = vector.shape_cast %0 : vector<1x128x128xbf16> to vector<128x128xbf16>
    %2 = arith.extf %1 : vector<128x128xbf16> to vector<128x128xf32>
    %c0_2 = arith.constant 0 : index
    %c0_3 = arith.constant 0 : index
    %c0_4 = arith.constant 0 : index
    %3 = vector.load %arg3[%c0_2, %c0_3, %c0_4] : memref<1x1x128xf32, #tpu.memory_space<vmem>>, vector<1x1x128xf32>
    %4 = vector.shape_cast %3 : vector<1x1x128xf32> to vector<1x128xf32>
    %5 = vector.broadcast %4 : vector<1x128xf32> to vector<128x128xf32>
    %6 = arith.mulf %2, %5 : vector<128x128xf32>
    %7 = arith.truncf %6 : vector<128x128xf32> to vector<128x128xbf16>
    %c0_5 = arith.constant 0 : index
    %c0_6 = arith.constant 0 : index
    %8 = vector.load %arg4[%c0_5, %c0_6] : memref<128x128xbf16, #tpu.memory_space<vmem>>, vector<128x128xbf16>
    %cst = arith.constant dense<0.000000e+00> : vector<128x128xf32>
    %9 = tpu.matmul %7, %8, %cst {dimension_numbers = #tpu.dot_dimension_numbers<[1], [0], [0], [1], [0, 0, 1, 1], [], []>} : vector<128x128xbf16>, vector<128x128xbf16>, vector<128x128xf32> -> vector<128x128xf32>
    %c0_7 = arith.constant 0 : index
    %c0_8 = arith.constant 0 : index
    %10 = vector.load %arg5[%c0_7, %c0_8] : memref<1x128xf32, #tpu.memory_space<vmem>>, vector<1x128xf32>
    %11 = vector.broadcast %10 : vector<1x128xf32> to vector<128x128xf32>
    %12 = arith.addf %9, %11 : vector<128x128xf32>
    %c0_9 = arith.constant 0 : index
    %c0_10 = arith.constant 0 : index
    %c0_11 = arith.constant 0 : index
    %13 = vector.load %arg6[%c0_9, %c0_10, %c0_11] : memref<1x128x128xbf16, #tpu.memory_space<vmem>>, vector<1x128x128xbf16>
    %14 = vector.shape_cast %13 : vector<1x128x128xbf16> to vector<128x128xbf16>
    %15 = arith.extf %14 : vector<128x128xbf16> to vector<128x128xf32>
    %16 = arith.addf %12, %15 : vector<128x128xf32>
    %17 = arith.truncf %16 : vector<128x128xf32> to vector<128x128xbf16>
    %c0_12 = arith.constant 0 : index
    %c0_13 = arith.constant 0 : index
    %c0_14 = arith.constant 0 : index
    %18 = vector.load %arg7[%c0_12, %c0_13, %c0_14] : memref<1x128x128xbf16, #tpu.memory_space<vmem>>, vector<1x128x128xbf16>
    %19 = vector.shape_cast %18 : vector<1x128x128xbf16> to vector<128x128xbf16>
    %20 = vector.shape_cast %17 : vector<128x128xbf16> to vector<1x128x128xbf16>
    tpu.vector_store %arg7[%c0_12, %c0_13, %c0_14], %20 {strides = array<i32>} : memref<1x128x128xbf16, #tpu.memory_space<vmem>>, vector<1x128x128xbf16>,
    return
  }
  func.func @transform_0(%arg0: i32, %arg1: i32) -> (i32, i32, i32) {
    %c0_i32 = arith.constant 0 : i32
    %c0_i32_0 = arith.constant 0 : i32
    return %arg0, %arg1, %c0_i32 : i32, i32, i32
  }
  func.func @transform_1(%arg0: i32, %arg1: i32) -> (i32, i32, i32) {
    %c0_i32 = arith.constant 0 : i32
    %c0_i32_0 = arith.constant 0 : i32
    %c0_i32_1 = arith.constant 0 : i32
    return %arg0, %c0_i32, %c0_i32_0 : i32, i32, i32
  }
  func.func @transform_2(%arg0: i32, %arg1: i32) -> (i32, i32) {
    %c0_i32 = arith.constant 0 : i32
    %c0_i32_0 = arith.constant 0 : i32
    %c0_i32_1 = arith.constant 0 : i32
    return %c0_i32, %c0_i32_0 : i32, i32
  }
  func.func @transform_3(%arg0: i32, %arg1: i32) -> (i32, i32) {
    %c0_i32 = arith.constant 0 : i32
    %c0_i32_0 = arith.constant 0 : i32
    %c0_i32_1 = arith.constant 0 : i32
    return %c0_i32, %c0_i32_0 : i32, i32
  }
  func.func @transform_4(%arg0: i32, %arg1: i32) -> (i32, i32, i32) {
    %c0_i32 = arith.constant 0 : i32
    %c0_i32_0 = arith.constant 0 : i32
    return %arg0, %arg1, %c0_i32 : i32, i32, i32
  }
  func.func @transform_5(%arg0: i32, %arg1: i32) -> (i32, i32, i32) {
    %c0_i32 = arith.constant 0 : i32
    %c0_i32_0 = arith.constant 0 : i32
    return %arg0, %arg1, %c0_i32 : i32, i32, i32
  }
}

</mosaic_0001>

<bundles_post_ra>
// kernel: _lambda_.5
= control target key start
LH: loop header
LB: loop body
LE: loop exit
PB: predicated region body
PF: predicated region fallthrough
CT: control target
= control target key end

     0   :  { %s1156_s18 = smov 0   ;;  %s1158_s19 = smov 0   ;;  %s1314_s0 = inlined_call_operand.vmem [shape: bf16[2,256,128], index: 0, kind: input, shape index: {}]   ;;  %s1315_s1 = inlined_call_operand.vmem [shape: f32[2,1,128], index: 1, kind: input, shape index: {}]   ;;  %s1316_s2 = inlined_call_operand.vmem [shape: bf16[128,128], index: 2, kind: input, shape index: {}]   ;;  %s1317_s3 = inlined_call_operand.vmem [shape: f32[1,128], index: 3, kind: input, shape index: {}]   ;;  %s1318_s4 = inlined_call_operand.vmem [shape: bf16[2,256,128], index: 4, kind: input, shape index: {}]   ;;  %s1319_s5 = inlined_call_operand.vmem [shape: bf16[2,256,128], index: 5, kind: output, shape index: {}]  }
   0x1   :  { %s1160_s20 = smov 0   ;;  %s1162_s21 = smov 0  }
   0x2   :  { %s1164_s22 = smov 0  }
   0x3 LB: > { %s24_s23 = sadd.s32 1, %s1116_s20  ;;  %s27_s24 = sadd.s32 1, %s1120_s21  ;;  %s1124_s22 = sphi %s1164_s22, %s15_s22   ;;  %s1120_s21 = sphi %s1162_s21, %s1323_s21   ;;  %s1116_s20 = sphi %s1160_s20, %s1322_s20   ;;  %s1112_s19 = sphi %s1158_s19, %s1321_s19   ;;  %s1108_s18 = sphi %s1156_s18, %s1320_s18  }
   0x4   : > { %p25_p0 = scmp.ge.s32.totalorder %s24_s23, 2  ;;  %p795_p1 = scmp.ge.s32.totalorder %s1124_s22, 1 }
   0x5   : > { %p233_p2 = scmp.lt.s32.totalorder %s1124_s22, 5 }
   0x6   : > { %s1325_s23 = smov (%p25_p0, %s24_s23), 0  ;;  %s1327_s24 = smov (!%p25_p0, %s27_s24), %s1120_s21 }
   0x7   : > { %p234_p3 = pnand %p795_p1, %p233_p2  ;;  %p29_p4 = scmp.ge.s32.totalorder %s1327_s24, 2 }
   0x8   : > { %v1078_v0 = vld [vmem:[%s1316_s2] sm:$0xff] (!%p234_p3)   ;;  %s796_s27 = sshll.u32 (!%p234_p3), %s1108_s18, 4  ;;  %v1079_v1 = vld [vmem:[%s1316_s2 + $0x8] sm:$0xff] (!%p234_p3)   ;;  %p282_p5 = scmp.lt.s32.totalorder (!%p234_p3), %s1112_s19, 1  ;;  %v1080_v2 = vld [vmem:[%s1316_s2 + $0x10] sm:$0xff] (!%p234_p3)  }
   0x9   : > { %s1329_s24 = smov (%p29_p4, %s1327_s24), 0  ;;  %237 = sbr.rel (%p234_p3) target bundleno = 272 (0x110), region = 40 }
   0xa   : > { %990 = vmatprep.subr.bf16.mxu0 (!%p234_p3), %v1078_v0  ;;  %1022 = vmatprep.subr.bf16.mxu1 (!%p234_p3), %v1078_v0  ;;  %p284_p6 = scmp.lt.s32.totalorder (!%p234_p3), %s796_s27, 31  ;;  %v1081_v3 = vld [vmem:[%s1316_s2 + $0x18] sm:$0xff] (!%p234_p3)   ;;  %v1082_v11 = vld [vmem:[%s1316_s2 + $0x20] sm:$0xff] (!%p234_p3)   ;;  %v1083_v18 = vld [vmem:[%s1316_s2 + $0x28] sm:$0xff] (!%p234_p3)  }
   0xb   : > { %991 = vmatpush3.bf16.msra.mxu0 (!%p234_p3), %v1078_v0  ;;  %1030 = vmatpush3.bf16.msra.mxu1 (!%p234_p3), %v1078_v0  ;;  %v1084_v22 = vld [vmem:[%s1316_s2 + $0x30] sm:$0xff] (!%p234_p3)   ;;  %v1085_v32 = vld [vmem:[%s1316_s2 + $0x38] sm:$0xff] (!%p234_p3)   ;;  %v1263_v61 = vld [vmem:[%s1317_s3] ss:$0 sm:$0xff] (!%p234_p3) }
   0xc   : > { %992 = vmatprep.subr.bf16.mxu0 (!%p234_p3), %v1079_v1  ;;  %1023 = vmatprep.subr.bf16.mxu1 (!%p234_p3), %v1079_v1 }
   0xf   : > { %993 = vmatpush3.bf16.msra.mxu0 (!%p234_p3), %v1079_v1  ;;  %1031 = vmatpush3.bf16.msra.mxu1 (!%p234_p3), %v1079_v1 }
  0x10   : > { %s1331_s19 = smov (!%p282_p5, %s1112_s19), 1  ;;  %s1333_s27 = smov (!%p284_p6, %s796_s27), 31  ;;  %994 = vmatprep.subr.bf16.mxu0 %v1080_v2  ;;  %1024 = vmatprep.subr.bf16.mxu1 %v1080_v2 }
  0x11   : > { %s797_s7 = sshll.u32 %s1331_s19, 5  ;;  %s293_s11 = scalar_lea.vmem %s1315_s1, %s1331_s19 }
  0x12   : > { %s287_s8 = sadd.s32 %s797_s7, %s1333_s27  ;;  %v1213_v5 = vld [vmem:[%s293_s11] ss:$0 sm:$0xff] }
  0x13   : > { %s1201_s12 = sshll.u32 %s287_s8, 2  ;;  %995 = vmatpush3.bf16.msra.mxu0 %v1080_v2  ;;  %1032 = vmatpush3.bf16.msra.mxu1 %v1080_v2 }
  0x14   : > { %s1210_s17 = scalar_lea.vmem %s1314_s0, %s1201_s12  ;;  %996 = vmatprep.subr.bf16.mxu0 %v1081_v3  ;;  %1025 = vmatprep.subr.bf16.mxu1 %v1081_v3  ;;  %s1254_s8 = scalar_lea.vmem %s1318_s4, %s1201_s12 }
  0x15   : > { %v850_v4 = vld [vmem:[%s1210_s17] sm:$0xff]   ;;  %v953_v19 = vld [vmem:[%s1210_s17 + $0x8] sm:$0xff]   ;;  %v954_v21 = vld [vmem:[%s1210_s17 + $0x10] sm:$0xff]   ;;  %s1281_s14 = scalar_lea.vmem %s1319_s5, %s1201_s12 }
  0x16   : > { %v956_v6 = vld [vmem:[%s1210_s17 + $0x20] sm:$0xff]   ;;  %v851_v7 = vunpack.c.l.bf16 %v850_v4  ;;  %v852_v8 = vunpack.c.h.bf16 %v850_v4  ;;  %v957_v20 = vld [vmem:[%s1210_s17 + $0x28] sm:$0xff]   ;;  %v958_v23 = vld [vmem:[%s1210_s17 + $0x30] sm:$0xff]   ;;  %v855_v24 = vunpack.c.l.bf16 %v953_v19  ;;  %v856_v25 = vunpack.c.h.bf16 %v953_v19 }
  0x17   : > { %v867_v9 = vunpack.c.l.bf16 %v956_v6  ;;  %v868_v10 = vunpack.c.h.bf16 %v956_v6  ;;  %997 = vmatpush3.bf16.msra.mxu0 %v1081_v3  ;;  %1033 = vmatpush3.bf16.msra.mxu1 %v1081_v3  ;;  %v871_v26 = vunpack.c.l.bf16 %v957_v20  ;;  %v872_v27 = vunpack.c.h.bf16 %v957_v20  ;;  %v955_v38 = vld [vmem:[%s1210_s17 + $0x18] sm:$0xff]   ;;  %v960_v57 = vld [vmem:[%s1254_s8 + $0x8] sm:$0xff]   ;;  %v882_v59 = vld [vmem:[%s1254_s8] sm:$0xff]  }
  0x18   : > { %v354_v12 = vmul.f32 %v851_v7, %v1213_v5  ;;  %v355_v13 = vmul.f32 %v852_v8, %v1213_v5  ;;  %998 = vmatprep.subr.bf16.mxu0 %v1082_v11  ;;  %1026 = vmatprep.subr.bf16.mxu1 %v1082_v11  ;;  %v859_v28 = vunpack.c.l.bf16 %v954_v21  ;;  %v860_v29 = vunpack.c.h.bf16 %v954_v21  ;;  %v959_v42 = vld [vmem:[%s1210_s17 + $0x38] sm:$0xff]   ;;  %v964_v58 = vld [vmem:[%s1254_s8 + $0x28] sm:$0xff]   ;;  %v963_v60 = vld [vmem:[%s1254_s8 + $0x20] sm:$0xff]  }
  0x19   : > { %v362_v14 = vmul.f32 %v867_v9, %v1213_v5  ;;  %v363_v15 = vmul.f32 %v868_v10, %v1213_v5  ;;  %v875_v30 = vunpack.c.l.bf16 %v958_v23  ;;  %v876_v31 = vunpack.c.h.bf16 %v958_v23  ;;  %v966_v23 = vld [vmem:[%s1254_s8 + $0x38] sm:$0xff]  }
  0x1a   : > { %v370_v16 = vpack.c.bf16 %v355_v13, %v354_v12  ;;  %v356_v33 = vmul.f32 %v855_v24, %v1213_v5  ;;  %v357_v34 = vmul.f32 %v856_v25, %v1213_v5  ;;  %v364_v35 = vmul.f32 %v871_v26, %v1213_v5 }
  0x1b   : > { %v374_v17 = vpack.c.bf16 %v363_v15, %v362_v14  ;;  %999 = vmatpush3.bf16.msra.mxu0 %v1082_v11  ;;  %1034 = vmatpush3.bf16.msra.mxu1 %v1082_v11  ;;  %v365_v36 = vmul.f32 %v872_v27, %v1213_v5  ;;  %v358_v37 = vmul.f32 %v859_v28, %v1213_v5  ;;  %v863_v44 = vunpack.c.l.bf16 %v955_v38  ;;  %v961_v28 = vld [vmem:[%s1254_s8 + $0x10] sm:$0xff]  }
  0x1c   : > { %1006 = vmatprep.mubr.bf16.mxu0 %v370_v16  ;;  %1000 = vmatprep.subr.bf16.mxu0 %v1083_v18  ;;  %v359_v39 = vmul.f32 %v860_v29, %v1213_v5  ;;  %v366_v40 = vmul.f32 %v875_v30, %v1213_v5  ;;  %v367_v41 = vmul.f32 %v876_v31, %v1213_v5  ;;  %v864_v46 = vunpack.c.h.bf16 %v955_v38  ;;  %v965_v29 = vld [vmem:[%s1254_s8 + $0x30] sm:$0xff]  }
  0x1d   : > { %1014 = vmatprep.mubr.bf16.mxu1 %v374_v17  ;;  %1027 = vmatprep.subr.bf16.mxu1 %v1083_v18  ;;  %v371_v43 = vpack.c.bf16 %v357_v34, %v356_v33  ;;  %v375_v45 = vpack.c.bf16 %v365_v36, %v364_v35  ;;  %v879_v47 = vunpack.c.l.bf16 %v959_v42  ;;  %v880_v48 = vunpack.c.h.bf16 %v959_v42 }
  0x1e   : > { %v372_v49 = vpack.c.bf16 %v359_v39, %v358_v37  ;;  %v376_v50 = vpack.c.bf16 %v367_v41, %v366_v40  ;;  %v360_v51 = vmul.f32 %v863_v44, %v1213_v5  ;;  %v361_v52 = vmul.f32 %v864_v46, %v1213_v5 }
  0x1f   : > { %1001 = vmatpush3.bf16.msra.mxu0 %v1083_v18  ;;  %1035 = vmatpush3.bf16.msra.mxu1 %v1083_v18  ;;  %v368_v53 = vmul.f32 %v879_v47, %v1213_v5  ;;  %v369_v54 = vmul.f32 %v880_v48, %v1213_v5  ;;  %v887_v63 = vunpack.c.l.bf16 %v960_v57  ;;  %v903_v1 = vunpack.c.l.bf16 %v964_v58 }
  0x20   : > { %1002 = vmatprep.subr.bf16.mxu0 %v1084_v22  ;;  %1028 = vmatprep.subr.bf16.mxu1 %v1084_v22  ;;  %v373_v55 = vpack.c.bf16 %v361_v52, %v360_v51  ;;  %v883_v2 = vunpack.c.l.bf16 %v882_v59  ;;  %v899_v3 = vunpack.c.l.bf16 %v963_v60  ;;  %v888_v8 = vunpack.c.h.bf16 %v960_v57 }
  0x21   : > { %v377_v56 = vpack.c.bf16 %v369_v54, %v368_v53  ;;  %v904_v9 = vunpack.c.h.bf16 %v964_v58  ;;  %v884_v14 = vunpack.c.h.bf16 %v882_v59  ;;  %v900_v15 = vunpack.c.h.bf16 %v963_v60 }
  0x22   : > { %v911_v37 = vunpack.c.l.bf16 %v966_v23  ;;  %v891_v42 = vunpack.c.l.bf16 %v961_v28  ;;  %v892_v54 = vunpack.c.h.bf16 %v961_v28 }
  0x23   : > { %1003 = vmatpush3.bf16.msra.mxu0 %v1084_v22  ;;  %1036 = vmatpush3.bf16.msra.mxu1 %v1084_v22  ;;  %v962_v22 = vld [vmem:[%s1254_s8 + $0x18] sm:$0xff]  }
  0x24   : > { %1004 = vmatprep.subr.bf16.mxu0 %v1085_v32  ;;  %1029 = vmatprep.subr.bf16.mxu1 %v1085_v32  ;;  %v895_v36 = vunpack.c.l.bf16 %v962_v22  ;;  %v896_v48 = vunpack.c.h.bf16 %v962_v22 }
  0x27   : > { %1005 = vmatpush3.bf16.msra.mxu0 %v1085_v32  ;;  %1037 = vmatpush3.bf16.msra.mxu1 %v1085_v32 }
  0x2a   : > { %1007 = vmatmul.mubr.bf16.vlgmr.msra.gmra.mrb[0].mxu0 %v371_v43  ;;  %1015 = vmatmul.mubr.bf16.vlgmr.msra.gmra.mrb[0].mxu1 %v375_v45  ;;  %v907_v43 = vunpack.c.l.bf16 %v965_v29 }
  0x2b   : > { %1010 = vmatprep.mubr.bf16.mxu0 %v372_v49  ;;  %1018 = vmatprep.mubr.bf16.mxu1 %v376_v50  ;;  %v912_v49 = vunpack.c.h.bf16 %v966_v23 }
  0x32   : > { %1011 = vmatmul.mubr.bf16.gmra.mrb[4].mxu0 %v373_v55  ;;  %1019 = vmatmul.mubr.bf16.gmra.mrb[4].mxu1 %v377_v56  ;;  %v908_v55 = vunpack.c.h.bf16 %v965_v29 }
  0xfd   : > { %v1008_v62 = vpop.f32.mrb[0].mxu0  ;;  %v1016_v0 = vpop.f32.mrb[0].mxu1 }
  0xfe   : > { %v492_v4 = vadd.f32 %v1008_v62, %v1263_v61  ;;  %v524_v5 = vadd.f32 %v1016_v0, %v1263_v61  ;;  %v483_v6 = vpop.f32.mrb[1].mxu0  ;;  %v515_v7 = vpop.f32.mrb[1].mxu1 }
  0xff   : > { %v484_v10 = vadd.f32 %v1263_v61, %v483_v6  ;;  %v516_v11 = vadd.f32 %v1263_v61, %v515_v7  ;;  %v1009_v12 = vpop.f32.mrb[2].mxu0  ;;  %v1017_v13 = vpop.f32.mrb[2].mxu1 }
 0x100   : > { %v495_v16 = vadd.f32 %v1009_v12, %v1263_v61  ;;  %v527_v17 = vadd.f32 %v1017_v13, %v1263_v61  ;;  %v486_v18 = vpop.f32.mrb[3].mxu0  ;;  %v518_v19 = vpop.f32.mrb[3].mxu1  ;;  %v580_v24 = vadd.f32 %v887_v63, %v492_v4  ;;  %v588_v25 = vadd.f32 %v903_v1, %v524_v5 }
 0x101   : > { %v487_v20 = vadd.f32 %v1263_v61, %v486_v18  ;;  %v519_v21 = vadd.f32 %v1263_v61, %v518_v19  ;;  %v578_v30 = vadd.f32 %v883_v2, %v484_v10  ;;  %v586_v31 = vadd.f32 %v899_v3, %v516_v11 }
 0x102   : > { %v581_v26 = vadd.f32 %v888_v8, %v495_v16  ;;  %v589_v27 = vadd.f32 %v904_v9, %v527_v17 }
 0x103   : > { %v579_v32 = vadd.f32 %v884_v14, %v487_v20  ;;  %v587_v33 = vadd.f32 %v900_v15, %v519_v21 }
 0x104   : > { %v921_v34 = vpack.c.bf16 %v581_v26, %v580_v24  ;;  %v941_v35 = vpack.c.bf16 %v589_v27, %v588_v25 }
 0x105   : > { %v916_v38 = vpack.c.bf16 %v579_v32, %v578_v30  ;;  %v936_v39 = vpack.c.bf16 %v587_v33, %v586_v31  ;;  %v1012_v40 = vpop.f32.mrb[4].mxu0  ;;  %v1020_v41 = vpop.f32.mrb[4].mxu1 }
 0x106   : > { %967 = vst [vmem:[%s1281_s14 + $0x8] sm:$0xff] %v921_v34   ;;  %971 = vst [vmem:[%s1281_s14 + $0x28] sm:$0xff] %v941_v35   ;;  %v508_v44 = vadd.f32 %v1012_v40, %v1263_v61  ;;  %v540_v45 = vadd.f32 %v1020_v41, %v1263_v61  ;;  %v499_v46 = vpop.f32.mrb[5].mxu0  ;;  %v531_v47 = vpop.f32.mrb[5].mxu1 }
 0x107   : > { %917 = vst [vmem:[%s1281_s14] sm:$0xff] %v916_v38   ;;  %970 = vst [vmem:[%s1281_s14 + $0x20] sm:$0xff] %v936_v39   ;;  %v500_v50 = vadd.f32 %v1263_v61, %v499_v46  ;;  %v532_v51 = vadd.f32 %v1263_v61, %v531_v47  ;;  %v1013_v52 = vpop.f32.mrb[6].mxu0  ;;  %v1021_v53 = vpop.f32.mrb[6].mxu1 }
 0x108   : > { %v511_v56 = vadd.f32 %v1013_v52, %v1263_v61  ;;  %v543_v57 = vadd.f32 %v1021_v53, %v1263_v61  ;;  %v502_v58 = vpop.f32.mrb[7].mxu0  ;;  %v534_v59 = vpop.f32.mrb[7].mxu1  ;;  %v584_v63 = vadd.f32 %v895_v36, %v508_v44  ;;  %v592_v0 = vadd.f32 %v911_v37, %v540_v45 }
 0x109   : > { %v503_v60 = vadd.f32 %v1263_v61, %v502_v58  ;;  %v535_v62 = vadd.f32 %v1263_v61, %v534_v59  ;;  %v582_v3 = vadd.f32 %v891_v42, %v500_v50  ;;  %v590_v4 = vadd.f32 %v907_v43, %v532_v51 }
 0x10a   : > { %v585_v1 = vadd.f32 %v896_v48, %v511_v56  ;;  %v593_v2 = vadd.f32 %v912_v49, %v543_v57 }
 0x10b   : > { %v583_v5 = vadd.f32 %v892_v54, %v503_v60  ;;  %v591_v6 = vadd.f32 %v908_v55, %v535_v62 }
 0x10c   : > { %v931_v7 = vpack.c.bf16 %v585_v1, %v584_v63  ;;  %v951_v8 = vpack.c.bf16 %v593_v2, %v592_v0 }
 0x10d   : > { %v926_v9 = vpack.c.bf16 %v583_v5, %v582_v3  ;;  %v946_v10 = vpack.c.bf16 %v591_v6, %v590_v4 }
 0x10e   : > { %969 = vst [vmem:[%s1281_s14 + $0x18] sm:$0xff] %v931_v7   ;;  %973 = vst [vmem:[%s1281_s14 + $0x38] sm:$0xff] %v951_v8  }
 0x10f   : > { %968 = vst [vmem:[%s1281_s14 + $0x10] sm:$0xff] %v926_v9   ;;  %972 = vst [vmem:[%s1281_s14 + $0x30] sm:$0xff] %v946_v10  }
 0x110 PF: > { %s15_s22 = sadd.s32 1, %s1124_s22   ;;  %s1320_s18 = smov %s1116_s20 }
 0x111   : > { %p12_p7 = scmp.ge.s32.totalorder %s15_s22, 6   ;;  %s1321_s19 = smov %s1120_s21 }
 0x112   : > { %s1322_s20 = smov %s1325_s23  ;;  %s1323_s21 = smov %s1329_s24 }
 0x113   :  { %14 = sbr.rel (!%p12_p7) target bundleno = 3 (0x3), region = 76 }

// kernel: _lambda_.4
= control target key start
LH: loop header
LB: loop body
LE: loop exit
PB: predicated region body
PF: predicated region fallthrough
CT: control target
= control target key end

     0   :  { %s5682_s21 = smov 0   ;;  %s5684_s22 = smov 0   ;;  %s8932_s0 = inlined_call_operand.vmem [shape: bf16[2,18,16,128], index: 0, kind: input, shape index: {}]   ;;  %s8933_s1 = inlined_call_operand.vmem [shape: bf16[128,128], index: 1, kind: input, shape index: {}]   ;;  %s8934_s2 = inlined_call_operand.vmem [shape: f32[1,128], index: 2, kind: input, shape index: {}]   ;;  %s8935_s3 = inlined_call_operand.vmem [shape: f32[9,128], index: 3, kind: input, shape index: {}]   ;;  %s8936_s4 = inlined_call_operand.vmem [shape: f32[1,128], index: 4, kind: input, shape index: {}]   ;;  %s8937_s5 = inlined_call_operand.vmem [shape: bf16[2,16,16,128], index: 5, kind: output, shape index: {0}]   ;;  %s8938_s6 = inlined_call_operand.vmem [shape: f32[2,1,1,128], index: 6, kind: output, shape index: {1}]  }
   0x1   :  { %s5686_s23 = smov 0  }
   0x2 LB: > { %s29_s24 = sadd.s32 1, %s5639_s22  ;;  %p4911_p0 = scmp.ge.s32.totalorder %s5643_s23, 1  ;;  %s5643_s23 = sphi %s5686_s23, %s17_s23   ;;  %s5639_s22 = sphi %s5684_s22, %s9672_s22   ;;  %s5635_s21 = sphi %s5682_s21, %s9671_s21  }
   0x3   : > { %p31_p1 = scmp.ge.s32.totalorder %s29_s24, 2  ;;  %p231_p2 = scmp.lt.s32.totalorder %s5643_s23, 3 }
   0x5   : > { %s9674_s24 = smov (%p31_p1, %s29_s24), 0  ;;  %p232_p3 = pnand %p4911_p0, %p231_p2 }
   0x7   : > { %235 = sbr.rel (%p232_p3) target bundleno = 897 (0x381), region = 40 }
   0xe   : > { %v5264_v0 = vld [vmem:[%s8933_s1] sm:$0xff]   ;;  %p272_p4 = scmp.lt.s32.totalorder %s5635_s21, 1  ;;  %v5265_v1 = vld [vmem:[%s8933_s1 + $0x8] sm:$0xff]   ;;  %v5266_v2 = vld [vmem:[%s8933_s1 + $0x10] sm:$0xff]   ;;  %v5645_v26 = vmov 0   ;;  %v5646_v27 = vmov 0.0|0.0   ;;  %v1372_v28 = vlaneseq }
   0xf   : > { %5169 = vmatprep.subr.bf16.mxu0 %v5264_v0  ;;  %5221 = vmatprep.subr.bf16.mxu1 %v5264_v0  ;;  %v5267_v3 = vld [vmem:[%s8933_s1 + $0x18] sm:$0xff]   ;;  %v5268_v6 = vld [vmem:[%s8933_s1 + $0x20] sm:$0xff]   ;;  %v5269_v7 = vld [vmem:[%s8933_s1 + $0x28] sm:$0xff]   ;;  %296 = vst [vmem:[#allocation2] sm:$0xff] %v5645_v26  ;;  %v1245_v34 = vrot.slane %v5646_v27, 4  ;;  %vm1243_vm0 = vcmask 1043456   ;;  %v1472_v36 = vunpack.c.l.bf16 %v5646_v27  ;;  %v1473_v39 = vunpack.c.h.bf16 %v5646_v27 }
  0x10   : > { %s9676_s21 = smov (!%p272_p4, %s5635_s21), 1  ;;  %5170 = vmatpush3.bf16.msra.mxu0 %v5264_v0  ;;  %5229 = vmatpush3.bf16.msra.mxu1 %v5264_v0  ;;  %v5270_v8 = vld [vmem:[%s8933_s1 + $0x30] sm:$0xff]   ;;  %v5271_v9 = vld [vmem:[%s8933_s1 + $0x38] sm:$0xff]   ;;  %298 = vst [vmem:[#allocation2 + $0x10] sm:$0xff] %v5645_v26  ;;  %299 = vst [vmem:[#allocation2 + $0x18] sm:$0xff] %v5645_v26  ;;  %v5750_v29 = vshrl.u32 %v1372_v28, 7 }
  0x11   : > { %5171 = vmatprep.subr.bf16.mxu0 %v5265_v1  ;;  %5222 = vmatprep.subr.bf16.mxu1 %v5265_v1  ;;  %s5237_s7 = smul.u32 144, %s9676_s21  ;;  %301 = vst [vmem:[#allocation2 + $0x28] sm:$0xff] %v5645_v26  ;;  %302 = vst [vmem:[#allocation2 + $0x30] sm:$0xff] %v5645_v26  ;;  %v5756_v32 = vld [vmem:[%s8935_s3] sm:$0xff]  ;;  %v1326_v48 = vunpack.c.l.bf16 %v1245_v34  ;;  %vm1572_vm1 = vcmask 1046528   ;;  %vm1849_vm2 = vcmask 1045504   ;;  %s293_s15 = scalar_lea.vmem %s8938_s6, %s9676_s21 }
  0x12   : > { %304 = vst [vmem:[#allocation2 + $0x40] sm:$0xff] %v5645_v26  ;;  %305 = vst [vmem:[#allocation2 + $0x48] sm:$0xff] %v5645_v26  ;;  %v1506_v31 = vsub.s32 1, %v5750_v29  ;;  %v1374_v35 = vsub.s32 0, %v5750_v29  ;;  %v1751_v40 = vsub.s32 2, %v5750_v29  ;;  %vm4686_vm3 = vcmask 1047559  }
  0x13   : > { %s5715_s10 = scalar_lea.vmem %s8932_s0, %s5237_s7  ;;  %307 = vst [vmem:[#allocation2 + $0x58] sm:$0xff] %v5645_v26  ;;  %308 = vst [vmem:[#allocation2 + $0x60] sm:$0xff] %v5645_v26  ;;  %v5783_v58 = vld [vmem:[%s8934_s2] ss:$0 sm:$0xff]  ;;  %vm4267_vm4 = vsmask.f32 256 }
  0x14   : > { %5172 = vmatpush3.bf16.msra.mxu0 %v5265_v1  ;;  %5230 = vmatpush3.bf16.msra.mxu1 %v5265_v1  ;;  %v5272_v4 = vld [vmem:[%s5715_s10] sm:$0xff]   ;;  %v5273_v5 = vld [vmem:[%s5715_s10 + $0x50] sm:$0xff]   ;;  %v5274_v10 = vld [vmem:[%s5715_s10 + $0x8] sm:$0xff]   ;;  %310 = vst [vmem:[#allocation2 + $0x70] sm:$0xff] %v5645_v26  ;;  %v5760_v37 = vrot.slane %v5756_v32, %v1506_v31  ;;  %v5765_v42 = vrot.slane %v5756_v32, %v1374_v35  ;;  %vm4268_vm5 = vsmask.f32 4368 }
  0x15   : > { %5173 = vmatprep.subr.bf16.mxu0 %v5266_v2  ;;  %5223 = vmatprep.subr.bf16.mxu1 %v5266_v2  ;;  %v5275_v11 = vld [vmem:[%s5715_s10 + $0x58] sm:$0xff]   ;;  %v5276_v12 = vld [vmem:[%s5715_s10 + $0x10] sm:$0xff]   ;;  %v5277_v13 = vld [vmem:[%s5715_s10 + $0x60] sm:$0xff]   ;;  %311 = vst [vmem:[#allocation2 + $0x78] sm:$0xff] %v5645_v26  ;;  %v5770_v47 = vrot.slane %v5756_v32, %v1751_v40  ;;  %s5094_s11 = sshll.u32 %s9676_s21, 7  ;;  %vm4767_vm7 = vcmask 1040384  }
  0x16   : > { %5185 = vmatprep.mubr.bf16.mxu0 %v5272_v4  ;;  %5205 = vmatprep.mubr.bf16.mxu1 %v5273_v5  ;;  %v5278_v14 = vld [vmem:[%s5715_s10 + $0x18] sm:$0xff]   ;;  %v5279_v15 = vld [vmem:[%s5715_s10 + $0x68] sm:$0xff]   ;;  %v5280_v16 = vld [vmem:[%s5715_s10 + $0x20] sm:$0xff]   ;;  %313 = vst [vmem:[#allocation2 + $0x88] sm:$0xff] %v5645_v26  ;;  %v1508_v43 = vmul.f32 %v5760_v37, %v1472_v36  ;;  %v1509_v45 = vmul.f32 %v5760_v37, %v1473_v39  ;;  %s6850_s14 = scalar_lea.vmem %s8937_s5, %s5094_s11 }
  0x17   : > { %v5281_v17 = vld [vmem:[%s5715_s10 + $0x70] sm:$0xff]   ;;  %v5282_v18 = vld [vmem:[%s5715_s10 + $0x28] sm:$0xff]   ;;  %v5283_v19 = vld [vmem:[%s5715_s10 + $0x78] sm:$0xff]   ;;  %314 = vst [vmem:[#allocation2 + $0x90] sm:$0xff] %v5645_v26  ;;  %v5776_v56 = vmul.f32 %v5770_v47, %v1472_v36  ;;  %v1378_v59 = vmul.f32 %v5765_v42, %v1326_v48  ;;  %v1754_v60 = vmul.f32 %v5770_v47, %v1473_v39 }
  0x18   : > { %5174 = vmatpush3.bf16.msra.mxu0 %v5266_v2  ;;  %5231 = vmatpush3.bf16.msra.mxu1 %v5266_v2  ;;  %v5284_v20 = vld [vmem:[%s5715_s10 + $0x30] sm:$0xff]   ;;  %v5285_v21 = vld [vmem:[%s5715_s10 + $0x80] sm:$0xff]   ;;  %v5286_v22 = vld [vmem:[%s5715_s10 + $0x38] sm:$0xff]   ;;  %316 = vst [vmem:[#allocation2 + $0xa0] sm:$0xff] %v5645_v26  ;;  %v1573_v53 = vrot.slane %v1508_v43, 1  ;;  %v1574_v55 = vrot.slane %v1509_v45, 1 }
  0x19   : > { %5175 = vmatprep.subr.bf16.mxu0 %v5267_v3  ;;  %5224 = vmatprep.subr.bf16.mxu1 %v5267_v3  ;;  %v5287_v23 = vld [vmem:[%s5715_s10 + $0x88] sm:$0xff]   ;;  %v5288_v24 = vld [vmem:[%s5715_s10 + $0x40] sm:$0xff]   ;;  %317 = vst [vmem:[#allocation2 + $0xa8] sm:$0xff] %v5645_v26  ;;  %319 = vst [vmem:[#allocation2 + $0xb8] sm:$0xff] %v5645_v26 }
  0x1a   : > { %v5289_v25 = vld [vmem:[%s5715_s10 + $0x48] sm:$0xff]   ;;  %320 = vst [vmem:[#allocation2 + $0xc0] sm:$0xff] %v5645_v26  ;;  %322 = vst [vmem:[#allocation2 + $0xd0] sm:$0xff] %v5645_v26  ;;  %v1179_v30 = vld [vmem:[#allocation2] sm:$0x80] }
  0x1b   : > { %323 = vst [vmem:[#allocation2 + $0xd8] sm:$0xff] %v5645_v26  ;;  %325 = vst [vmem:[#allocation2 + $0xe8] sm:$0xff] %v5645_v26  ;;  %v1244_v33 = vrot.slane %v1179_v30, 4  ;;  %v1717_v44 = vld [vmem:[#allocation2 + $0x10] sm:$0x1] }
  0x1c   : > { %5176 = vmatpush3.bf16.msra.mxu0 %v5267_v3  ;;  %5232 = vmatpush3.bf16.msra.mxu1 %v5267_v3  ;;  %326 = vst [vmem:[#allocation2 + $0xf0] sm:$0xff] %v5645_v26  ;;  %328 = vst [vmem:[#allocation2 + $0x100] sm:$0xff] %v5645_v26  ;;  %v1718_v46 = vld [vmem:[#allocation2 + $0x28] sm:$0x1]  ;;  %v1733_v50 = vunpack.c.l.bf16 %v1717_v44  ;;  %v5772_v51 = vld [vmem:[#allocation2 + $0x18] sm:$0x80] }
  0x1d   : > { %5177 = vmatprep.subr.bf16.mxu0 %v5268_v6  ;;  %5225 = vmatprep.subr.bf16.mxu1 %v5268_v6  ;;  %329 = vst [vmem:[#allocation2 + $0x108] sm:$0xff] %v5645_v26  ;;  %331 = vst [vmem:[#allocation2 + $0x118] sm:$0xff] %v5645_v26  ;;  %v1246_v38 = vsel %vm1243_vm0, %v1244_v33, %v1245_v34  ;;  %v1734_v54 = vunpack.c.l.bf16 %v1718_v46  ;;  %v5778_v57 = vld [vmem:[#allocation2 + $0x18] sm:$0x80]  ;;  %v2353_v46 = vsub.s32 4, %v5750_v29 }
  0x1e   : > { %332 = vst [vmem:[#allocation2 + $0x120] sm:$0xff] %v5645_v26  ;;  %334 = vst [vmem:[#allocation2 + $0x130] sm:$0xff] %v5645_v26  ;;  %v1324_v41 = vunpack.c.l.bf16 %v1246_v38  ;;  %v1325_v49 = vunpack.c.h.bf16 %v1246_v38  ;;  %v1755_v63 = vmul.f32 %v5770_v47, %v1733_v50  ;;  %v5918_v61 = vld [vmem:[#allocation2 + $0x48] sm:$0x80] }
  0x1f   : > { %335 = vst [vmem:[#allocation2 + $0x138] sm:$0xff] %v5645_v26  ;;  %337 = vst [vmem:[#allocation2 + $0x148] sm:$0xff] %v5645_v26  ;;  %v5791_v3 = vmul.f32 %v5770_v47, %v1734_v54  ;;  %v5923_v4 = vld [vmem:[#allocation2 + $0x48] sm:$0x80] }
  0x20   : > { %5178 = vmatpush3.bf16.msra.mxu0 %v5268_v6  ;;  %5233 = vmatpush3.bf16.msra.mxu1 %v5268_v6  ;;  %338 = vst [vmem:[#allocation2 + $0x150] sm:$0xff] %v5645_v26  ;;  %340 = vst [vmem:[#allocation2 + $0x160] sm:$0xff] %v5645_v26  ;;  %v1376_v52 = vmul.f32 %v5765_v42, %v1324_v41  ;;  %v1377_v62 = vmul.f32 %v5765_v42, %v1325_v49  ;;  %v2221_v41 = vsub.s32 3, %v5750_v29 }
  0x21   : > { %5179 = vmatprep.subr.bf16.mxu0 %v5269_v7  ;;  %5226 = vmatprep.subr.bf16.mxu1 %v5269_v7  ;;  %341 = vst [vmem:[#allocation2 + $0x168] sm:$0xff] %v5645_v26  ;;  %343 = vst [vmem:[#allocation2 + $0x178] sm:$0xff] %v5645_v26 }
  0x22   : > { %344 = vst [vmem:[#allocation2 + $0x180] sm:$0xff] %v5645_v26  ;;  %346 = vst [vmem:[#allocation2 + $0x190] sm:$0xff] %v5645_v26  ;;  %v1669_v2 = vadd.f32 %v1573_v53, %v1376_v52 }
  0x23   : > { %347 = vst [vmem:[#allocation2 + $0x198] sm:$0xff] %v5645_v26  ;;  %349 = vst [vmem:[#allocation2 + $0x1a8] sm:$0xff] %v5645_v26 }
  0x24   : > { %5180 = vmatpush3.bf16.msra.mxu0 %v5269_v7  ;;  %5234 = vmatpush3.bf16.msra.mxu1 %v5269_v7  ;;  %1159 = vst [vmem:[#allocation2 + $0x8] sm:$0xff] %v5646_v27  ;;  %9099 = vst [vmem:[#allocation3_spill] sm:$0xff] %v5760_v37  ;;  %v1853_v27 = vrot.slane %v1755_v63, 2  ;;  %v2573_v28 = vld [vmem:[#allocation2 + $0x118] sm:$0x1] }
  0x25   : > { %5181 = vmatprep.subr.bf16.mxu0 %v5270_v8  ;;  %5227 = vmatprep.subr.bf16.mxu1 %v5270_v8  ;;  %9100 = vst [vmem:[#allocation4_spill] sm:$0xff] %v5765_v42  ;;  %9101 = vst [vmem:[#allocation5_spill] sm:$0xff] %v5770_v47  ;;  %v3417_v38 = vld [vmem:[#allocation2 + $0x118] sm:$0x1]  ;;  %v2589_v43 = vunpack.c.l.bf16 %v2573_v28  ;;  %v5829_v50 = vld [vmem:[#allocation2 + $0x108] sm:$0x80] }
  0x26   : > { %v3433_v52 = vunpack.c.l.bf16 %v3417_v38  ;;  %v5848_v63 = vld [vmem:[#allocation2 + $0x108] sm:$0x80]  ;;  %v3416_v28 = vld [vmem:[#allocation2 + $0x100] sm:$0x1]  ;;  %vm6842_vm6 = vmor %vm4267_vm4, %vm4268_vm5 }
  0x28   : > { %5182 = vmatpush3.bf16.msra.mxu0 %v5270_v8  ;;  %5235 = vmatpush3.bf16.msra.mxu1 %v5270_v8 }
  0x29   : > { %5183 = vmatprep.subr.bf16.mxu0 %v5271_v9  ;;  %5228 = vmatprep.subr.bf16.mxu1 %v5271_v9 }
  0x2c   : > { %5184 = vmatpush3.bf16.msra.mxu0 %v5271_v9  ;;  %5236 = vmatpush3.bf16.msra.mxu1 %v5271_v9  ;;  %v1575_v9 = vsel %vm1572_vm1, %v1573_v53, %v1574_v55 }
  0x2d   : > { %v1670_v26 = vadd.f32 %v1575_v9, %v1377_v62  ;;  %v5857_v9 = vld [vmem:[#allocation2 + $0x108] sm:$0x80] }
  0x2e   : > { %9102 = vst [vmem:[#allocation6_spill] sm:$0xff] %v5857_v9  ;;  %v5948_v9 = vld [vmem:[#allocation2 + $0x148] sm:$0x1] }
  0x2f   : > { %5186 = vmatmul.mubr.bf16.vlgmr.msra.gmra.mrb[0].mxu0 %v5274_v10  ;;  %5206 = vmatmul.mubr.bf16.vlgmr.msra.gmra.mrb[0].mxu1 %v5275_v11  ;;  %v1850_v10 = vrot.slane %v5776_v56, 2  ;;  %v2563_v11 = vld [vmem:[#allocation2 + $0x28] sm:$0x1]  ;;  %9117 = vst [vmem:[#allocation21_spill] sm:$0xff] %v5948_v9 }
  0x30   : > { %5189 = vmatprep.mubr.bf16.mxu0 %v5276_v12  ;;  %5209 = vmatprep.mubr.bf16.mxu1 %v5277_v13  ;;  %v2579_v33 = vunpack.c.l.bf16 %v2563_v11  ;;  %v3066_v11 = vsub.s32 6, %v5750_v29 }
  0x37   : > { %5190 = vmatmul.mubr.bf16.gmra.mrb[4].mxu0 %v5278_v14  ;;  %5210 = vmatmul.mubr.bf16.gmra.mrb[4].mxu1 %v5279_v15  ;;  %v1671_v14 = vadd.f32 %v1574_v55, %v1378_v59  ;;  %v1851_v15 = vrot.slane %v1754_v60, 2  ;;  %v5843_v60 = vld [vmem:[%s8935_s3 + $0x8] ss:$0 sm:$0xff] }
  0x38   : > { %5193 = vmatprep.mubr.bf16.mxu0 %v5280_v16  ;;  %5213 = vmatprep.mubr.bf16.mxu1 %v5281_v17  ;;  %v2597_v16 = vsub.s32 5, %v5750_v29 }
  0x39   : > { %v1852_v44 = vsel %vm1849_vm2, %v1850_v10, %v1851_v15  ;;  %v1854_v45 = vsel %vm1849_vm2, %v1851_v15, %v1853_v27 }
  0x3a   : > { %v5821_v35 = vrot.slane %v5756_v32, %v2597_v16 }
  0x3c   : > { %v5838_v59 = vmul.f32 %v5821_v35, %v2579_v33 }
  0x3f   : > { %5194 = vmatmul.mubr.bf16.gmra.mrb[8].mxu0 %v5282_v18  ;;  %5214 = vmatmul.mubr.bf16.gmra.mrb[8].mxu1 %v5283_v19  ;;  %v1728_v18 = vld [vmem:[#allocation2 + $0x118] sm:$0x1] }
  0x40   : > { %5197 = vmatprep.mubr.bf16.mxu0 %v5284_v20  ;;  %5217 = vmatprep.mubr.bf16.mxu1 %v5285_v21  ;;  %v1744_v36 = vunpack.c.l.bf16 %v1728_v18  ;;  %v5867_v18 = vadd.f32 %v1854_v45, %v1671_v14  ;;  %v5895_v45 = vld [vmem:[#allocation2 + $0xf0] sm:$0x80] }
  0x41   : > { %9105 = vst [vmem:[#allocation9_spill] sm:$0xff] %v5895_v45 }
  0x42   : > { %v5846_v62 = vmul.f32 %v5770_v47, %v1744_v36 }
  0x47   : > { %5198 = vmatmul.mubr.bf16.gmra.mrb[12].mxu0 %v5286_v22  ;;  %5218 = vmatmul.mubr.bf16.gmra.mrb[12].mxu1 %v5287_v23 }
  0x48   : > { %5201 = vmatprep.mubr.bf16.mxu0 %v5288_v24 }
  0x4f   : > { %5202 = vmatmul.mubr.bf16.gmra.mrb[16].mxu0 %v5289_v25 }
 0x102   : > { %v5187_v0 = vpop.f32.mrb[0].mxu0  ;;  %v5207_v1 = vpop.f32.mrb[0].mxu1 }
 0x103   : > { %v5795_v5 = vadd.f32 %v5187_v0, %v5783_v58  ;;  %v5798_v6 = vadd.f32 %v5207_v1, %v5783_v58  ;;  %v602_v7 = vpop.f32.mrb[1].mxu0  ;;  %v682_v8 = vpop.f32.mrb[1].mxu1 }
 0x104   : > { %v5803_v12 = vadd.f32 %v5783_v58, %v682_v8  ;;  %v5188_v13 = vpop.f32.mrb[2].mxu0  ;;  %v5208_v17 = vpop.f32.mrb[2].mxu1  ;;  %v5852_v7 = vadd.f32 %v1850_v10, %v1669_v2  ;;  %v5855_v8 = vmul.f32 %v5821_v35, %v2589_v43  ;;  %v5870_v2 = vrot.slane %v5756_v32, %v2221_v41  ;;  %v1727_v10 = vld [vmem:[#allocation2 + $0x100] sm:$0x1] }
 0x105   : > { %v4944_v19 = vmul.f32 -1.442695, %v5795_v5  ;;  %v4964_v20 = vmul.f32 -1.442695, %v5798_v6  ;;  %v5809_v21 = vadd.f32 %v5188_v13, %v5783_v58  ;;  %v5812_v22 = vadd.f32 %v5208_v17, %v5783_v58  ;;  %v605_v23 = vpop.f32.mrb[3].mxu0  ;;  %v685_v24 = vpop.f32.mrb[3].mxu1 }
 0x106   : > { %v4962_v25 = vmul.f32 -1.442695, %v5803_v12  ;;  %v5816_v30 = vadd.f32 %v5783_v58, %v685_v24  ;;  %v3198_v13 = vsub.s32 7, %v5750_v29  ;;  %v5865_v17 = vadd.f32 %v1852_v44, %v1670_v26  ;;  %v5880_v24 = vld [vmem:[#allocation2 + $0xf0] sm:$0x80] }
 0x107   : > { %5290 = vpow2.f32 %v4944_v19  ;;  %v4945_v31 = vmul.f32 -1.442695, %v5809_v21  ;;  %v4965_v34 = vmul.f32 -1.442695, %v5812_v22  ;;  %v5878_v29 = vmul.f32 %v5843_v60, %v3433_v52  ;;  %v1730_v52 = vld [vmem:[#allocation2 + $0x148] sm:$0x1] }
 0x108   : > { %5292 = vpow2.f32 %v4964_v20  ;;  %v4963_v39 = vmul.f32 -1.442695, %v5816_v30  ;;  %v5874_v20 = vrot.slane %v5756_v32, %v2353_v46  ;;  %v5892_v36 = vrot.slane %v5756_v32, %v3198_v13  ;;  %v3419_v44 = vld [vmem:[#allocation2 + $0x148] sm:$0x1] }
 0x109   : > { %5294 = vpow2.f32 %v4962_v25  ;;  %9103 = vst [vmem:[#allocation7_spill] sm:$0xff] %v5878_v29  ;;  %v1743_v38 = vunpack.c.l.bf16 %v1727_v10 }
 0x10a   : > { %5296 = vpow2.f32 %v4945_v31  ;;  %v5191_v48 = vpop.f32.mrb[4].mxu0  ;;  %v5211_v49 = vpop.f32.mrb[4].mxu1 }
 0x10b   : > { %5298 = vpow2.f32 %v4965_v34  ;;  %v5832_v53 = vadd.f32 %v5191_v48, %v5783_v58  ;;  %v5835_v54 = vadd.f32 %v5211_v49, %v5783_v58  ;;  %v618_v55 = vpop.f32.mrb[5].mxu0  ;;  %v698_v56 = vpop.f32.mrb[5].mxu1  ;;  %v5889_v34 = vrot.slane %v5756_v32, %v3066_v11  ;;  %v3409_v11 = vld [vmem:[#allocation2 + $0x58] sm:$0x1] }
 0x10c   : > { %5300 = vpow2.f32 %v4963_v39  ;;  %v5192_v0 = vpop.f32.mrb[6].mxu0  ;;  %v5850_v1 = vpop.f32.mrb[6].mxu1  ;;  %v1720_v39 = vld [vmem:[#allocation2 + $0x58] sm:$0x1]  ;;  %v5898_v46 = vadd.f32 %v5783_v58, %v618_v55  ;;  %v5902_v32 = vadd.f32 %v5783_v58, %v698_v56  ;;  %v3425_v14 = vunpack.c.l.bf16 %v3409_v11 }
 0x10d   : > { %v5861_v15 = vpop.f32.mrb[7].mxu0  ;;  %v5863_v16 = vpop.f32.mrb[7].mxu1  ;;  %v4948_v19 = vmul.f32 -1.442695, %v5832_v53  ;;  %v4968_v25 = vmul.f32 -1.442695, %v5835_v54  ;;  %v5905_v33 = vadd.f32 %v5192_v0, %v5783_v58  ;;  %v1746_v11 = vunpack.c.l.bf16 %v1730_v52 }
 0x10e   : > { %9104 = vst [vmem:[#allocation8_spill] sm:$0xff] %v5889_v34  ;;  %9106 = vst [vmem:[#allocation10_spill] sm:$0xff] %v5898_v46  ;;  %v2565_v56 = vld [vmem:[#allocation2 + $0x58] sm:$0x1]  ;;  %v1719_v0 = vld [vmem:[#allocation2 + $0x40] sm:$0x1]  ;;  %v5972_v34 = vadd.f32 %v5850_v1, %v5783_v58 }
 0x10f   : > { %5302 = vpow2.f32 %v4948_v19  ;;  %9107 = vst [vmem:[#allocation11_spill] sm:$0xff] %v5902_v32  ;;  %v1736_v19 = vunpack.c.l.bf16 %v1720_v39  ;;  %v4949_v23 = vmul.f32 -1.442695, %v5905_v33  ;;  %v5931_v52 = vld [vmem:[#allocation2 + $0x48] sm:$0x80] }
 0x110   : > { %5304 = vpow2.f32 %v4968_v25  ;;  %v5915_v25 = vld [vmem:[#allocation2 + $0xf0] sm:$0x80]  ;;  %9111 = vst [vmem:[#allocation15_spill] sm:$0xff] %v5931_v52 }
 0x111   : > { %v5291_v31 = vpop.eup %5290  ;;  %9108 = vst [vmem:[#allocation12_spill] sm:$0xff] %v5915_v25  ;;  %v5965_v25 = vld [vmem:[#allocation2 + $0x30] sm:$0x80] }
 0x112   : > { %v5293_v41 = vpop.eup %5292  ;;  %v855_v43 = vadd.f32 1.0, %v5291_v31  ;;  %v2572_v31 = vld [vmem:[#allocation2 + $0x100] sm:$0x1]  ;;  %v5912_v40 = vpop.f32.mrb[8].mxu0  ;;  %9123 = vst [vmem:[#allocation27_spill] sm:$0xff] %v5965_v25 }
 0x113   : > { %v5295_v48 = vpop.eup %5294  ;;  %v875_v49 = vadd.f32 1.0, %v5293_v41  ;;  %v5908_v41 = vmul.f32 %v5770_v47, %v1743_v38  ;;  %v4966_v38 = vmul.f32 -1.442695, %v5902_v32  ;;  %v5986_v32 = vpop.f32.mrb[8].mxu1 }
 0x114   : > { %v5297_v13 = vpop.eup %5296  ;;  %5306 = vrcp.f32 %v855_v43  ;;  %v873_v10 = vadd.f32 1.0, %v5295_v48  ;;  %v4946_v48 = vmul.f32 -1.442695, %v5898_v46  ;;  %v1729_v46 = vld [vmem:[#allocation2 + $0x130] sm:$0x1] }
 0x115   : > { %v5299_v55 = vpop.eup %5298  ;;  %5308 = vrcp.f32 %v875_v49  ;;  %v856_v26 = vadd.f32 1.0, %v5297_v13  ;;  %v2588_v49 = vunpack.c.l.bf16 %v2572_v31  ;;  %v2564_v13 = vld [vmem:[#allocation2 + $0x40] sm:$0x1]  ;;  %v2581_v31 = vunpack.c.l.bf16 %v2565_v56  ;;  %v5935_v56 = vld [vmem:[#allocation2 + $0x138] sm:$0x80] }
 0x116   : > { %v5301_v27 = vpop.eup %5300  ;;  %5310 = vrcp.f32 %v873_v10  ;;  %v876_v43 = vadd.f32 1.0, %v5299_v55  ;;  %v5921_v10 = vmul.f32 %v5770_v47, %v1736_v19  ;;  %v3432_v55 = vunpack.c.l.bf16 %v3416_v28  ;;  %9112 = vst [vmem:[#allocation16_spill] sm:$0xff] %v5935_v56 }
 0x117   : > { %5312 = vrcp.f32 %v856_v26  ;;  %v874_v39 = vadd.f32 1.0, %v5301_v27  ;;  %v3435_v26 = vunpack.c.l.bf16 %v3419_v44  ;;  %v1735_v27 = vunpack.c.l.bf16 %v1719_v0  ;;  %v5940_v0 = vld [vmem:[#allocation2 + $0x138] sm:$0x80] }
 0x118   : > { %5314 = vrcp.f32 %v876_v43  ;;  %9109 = vst [vmem:[#allocation13_spill] sm:$0xff] %v5921_v10  ;;  %v5926_v43 = vmul.f32 %v5843_v60, %v3425_v14  ;;  %v2580_v29 = vunpack.c.l.bf16 %v2564_v13  ;;  %v5938_v14 = vmul.f32 %v5770_v47, %v1746_v11  ;;  %9114 = vst [vmem:[#allocation18_spill] sm:$0xff] %v5940_v0 }
 0x119   : > { %5316 = vrcp.f32 %v874_v39  ;;  %v5303_v28 = vpop.eup %5302  ;;  %v5946_v13 = vmul.f32 %v5843_v60, %v3432_v55  ;;  %v5953_v44 = vmul.f32 %v5843_v60, %v3435_v26  ;;  %v5958_v11 = vmul.f32 %v5770_v47, %v1735_v27  ;;  %v3408_v26 = vld [vmem:[#allocation2 + $0x40] sm:$0x1]  ;;  %v5980_v55 = vld [vmem:[#allocation2 + $0x30] sm:$0x80] }
 0x11a   : > { %5318 = vpow2.f32 %v4946_v48  ;;  %9110 = vst [vmem:[#allocation14_spill] sm:$0xff] %v5926_v43  ;;  %9113 = vst [vmem:[#allocation17_spill] sm:$0xff] %v5938_v14  ;;  %v5305_v39 = vpop.eup %5304  ;;  %v5955_v48 = vld [vmem:[#allocation2 + $0x30] sm:$0x80]  ;;  %v5961_v45 = vmul.f32 %v5821_v35, %v2581_v31  ;;  %v3424_v56 = vunpack.c.l.bf16 %v3408_v26  ;;  %v4969_v0 = vmul.f32 -1.442695, %v5972_v34 }
 0x11b   : > { %5320 = vpow2.f32 %v4966_v38  ;;  %v5943_v38 = vmul.f32 %v5821_v35, %v2588_v49  ;;  %9116 = vst [vmem:[#allocation20_spill] sm:$0xff] %v5946_v13  ;;  %9119 = vst [vmem:[#allocation23_spill] sm:$0xff] %v5953_v44  ;;  %v5968_v13 = vmul.f32 %v5821_v35, %v2580_v29  ;;  %v5978_v49 = vadd.f32 %v5783_v58, %v5861_v15 }
 0x11c   : > { %5322 = vpow2.f32 %v4949_v23  ;;  %v5950_v23 = vld [vmem:[#allocation2 + $0x138] sm:$0x80]  ;;  %9120 = vst [vmem:[#allocation24_spill] sm:$0xff] %v5955_v48  ;;  %9121 = vst [vmem:[#allocation25_spill] sm:$0xff] %v5958_v11  ;;  %v859_v52 = vadd.f32 1.0, %v5303_v28  ;;  %v6004_v1 = vmul.f32 %v5843_v60, %v3424_v56 }
 0x11d   : > { %9115 = vst [vmem:[#allocation19_spill] sm:$0xff] %v5943_v38  ;;  %9118 = vst [vmem:[#allocation22_spill] sm:$0xff] %v5950_v23  ;;  %v4947_v15 = vmul.f32 -1.442695, %v5978_v49  ;;  %5324 = vpow2.f32 %v4969_v0  ;;  %v6018_v28 = vld [vmem:[#allocation2 + $0x120] sm:$0x80] }
 0x11e   : > { %v5307_v19 = vpop.eup %5306  ;;  %9122 = vst [vmem:[#allocation26_spill] sm:$0xff] %v5961_v45  ;;  %9124 = vst [vmem:[#allocation28_spill] sm:$0xff] %v5968_v13 }
 0x11f   : > { %v5309_v38 = vpop.eup %5308  ;;  %9125 = vst [vmem:[#allocation29_spill] sm:$0xff] %v5980_v55  ;;  %v963_v29 = vmul.f32 %v5307_v19, %v5795_v5  ;;  %9126 = vst [vmem:[#allocation30_spill] sm:$0xff] %v6004_v1  ;;  %5326 = vpow2.f32 %v4947_v15  ;;  %v9133_v15 = vrot.slane %v5772_v51, 4  ;;  %v6044_v51 = vadd.f32 %v5986_v32, %v5783_v58 }
 0x120   : > { %v5311_v45 = vpop.eup %5310  ;;  %v983_v48 = vmul.f32 %v5309_v38, %v5798_v6  ;;  %v6008_v6 = vadd.f32 %v5783_v58, %v5863_v16  ;;  %9130 = vst [vmem:[#allocation34_spill] sm:$0xff] %v6018_v28  ;;  %5328 = vrcp.f32 %v859_v52 }
 0x121   : > { %v5313_v27 = vpop.eup %5312  ;;  %v981_v11 = vmul.f32 %v5311_v45, %v5803_v12  ;;  %v879_v12 = vadd.f32 1.0, %v5305_v39  ;;  %v6012_v45 = vld [vmem:[#allocation2 + $0x120] sm:$0x80]  ;;  %9136 = vst [vmem:[#allocation38_spill] sm:$0xff] %v6044_v51 }
 0x122   : > { %v5315_v10 = vpop.eup %5314  ;;  %v964_v43 = vmul.f32 %v5313_v27, %v5809_v21  ;;  %v1745_v21 = vunpack.c.l.bf16 %v1729_v46  ;;  %9127 = vst [vmem:[#allocation31_spill] sm:$0xff] %v6008_v6  ;;  %9128 = vst [vmem:[#allocation32_spill] sm:$0xff] %v6012_v45  ;;  %v4967_v0 = vmul.f32 -1.442695, %v6008_v6  ;;  %v9139_v45 = vrot.slane %v5829_v50, 4 }
 0x123   : > { %v5317_v9 = vpop.eup %5316  ;;  %v984_v31 = vmul.f32 %v5315_v10, %v5812_v22  ;;  %v2574_v22 = vld [vmem:[#allocation2 + $0x130] sm:$0x1]  ;;  %5330 = vrcp.f32 %v879_v12 }
 0x124   : > { %v5319_v26 = vpop.eup %5318  ;;  %v1142_v25 = vpack.c.bf16 %v964_v43, %v963_v29  ;;  %v982_v5 = vmul.f32 %v5317_v9, %v5816_v30  ;;  %v6016_v30 = vadd.f32 %v5912_v40, %v5783_v58  ;;  %v2590_v56 = vunpack.c.l.bf16 %v2574_v22 }
 0x125   : > { %v5321_v19 = vpop.eup %5320  ;;  %v6001_v27 = vpack.c.bf16 %v984_v31, %v983_v48  ;;  %v857_v43 = vadd.f32 1.0, %v5319_v26  ;;  %v6021_v48 = vmul.f32 %v5770_v47, %v1745_v21  ;;  %v9132_v40 = vrot.slane %v5778_v57, 4  ;;  %v6035_v21 = vld [vmem:[#allocation2 + $0x120] sm:$0x80] }
 0x126   : > { %v5323_v10 = vpop.eup %5322  ;;  %v1248_v38 = vrot.slane %v1142_v25, 4  ;;  %v6010_v13 = vpack.c.bf16 %v982_v5, %v981_v11  ;;  %9129 = vst [vmem:[#allocation33_spill] sm:$0xff] %v6016_v30  ;;  %v1474_v9 = vunpack.c.l.bf16 %v1142_v25  ;;  %v1475_v46 = vunpack.c.h.bf16 %v1142_v25  ;;  %9134 = vst [vmem:[#allocation36_spill] sm:$0xff] %v6035_v21 }
 0x127   : > { %v877_v16 = vadd.f32 1.0, %v5321_v19  ;;  %9131 = vst [vmem:[#allocation35_spill] sm:$0xff] %v6021_v48  ;;  %v860_v39 = vadd.f32 1.0, %v5323_v10  ;;  %5332 = vrcp.f32 %v857_v43  ;;  %v6039_v19 = vmul.f32 %v5821_v35, %v2590_v56  ;;  %v5325_v58 = vpop.eup %5324 }
 0x128   : > { %v2093_v25 = vsel %vm1243_vm0, %v9132_v40, %v1248_v38  ;;  %v1249_v26 = vsel %vm1243_vm0, %v9133_v15, %v1248_v38  ;;  %v1510_v52 = vmul.f32 %v5760_v37, %v1474_v9  ;;  %v1511_v5 = vmul.f32 %v5760_v37, %v1475_v46 }
 0x129   : > { %5334 = vrcp.f32 %v877_v16  ;;  %9135 = vst [vmem:[#allocation37_spill] sm:$0xff] %v6039_v19  ;;  %v4952_v22 = vmul.f32 -1.442695, %v6016_v30  ;;  %v2171_v10 = vunpack.c.l.bf16 %v2093_v25  ;;  %v2172_v12 = vunpack.c.h.bf16 %v2093_v25  ;;  %v6066_v19 = vpop.f32.mrb[9].mxu0 }
 0x12a   : > { %5336 = vrcp.f32 %v860_v39  ;;  %v1327_v40 = vunpack.c.l.bf16 %v1249_v26  ;;  %v1329_v15 = vunpack.c.l.bf16 %v1248_v38  ;;  %v1328_v16 = vunpack.c.h.bf16 %v1249_v26  ;;  %v6057_v26 = vpop.eup %5326  ;;  %9138 = vst [vmem:[#allocation40_spill] sm:$0xff] %v6066_v19 }
 0x12b   : > { %5338 = vpow2.f32 %v4967_v0  ;;  %v1576_v29 = vrot.slane %v1510_v52, 1  ;;  %v1577_v57 = vrot.slane %v1511_v5, 1  ;;  %v1757_v56 = vmul.f32 %v5770_v47, %v1475_v46 }
 0x12c   : > { %v2355_v31 = vmul.f32 %v5874_v20, %v1474_v9  ;;  %v2356_v11 = vmul.f32 %v5874_v20, %v1475_v46  ;;  %v6051_v39 = vrot.slane %v6001_v27, 4  ;;  %5340 = vpow2.f32 %v4952_v22  ;;  %v5329_v22 = vpop.eup %5328 }
 0x12d   : > { %v2223_v32 = vmul.f32 %v5870_v2, %v2171_v10  ;;  %v2224_v38 = vmul.f32 %v5870_v2, %v2172_v12  ;;  %v4972_v0 = vmul.f32 -1.442695, %v6044_v51  ;;  %v1379_v52 = vmul.f32 %v5765_v42, %v1327_v40  ;;  %v6068_v51 = vpop.eup %5330 }
 0x12e   : > { %9137 = vst [vmem:[#allocation39_spill] sm:$0xff] %v6051_v39  ;;  %v1381_v5 = vmul.f32 %v5765_v42, %v1329_v15  ;;  %v1756_v43 = vmul.f32 %v5770_v47, %v1474_v9  ;;  %v2225_v30 = vmul.f32 %v5870_v2, %v1329_v15  ;;  %v1380_v21 = vmul.f32 %v5765_v42, %v1328_v16 }
 0x12f   : > { %v1578_v10 = vsel %vm1572_vm1, %v1576_v29, %v1577_v57  ;;  %v1856_v12 = vrot.slane %v1757_v56, 2  ;;  %v2599_v25 = vmul.f32 %v5821_v35, %v1474_v9  ;;  %v2419_v48 = vrot.slane %v2355_v31, 1 }
 0x130   : > { %v2420_v40 = vrot.slane %v2356_v11, 1  ;;  %v2600_v28 = vmul.f32 %v5821_v35, %v1475_v46  ;;  %v1279_v15 = vsel %vm1243_vm0, %v9139_v45, %v6051_v39  ;;  %v2271_v16 = vadd.f32 %v2223_v32, %v5852_v7 }
 0x131   : > { %v6075_v1 = vpop.eup %5332  ;;  %v2272_v56 = vadd.f32 %v2224_v38, %v5865_v17  ;;  %v6080_v9 = vunpack.c.l.bf16 %v6001_v27  ;;  %v6082_v19 = vadd.f32 1.0, %v5325_v58  ;;  %v1674_v11 = vadd.f32 %v1577_v57, %v1381_v5 }
 0x132   : > { %v1855_v46 = vrot.slane %v1756_v43, 2  ;;  %v2273_v55 = vadd.f32 %v2225_v30, %v5867_v18  ;;  %v6088_v50 = vunpack.c.h.bf16 %v6001_v27  ;;  %v1672_v44 = vadd.f32 %v1576_v29, %v1379_v52 }
 0x133   : > { %v6084_v31 = vpop.eup %5334  ;;  %v1673_v7 = vadd.f32 %v1578_v10, %v1380_v21  ;;  %v9140_v17 = vrot.slane %v5791_v3, 2  ;;  %v1357_v38 = vunpack.c.l.bf16 %v1279_v15  ;;  %v2421_v23 = vsel %vm1572_vm1, %v2419_v48, %v2420_v40 }
 0x134   : > { %v6090_v45 = vpop.eup %5336  ;;  %v2695_v57 = vrot.slane %v2599_v25, 2  ;;  %v2696_v43 = vrot.slane %v2600_v28, 2  ;;  %v1358_v5 = vunpack.c.h.bf16 %v1279_v15  ;;  %v2515_v18 = vadd.f32 %v2419_v48, %v2271_v16 }
 0x135   : > { %v1859_v32 = vsel %vm1849_vm2, %v1856_v12, %v9140_v17  ;;  %v6095_v58 = vpop.eup %5338  ;;  %v2516_v30 = vadd.f32 %v2421_v23, %v2272_v56  ;;  %v6099_v27 = vunpack.c.l.bf16 %v6051_v39  ;;  %5342 = vpow2.f32 %v4972_v0 }
 0x136   : > { %v6101_v29 = vpop.eup %5340  ;;  %v1857_v3 = vsel %vm1849_vm2, %v1855_v46, %v1856_v12  ;;  %v2517_v21 = vadd.f32 %v2420_v40, %v2273_v55  ;;  %v6106_v52 = vmul.f32 %v5760_v37, %v6080_v9  ;;  %v6109_v10 = vmul.f32 %v5329_v22, %v5832_v53 }
 0x137   : > { %9141 = vst [vmem:[#allocation41_spill] sm:$0xff] %v6099_v27  ;;  %v6111_v28 = vadd.f32 %v1855_v46, %v1672_v44  ;;  %v6113_v48 = vadd.f32 %v1857_v3, %v1673_v7  ;;  %v6115_v23 = vadd.f32 %v1859_v32, %v1674_v11  ;;  %v1409_v25 = vmul.f32 %v5765_v42, %v1357_v38 }
 0x138   : > { %v2697_v0 = vsel %vm1849_vm2, %v2695_v57, %v2696_v43  ;;  %v6120_v12 = vmul.f32 %v5765_v42, %v1358_v5  ;;  %v6124_v55 = vmul.f32 %v5760_v37, %v6088_v50  ;;  %v6128_v53 = vmul.f32 %v5770_v47, %v6080_v9 }
 0x139   : > { %9142 = vst [vmem:[#allocation42_spill] sm:$0xff] %v6111_v28  ;;  %9143 = vst [vmem:[#allocation43_spill] sm:$0xff] %v6113_v48  ;;  %v9145_v44 = vrot.slane %v5838_v59, 2  ;;  %v6133_v40 = vadd.f32 %v2695_v57, %v2515_v18  ;;  %v6135_v15 = vadd.f32 %v2697_v0, %v2516_v30  ;;  %v6139_v16 = vmul.f32 %v5765_v42, %v6099_v27 }
 0x13a   : > { %9144 = vst [vmem:[#allocation44_spill] sm:$0xff] %v6115_v23  ;;  %v6146_v46 = vmul.f32 %v5770_v47, %v6088_v50  ;;  %v9149_v59 = vrot.slane %v5848_v63, 4  ;;  %v6154_v17 = vmul.f32 %v5870_v2, %v6099_v27  ;;  %v6158_v32 = vmul.f32 %v5892_v36, %v6080_v9 }
 0x13b   : > { %v2699_v22 = vsel %vm1849_vm2, %v2696_v43, %v9145_v44  ;;  %9146 = vst [vmem:[#allocation45_spill] sm:$0xff] %v6133_v40  ;;  %9147 = vst [vmem:[#allocation46_spill] sm:$0xff] %v6135_v15  ;;  %v6162_v38 = vmul.f32 %v5892_v36, %v6088_v50  ;;  %v6166_v57 = vmul.f32 %v5843_v60, %v6080_v9  ;;  %v6175_v18 = vrot.slane %v6010_v13, 4  ;;  %v6200_v15 = vpop.f32.mrb[9].mxu1 }
 0x13c   : > { %v6141_v56 = vadd.f32 %v2699_v22, %v2517_v21  ;;  %v2123_v7 = vsel %vm1243_vm0, %v9149_v59, %v6051_v39  ;;  %9150 = vst [vmem:[#allocation48_spill] sm:$0xff] %v6158_v32  ;;  %v6172_v5 = vmul.f32 %v5843_v60, %v6088_v50  ;;  %v2375_v3 = vmul.f32 %v5874_v20, %v6080_v9 }
 0x13d   : > { %9151 = vst [vmem:[#allocation49_spill] sm:$0xff] %v6162_v38  ;;  %9152 = vst [vmem:[#allocation50_spill] sm:$0xff] %v6166_v57  ;;  %v2201_v30 = vunpack.c.l.bf16 %v2123_v7  ;;  %v8975_v21 = vrot.slane %v6158_v32, 1  ;;  %v8976_v0 = vrot.slane %v6162_v38, 1  ;;  %v9155_v59 = vrot.slane %v5880_v24, 4 }
 0x13e   : > { %9148 = vst [vmem:[#allocation47_spill] sm:$0xff] %v6141_v56  ;;  %9153 = vst [vmem:[#allocation51_spill] sm:$0xff] %v6172_v5  ;;  %v6188_v63 = vunpack.c.l.bf16 %v6175_v18  ;;  %v1492_v22 = vunpack.c.l.bf16 %v6010_v13  ;;  %v9160_v24 = vrot.slane %v6106_v52, 1  ;;  %v9162_v38 = vrot.slane %v6166_v57, 2 }
 0x13f   : > { %9154 = vst [vmem:[#allocation52_spill] sm:$0xff] %v6175_v18  ;;  %v1276_v43 = vsel %vm1243_vm0, %v9155_v59, %v6175_v18  ;;  %v6190_v11 = vpop.eup %5342  ;;  %v6197_v27 = vsel %vm1572_vm1, %v8975_v21, %v8976_v0  ;;  %9159 = vst [vmem:[#allocation56_spill] sm:$0xff] %v6200_v15  ;;  %v2202_v18 = vunpack.c.h.bf16 %v2123_v7  ;;  %v1493_v21 = vunpack.c.h.bf16 %v6010_v13  ;;  %v6221_v7 = vpop.f32.mrb[10].mxu0 }
 0x140   : > { %9156 = vst [vmem:[#allocation53_spill] sm:$0xff] %v6188_v63  ;;  %9157 = vst [vmem:[#allocation54_spill] sm:$0xff] %v6190_v11  ;;  %v1354_v44 = vunpack.c.l.bf16 %v1276_v43  ;;  %v1355_v39 = vunpack.c.h.bf16 %v1276_v43  ;;  %v6204_v59 = vadd.f32 %v9160_v24, %v1409_v25  ;;  %v9161_v11 = vrot.slane %v6172_v5, 2 }
 0x141   : > { %9158 = vst [vmem:[#allocation55_spill] sm:$0xff] %v6197_v27  ;;  %v6216_v43 = vmul.f32 %v5874_v20, %v6088_v50  ;;  %v1528_v27 = vmul.f32 %v5760_v37, %v1492_v22  ;;  %v1783_v25 = vmul.f32 %v5770_v47, %v1492_v22  ;;  %9164 = vst [vmem:[#allocation58_spill] sm:$0xff] %v6221_v7  ;;  %5344 = vrcp.f32 %v6082_v19 }
 0x142   : > { %v6211_v32 = vsel %vm1849_vm2, %v9162_v38, %v9161_v11  ;;  %v1406_v0 = vmul.f32 %v5765_v42, %v1354_v44  ;;  %v2253_v24 = vmul.f32 %v5870_v2, %v2201_v30  ;;  %v1408_v11 = vmul.f32 %v5765_v42, %v6188_v63 }
 0x143   : > { %9163 = vst [vmem:[#allocation57_spill] sm:$0xff] %v6211_v32  ;;  %v1529_v38 = vmul.f32 %v5760_v37, %v1493_v21  ;;  %v1784_v13 = vmul.f32 %v5770_v47, %v1493_v21  ;;  %v2449_v32 = vrot.slane %v2375_v3, 1  ;;  %v1407_v57 = vmul.f32 %v5765_v42, %v1355_v39 }
 0x144   : > { %v1603_v5 = vrot.slane %v1528_v27, 1  ;;  %v1900_v44 = vrot.slane %v1783_v25, 2  ;;  %v6230_v56 = vmul.f32 %v5874_v20, %v1492_v22  ;;  %v6233_v7 = vmul.f32 %v5874_v20, %v1493_v21 }
 0x145   : > { %v1604_v15 = vrot.slane %v1529_v38, 1  ;;  %v1901_v40 = vrot.slane %v1784_v13, 2  ;;  %v2450_v30 = vrot.slane %v6216_v43, 1  ;;  %v2629_v63 = vmul.f32 %v5821_v35, %v6080_v9 }
 0x146   : > { %9165 = vst [vmem:[#allocation59_spill] sm:$0xff] %v6230_v56  ;;  %9166 = vst [vmem:[#allocation60_spill] sm:$0xff] %v6233_v7  ;;  %v1699_v48 = vadd.f32 %v1603_v5, %v1406_v0  ;;  %v6239_v3 = vmul.f32 %v5821_v35, %v1492_v22  ;;  %v2630_v39 = vmul.f32 %v5821_v35, %v6088_v50  ;;  %v9168_v38 = vrot.slane %v5908_v41, 2 }
 0x147   : > { %v1605_v27 = vsel %vm1572_vm1, %v1603_v5, %v1604_v15  ;;  %v1701_v25 = vadd.f32 %v1604_v15, %v1408_v11  ;;  %v8987_v43 = vrot.slane %v6230_v56, 1  ;;  %v8988_v9 = vrot.slane %v6233_v7, 1 }
 0x148   : > { %9167 = vst [vmem:[#allocation61_spill] sm:$0xff] %v6239_v3  ;;  %v1904_v13 = vsel %vm1849_vm2, %v1901_v40, %v9168_v38  ;;  %v1700_v28 = vadd.f32 %v1605_v27, %v1407_v57  ;;  %v2008_v23 = vadd.f32 %v1900_v44, %v1699_v48  ;;  %v1902_v0 = vsel %vm1849_vm2, %v1900_v44, %v1901_v40 }
 0x149   : > { %v2010_v14 = vadd.f32 %v1904_v13, %v1701_v25  ;;  %v6251_v6 = vmul.f32 %v5821_v35, %v1493_v21  ;;  %v8986_v50 = vrot.slane %v6239_v3, 2  ;;  %v2254_v15 = vmul.f32 %v5870_v2, %v2202_v18  ;;  %v9214_v3 = vld [vmem:[#allocation18_spill] sm:$0xff] }
 0x14a   : > { %v2009_v5 = vadd.f32 %v1902_v0, %v1700_v28  ;;  %v2301_v41 = vadd.f32 %v2253_v24, %v2008_v23  ;;  %v6260_v48 = vsel %vm1572_vm1, %v8987_v43, %v8988_v9  ;;  %v9171_v57 = vrot.slane %v6124_v55, 1 }
 0x14b   : > { %9169 = vst [vmem:[#allocation62_spill] sm:$0xff] %v6251_v6  ;;  %9170 = vst [vmem:[#allocation63_spill] sm:$0xff] %v6260_v48  ;;  %v9172_v40 = vrot.slane %v6106_v52, 1  ;;  %v1906_v44 = vrot.slane %v6146_v46, 2  ;;  %v2303_v27 = vadd.f32 %v6154_v17, %v2010_v14  ;;  %v8990_v28 = vrot.slane %v6251_v6, 2  ;;  %v5345_v43 = vpop.eup %5344 }
 0x14c   : > { %v2451_v23 = vsel %vm1572_vm1, %v2449_v32, %v2450_v30  ;;  %v2302_v18 = vadd.f32 %v2254_v15, %v2009_v5  ;;  %v2545_v24 = vadd.f32 %v2449_v32, %v2301_v41  ;;  %v6272_v25 = vmul.f32 %v5892_v36, %v1492_v22 }
 0x14d   : > { %v1608_v11 = vsel %vm1572_vm1, %v9172_v40, %v9171_v57  ;;  %v2745_v38 = vrot.slane %v2629_v63, 2  ;;  %v2746_v13 = vrot.slane %v2630_v39, 2  ;;  %v6279_v52 = vsel %vm1849_vm2, %v8986_v50, %v8990_v28  ;;  %v6291_v63 = vpop.f32.mrb[10].mxu1 }
 0x14e   : > { %9173 = vst [vmem:[#allocation64_spill] sm:$0xff] %v6272_v25  ;;  %9174 = vst [vmem:[#allocation65_spill] sm:$0xff] %v6279_v52  ;;  %v6282_v14 = vmul.f32 %v5892_v36, %v1493_v21  ;;  %v2546_v46 = vadd.f32 %v2451_v23, %v2302_v18  ;;  %v8985_v17 = vrot.slane %v6272_v25, 1  ;;  %v6286_v32 = vmul.f32 %v5843_v60, %v1492_v22 }
 0x14f   : > { %v6289_v0 = vmul.f32 %v5843_v60, %v1493_v21  ;;  %9178 = vst [vmem:[#allocation69_spill] sm:$0xff] %v6291_v63  ;;  %v1703_v39 = vadd.f32 %v1608_v11, %v6120_v12  ;;  %v9179_v15 = vmov %v9171_v57  ;;  %v9180_v41 = vrot.slane %v6128_v53, 2 }
 0x150   : > { %9175 = vst [vmem:[#allocation66_spill] sm:$0xff] %v6282_v14  ;;  %9176 = vst [vmem:[#allocation67_spill] sm:$0xff] %v6286_v32  ;;  %v1704_v5 = vadd.f32 %v9179_v15, %v6139_v16  ;;  %v8984_v40 = vrot.slane %v6282_v14, 1  ;;  %v9181_v22 = vrot.slane %v5846_v62, 2  ;;  %v8983_v21 = vrot.slane %v6286_v32, 2  ;;  %v9204_v14 = vld [vmem:[#allocation8_spill] sm:$0xff] }
 0x151   : > { %9177 = vst [vmem:[#allocation68_spill] sm:$0xff] %v6289_v0  ;;  %v1907_v57 = vsel %vm1849_vm2, %v9180_v41, %v1906_v44  ;;  %v8989_v18 = vrot.slane %v6289_v0, 2  ;;  %v968_v12 = vmul.f32 %v6090_v45, %v5905_v33  ;;  %v9182_v55 = vmov %v9180_v41 }
 0x152   : > { %v1909_v23 = vsel %vm1849_vm2, %v1906_v44, %v9181_v22  ;;  %v6311_v16 = vadd.f32 %v9182_v55, %v6204_v59  ;;  %v2747_v11 = vsel %vm1849_vm2, %v2745_v38, %v2746_v13  ;;  %v6319_v62 = vsel %vm1572_vm1, %v8985_v17, %v8984_v40 }
 0x153   : > { %9183 = vst [vmem:[#allocation70_spill] sm:$0xff] %v6319_v62  ;;  %v858_v44 = vadd.f32 1.0, %v6057_v26  ;;  %v9184_v15 = vrot.slane %v5855_v8, 2  ;;  %v6330_v45 = vsel %vm1849_vm2, %v8983_v21, %v8989_v18  ;;  %v1144_v53 = vpack.c.bf16 %v968_v12, %v6109_v10 }
 0x154   : > { %9185 = vst [vmem:[#allocation71_spill] sm:$0xff] %v6330_v45  ;;  %v878_v59 = vadd.f32 1.0, %v6095_v58  ;;  %v2547_v41 = vadd.f32 %v2450_v30, %v2303_v27  ;;  %v6335_v26 = vadd.f32 %v2745_v38, %v2545_v24  ;;  %v6339_v55 = vadd.f32 %v2747_v11, %v2546_v46 }
 0x155   : > { %v2749_v33 = vsel %vm1849_vm2, %v2746_v13, %v9184_v15  ;;  %5346 = vrcp.f32 %v858_v44  ;;  %v1254_v8 = vrot.slane %v1144_v53, 4  ;;  %v1478_v22 = vunpack.c.l.bf16 %v1144_v53 }
 0x156   : > { %9186 = vst [vmem:[#allocation72_spill] sm:$0xff] %v6335_v26  ;;  %v6337_v13 = vunpack.c.h.bf16 %v1144_v53  ;;  %9187 = vst [vmem:[#allocation73_spill] sm:$0xff] %v6339_v55  ;;  %v6341_v15 = vadd.f32 %v1907_v57, %v1703_v39  ;;  %v6343_v21 = vadd.f32 %v1909_v23, %v1704_v5  ;;  %5348 = vrcp.f32 %v878_v59 }
 0x157   : > { %v6345_v10 = vadd.f32 %v2749_v33, %v2547_v41  ;;  %v9188_v19 = vrot.slane %v5918_v61, 4  ;;  %v1335_v30 = vunpack.c.l.bf16 %v1254_v8  ;;  %v1514_v27 = vmul.f32 %v5760_v37, %v1478_v22 }
 0x158   : > { %v1515_v24 = vmul.f32 %v5760_v37, %v6337_v13  ;;  %v1762_v39 = vmul.f32 %v5770_v47, %v1478_v22  ;;  %v1763_v5 = vmul.f32 %v5770_v47, %v6337_v13  ;;  %v9189_v61 = vrot.slane %v5923_v4, 4  ;;  %v9190_v4 = vld [vmem:[#allocation13_spill] sm:$0xff] }
 0x159   : > { %v1255_v58 = vsel %vm1243_vm0, %v9188_v19, %v1254_v8  ;;  %v1387_v57 = vmul.f32 %v5765_v42, %v1335_v30  ;;  %v1582_v23 = vrot.slane %v1514_v27, 1  ;;  %v987_v41 = vmul.f32 %v6068_v51, %v5835_v54 }
 0x15a   : > { %v1333_v38 = vunpack.c.l.bf16 %v1255_v58  ;;  %v1334_v46 = vunpack.c.h.bf16 %v1255_v58  ;;  %v1583_v12 = vrot.slane %v1515_v24, 1  ;;  %v2099_v11 = vsel %vm1243_vm0, %v9189_v61, %v1254_v8 }
 0x15b   : > { %v1865_v53 = vrot.slane %v1762_v39, 2  ;;  %v1866_v59 = vrot.slane %v1763_v5, 2  ;;  %v2177_v40 = vunpack.c.l.bf16 %v2099_v11  ;;  %v9191_v50 = vrot.slane %v9190_v4, 2  ;;  %v9193_v5 = vld [vmem:[#allocation11_spill] sm:$0xff] }
 0x15c   : > { %v1385_v44 = vmul.f32 %v5765_v42, %v1333_v38  ;;  %v1386_v33 = vmul.f32 %v5765_v42, %v1334_v46  ;;  %v1584_v19 = vsel %vm1572_vm1, %v1582_v23, %v1583_v12  ;;  %v1680_v58 = vadd.f32 %v1583_v12, %v1387_v57  ;;  %v3418_v38 = vld [vmem:[#allocation2 + $0x130] sm:$0x1]  ;;  %v9192_v46 = vld [vmem:[#allocation10_spill] sm:$0xff] }
 0x15d   : > { %v1867_v24 = vsel %vm1849_vm2, %v1865_v53, %v1866_v59  ;;  %v1869_v61 = vsel %vm1849_vm2, %v1866_v59, %v9191_v50  ;;  %v965_v39 = vmul.f32 %v6075_v1, %v9192_v46  ;;  %v985_v54 = vmul.f32 %v6084_v31, %v9193_v5  ;;  %v6386_v59 = vpop.f32.mrb[11].mxu0 }
 0x15e   : > { %v1678_v17 = vadd.f32 %v1582_v23, %v1385_v44  ;;  %v1679_v27 = vadd.f32 %v1584_v19, %v1386_v33  ;;  %v6373_v51 = vadd.f32 %v1869_v61, %v1680_v58  ;;  %v2178_v57 = vunpack.c.h.bf16 %v2099_v11  ;;  %9198 = vst [vmem:[#allocation75_spill] sm:$0xff] %v6386_v59 }
 0x15f   : > { %v5347_v12 = vpop.eup %5346  ;;  %v6380_v33 = vmul.f32 %v5874_v20, %v1478_v22  ;;  %v6384_v50 = vmul.f32 %v5874_v20, %v6337_v13  ;;  %v6389_v1 = vmul.f32 %v5821_v35, %v1478_v22  ;;  %v6393_v31 = vmul.f32 %v5821_v35, %v6337_v13 }
 0x160   : > { %9194 = vst [vmem:[#allocation13_spill] sm:$0xff] %v6373_v51  ;;  %v6375_v23 = vadd.f32 %v1865_v53, %v1678_v17  ;;  %v6377_v44 = vadd.f32 %v1867_v24, %v1679_v27  ;;  %v9201_v17 = vld [vmem:[#allocation15_spill] sm:$0xff]  ;;  %v3434_v19 = vunpack.c.l.bf16 %v3418_v38  ;;  %v5349_v58 = vpop.eup %5348  ;;  %v6399_v27 = vmul.f32 %v5870_v2, %v2177_v40 }
 0x161   : > { %9197 = vst [vmem:[#allocation74_spill] sm:$0xff] %v6384_v50  ;;  %9199 = vst [vmem:[#allocation76_spill] sm:$0xff] %v6389_v1  ;;  %v9202_v11 = vrot.slane %v9201_v17, 4  ;;  %v8992_v24 = vrot.slane %v6380_v33, 1  ;;  %v8991_v4 = vrot.slane %v6384_v50, 1  ;;  %v863_v61 = vadd.f32 1.0, %v6101_v29 }
 0x162   : > { %9195 = vst [vmem:[#allocation10_spill] sm:$0xff] %v6375_v23  ;;  %9196 = vst [vmem:[#allocation11_spill] sm:$0xff] %v6377_v44  ;;  %v8995_v46 = vrot.slane %v6389_v1, 2  ;;  %v8996_v5 = vrot.slane %v6393_v31, 2  ;;  %v6407_v9 = vmul.f32 %v5892_v36, %v1478_v22  ;;  %v6414_v40 = vmul.f32 %v5870_v2, %v2178_v57 }
 0x163   : > { %9200 = vst [vmem:[#allocation77_spill] sm:$0xff] %v6393_v31  ;;  %v2941_v53 = vsel %vm1243_vm0, %v9202_v11, %v1254_v8  ;;  %v6411_v8 = vmul.f32 %v5892_v36, %v6337_v13  ;;  %v6421_v29 = vsel %vm1572_vm1, %v8992_v24, %v8991_v4  ;;  %v6424_v17 = vmul.f32 %v5843_v60, %v1478_v22 }
 0x164   : > { %v3019_v38 = vunpack.c.l.bf16 %v2941_v53  ;;  %v6431_v11 = vsel %vm1849_vm2, %v8995_v46, %v8996_v5  ;;  %v3020_v57 = vunpack.c.h.bf16 %v2941_v53  ;;  %v3448_v4 = vmul.f32 %v5843_v60, %v6337_v13  ;;  %v9205_v53 = vld [vmem:[#allocation31_spill] sm:$0xff] }
 0x165   : > { %9203 = vst [vmem:[#allocation15_spill] sm:$0xff] %v6431_v11  ;;  %v988_v22 = vmul.f32 %v5345_v43, %v5972_v34  ;;  %v966_v45 = vmul.f32 %v5347_v12, %v5978_v49  ;;  %v6441_v32 = vmul.f32 %v5870_v2, %v1335_v30  ;;  %v6444_v46 = vmul.f32 %v9204_v14, %v1335_v30  ;;  %v9216_v11 = vld [vmem:[#allocation17_spill] sm:$0xff] }
 0x166   : > { %v986_v5 = vmul.f32 %v5349_v58, %v9205_v53  ;;  %v6448_v18 = vmul.f32 %v5843_v60, %v3434_v19  ;;  %v6451_v28 = vmul.f32 %v9204_v14, %v3019_v38  ;;  %v3546_v13 = vrot.slane %v3448_v4, 2  ;;  %v9210_v58 = vld [vmem:[#allocation14_spill] sm:$0xff] }
 0x167   : > { %v1154_v24 = vpack.c.bf16 %v988_v22, %v987_v41  ;;  %v1143_v62 = vpack.c.bf16 %v966_v45, %v965_v39  ;;  %v6454_v34 = vmul.f32 %v9204_v14, %v3020_v57  ;;  %v9207_v49 = vrot.slane %v6411_v8, 1 }
 0x168   : > { %9206 = vst [vmem:[#allocation8_spill] sm:$0xff] %v6448_v18  ;;  %v9208_v43 = vrot.slane %v6407_v9, 1  ;;  %v6463_v12 = vpack.c.bf16 %v986_v5, %v985_v54  ;;  %5350 = vrcp.f32 %v863_v61  ;;  %v9209_v60 = vrot.slane %v6424_v17, 2  ;;  %v9212_v61 = vld [vmem:[#allocation16_spill] sm:$0xff] }
 0x169   : > { %v1284_v41 = vrot.slane %v1154_v24, 4  ;;  %v1498_v45 = vunpack.c.l.bf16 %v1154_v24  ;;  %v9211_v4 = vrot.slane %v9210_v58, 2  ;;  %v1499_v57 = vunpack.c.h.bf16 %v1154_v24 }
 0x16a   : > { %v6461_v30 = vsel %vm1572_vm1, %v9208_v43, %v9207_v49  ;;  %v6468_v19 = vsel %vm1849_vm2, %v9209_v60, %v3546_v13  ;;  %v6476_v22 = vrot.slane %v1143_v62, 4  ;;  %v6478_v54 = vunpack.c.l.bf16 %v1143_v62 }
 0x16b   : > { %v6474_v38 = vsel %vm1849_vm2, %v3546_v13, %v9211_v4  ;;  %v9213_v5 = vrot.slane %v9212_v61, 4  ;;  %v1365_v49 = vunpack.c.l.bf16 %v1284_v41  ;;  %v1534_v43 = vmul.f32 %v5760_v37, %v1498_v45 }
 0x16c   : > { %v1792_v60 = vmul.f32 %v5770_v47, %v1498_v45  ;;  %v1535_v58 = vmul.f32 %v5760_v37, %v1499_v57  ;;  %v1793_v13 = vmul.f32 %v5770_v47, %v1499_v57  ;;  %v9215_v48 = vrot.slane %v9214_v3, 4 }
 0x16d   : > { %v1285_v53 = vsel %vm1243_vm0, %v9213_v5, %v1284_v41  ;;  %v1417_v24 = vmul.f32 %v5765_v42, %v1365_v49  ;;  %v1612_v4 = vrot.slane %v1534_v43, 1  ;;  %v6494_v44 = vmul.f32 %v5874_v20, %v1498_v45 }
 0x16e   : > { %v1363_v39 = vunpack.c.l.bf16 %v1285_v53  ;;  %v1364_v25 = vunpack.c.h.bf16 %v1285_v53  ;;  %v1915_v52 = vrot.slane %v1792_v60, 2  ;;  %v2129_v61 = vsel %vm1243_vm0, %v9215_v48, %v1284_v41 }
 0x16f   : > { %v1613_v7 = vrot.slane %v1535_v58, 1  ;;  %v1916_v0 = vrot.slane %v1793_v13, 2  ;;  %v2207_v6 = vunpack.c.l.bf16 %v2129_v61  ;;  %v2208_v53 = vunpack.c.h.bf16 %v2129_v61 }
 0x170   : > { %v1415_v5 = vmul.f32 %v5765_v42, %v1363_v39  ;;  %v1416_v56 = vmul.f32 %v5765_v42, %v1364_v25  ;;  %v6496_v51 = vunpack.c.h.bf16 %v1143_v62  ;;  %v9217_v39 = vrot.slane %v9216_v11, 2 }
 0x171   : > { %v1614_v43 = vsel %vm1572_vm1, %v1612_v4, %v1613_v7  ;;  %v1710_v23 = vadd.f32 %v1613_v7, %v1417_v24  ;;  %v1917_v3 = vsel %vm1849_vm2, %v1915_v52, %v1916_v0  ;;  %v6504_v58 = vmul.f32 %v5870_v2, %v2207_v6  ;;  %v9225_v24 = vld [vmem:[#allocation22_spill] sm:$0xff] }
 0x172   : > { %v1708_v60 = vadd.f32 %v1612_v4, %v1415_v5  ;;  %v1709_v48 = vadd.f32 %v1614_v43, %v1416_v56  ;;  %v1919_v25 = vsel %vm1849_vm2, %v1916_v0, %v9217_v39  ;;  %v6507_v13 = vmul.f32 %v5870_v2, %v1365_v49  ;;  %v6509_v61 = vpop.eup %5350  ;;  %v6534_v39 = vpop.f32.mrb[11].mxu1 }
 0x173   : > { %9218 = vst [vmem:[#allocation31_spill] sm:$0xff] %v6509_v61  ;;  %v6513_v1 = vadd.f32 %v1919_v25, %v1710_v23  ;;  %v6516_v7 = vmul.f32 %v5874_v20, %v1499_v57  ;;  %v9005_v56 = vrot.slane %v6494_v44, 1  ;;  %v6522_v0 = vmul.f32 %v5821_v35, %v1498_v45  ;;  %9227 = vst [vmem:[#allocation22_spill] sm:$0xff] %v6534_v39  ;;  %v9239_v61 = vld [vmem:[#allocation23_spill] sm:$0xff] }
 0x174   : > { %v6511_v62 = vadd.f32 %v1915_v52, %v1708_v60  ;;  %v6519_v11 = vadd.f32 %v1917_v3, %v1709_v48  ;;  %v6525_v6 = vmul.f32 %v5821_v35, %v1499_v57  ;;  %v9226_v4 = vrot.slane %v9225_v24, 4  ;;  %v6560_v3 = vld [vmem:[%s8935_s3 + $0x8] ss:$0 sm:$0xff] }
 0x175   : > { %9220 = vst [vmem:[#allocation16_spill] sm:$0xff] %v6513_v1  ;;  %9221 = vst [vmem:[#allocation18_spill] sm:$0xff] %v6516_v7  ;;  %v6531_v23 = vmul.f32 %v5870_v2, %v2208_v53  ;;  %v9004_v5 = vrot.slane %v6516_v7, 1  ;;  %v6539_v25 = vmul.f32 %v5892_v36, %v1498_v45  ;;  %v6542_v24 = vmul.f32 %v5892_v36, %v1499_v57 }
 0x176   : > { %9219 = vst [vmem:[#allocation14_spill] sm:$0xff] %v6511_v62  ;;  %9222 = vst [vmem:[#allocation17_spill] sm:$0xff] %v6519_v11  ;;  %v2971_v52 = vsel %vm1243_vm0, %v9226_v4, %v1284_v41  ;;  %v9008_v48 = vrot.slane %v6525_v6, 2  ;;  %v5219_v41 = vpop.f32.mrb[12].mxu1  ;;  %v9232_v11 = vrot.slane %v6522_v0, 2  ;;  %v3478_v62 = vmul.f32 %v6560_v3, %v1499_v57 }
 0x177   : > { %9223 = vst [vmem:[#allocation78_spill] sm:$0xff] %v6522_v0  ;;  %9224 = vst [vmem:[#allocation79_spill] sm:$0xff] %v6525_v6  ;;  %v3049_v43 = vunpack.c.l.bf16 %v2971_v52  ;;  %v3050_v60 = vunpack.c.h.bf16 %v2971_v52  ;;  %v6549_v53 = vsel %vm1572_vm1, %v9005_v56, %v9004_v5  ;;  %v6555_v52 = vmul.f32 %v9204_v14, %v1365_v49 }
 0x178   : > { %9228 = vst [vmem:[#allocation80_spill] sm:$0xff] %v6539_v25  ;;  %9229 = vst [vmem:[#allocation81_spill] sm:$0xff] %v6542_v24  ;;  %v6563_v41 = vmul.f32 %v6560_v3, %v1498_v45  ;;  %v6570_v5 = vsel %vm1849_vm2, %v9232_v11, %v9008_v48  ;;  %v9011_v49 = vrot.slane %v6539_v25, 1  ;;  %v9010_v56 = vrot.slane %v6542_v24, 1  ;;  %v9234_v45 = vld [vmem:[#allocation24_spill] sm:$0xff] }
 0x179   : > { %v6552_v4 = vmul.f32 %v9204_v14, %v3049_v43  ;;  %9230 = vst [vmem:[#allocation82_spill] sm:$0xff] %v6555_v52  ;;  %9233 = vst [vmem:[#allocation84_spill] sm:$0xff] %v6570_v5  ;;  %v6573_v43 = vmul.f32 %v9204_v14, %v3050_v60  ;;  %v9235_v39 = vrot.slane %v9234_v45, 4  ;;  %v1332_v0 = vunpack.c.l.bf16 %v6476_v22 }
 0x17a   : > { %9231 = vst [vmem:[#allocation83_spill] sm:$0xff] %v6563_v41  ;;  %v6589_v11 = vsel %vm1572_vm1, %v9011_v49, %v9010_v56  ;;  %v1512_v57 = vmul.f32 %v5760_v37, %v6478_v54  ;;  %v3596_v1 = vrot.slane %v3478_v62, 2  ;;  %v1759_v45 = vmul.f32 %v5770_v47, %v6478_v54 }
 0x17b   : > { %v1252_v7 = vsel %vm1243_vm0, %v9235_v39, %v6476_v22  ;;  %9236 = vst [vmem:[#allocation24_spill] sm:$0xff] %v6589_v11  ;;  %v1384_v5 = vmul.f32 %v5765_v42, %v1332_v0  ;;  %v1513_v39 = vmul.f32 %v5760_v37, %v6496_v51  ;;  %v9237_v49 = vrot.slane %v6563_v41, 2 }
 0x17c   : > { %v1330_v60 = vunpack.c.l.bf16 %v1252_v7  ;;  %v1331_v48 = vunpack.c.h.bf16 %v1252_v7  ;;  %v1579_v56 = vrot.slane %v1512_v57, 1  ;;  %v1760_v7 = vmul.f32 %v5770_v47, %v6496_v51 }
 0x17d   : > { %v6605_v62 = vsel %vm1849_vm2, %v9237_v49, %v3596_v1  ;;  %v9240_v6 = vrot.slane %v9239_v61, 2  ;;  %v1580_v63 = vrot.slane %v1513_v39, 1  ;;  %v1860_v18 = vrot.slane %v1759_v45, 2 }
 0x17e   : > { %v1382_v50 = vmul.f32 %v5765_v42, %v1330_v60  ;;  %v1383_v59 = vmul.f32 %v5765_v42, %v1331_v48  ;;  %9238 = vst [vmem:[#allocation85_spill] sm:$0xff] %v6605_v62  ;;  %v1861_v60 = vrot.slane %v1760_v7, 2  ;;  %v9242_v48 = vld [vmem:[#allocation27_spill] sm:$0xff]  ;;  %v2228_v55 = vmul.f32 %v5870_v2, %v1332_v0 }
 0x17f   : > { %v6610_v31 = vsel %vm1849_vm2, %v3596_v1, %v9240_v6  ;;  %v9243_v57 = vrot.slane %v9242_v48, 4  ;;  %v1581_v41 = vsel %vm1572_vm1, %v1579_v56, %v1580_v63  ;;  %v1677_v49 = vadd.f32 %v1580_v63, %v1384_v5  ;;  %v9244_v6 = vld [vmem:[#allocation25_spill] sm:$0xff]  ;;  %v9247_v5 = vld [vmem:[#allocation42_spill] sm:$0xff] }
 0x180   : > { %9241 = vst [vmem:[#allocation23_spill] sm:$0xff] %v6610_v31  ;;  %v1675_v24 = vadd.f32 %v1579_v56, %v1382_v50  ;;  %v1676_v61 = vadd.f32 %v1581_v41, %v1383_v59  ;;  %v1862_v1 = vsel %vm1849_vm2, %v1860_v18, %v1861_v60  ;;  %v9245_v39 = vrot.slane %v9244_v6, 2  ;;  %v9246_v31 = vld [vmem:[#allocation44_spill] sm:$0xff] }
 0x181   : > { %v2096_v11 = vsel %vm1243_vm0, %v9243_v57, %v6476_v22  ;;  %v2276_v26 = vadd.f32 %v2228_v55, %v9246_v31  ;;  %v2357_v59 = vmul.f32 %v5874_v20, %v6478_v54  ;;  %v2358_v56 = vmul.f32 %v5874_v20, %v6496_v51 }
 0x182   : > { %v2174_v62 = vunpack.c.l.bf16 %v2096_v11  ;;  %v2175_v25 = vunpack.c.h.bf16 %v2096_v11  ;;  %v1864_v50 = vsel %vm1849_vm2, %v1861_v60, %v9245_v39  ;;  %v1984_v45 = vadd.f32 %v1860_v18, %v1675_v24  ;;  %v9248_v11 = vld [vmem:[#allocation43_spill] sm:$0xff] }
 0x183   : > { %v1986_v7 = vadd.f32 %v1864_v50, %v1677_v49  ;;  %v1985_v52 = vadd.f32 %v1862_v1, %v1676_v61  ;;  %v2422_v31 = vrot.slane %v2357_v59, 1  ;;  %v2603_v49 = vmul.f32 %v5821_v35, %v6496_v51  ;;  %v9250_v1 = vld [vmem:[#allocation29_spill] sm:$0xff]  ;;  %v9252_v59 = vld [vmem:[#allocation47_spill] sm:$0xff] }
 0x184   : > { %v2226_v48 = vmul.f32 %v5870_v2, %v2174_v62  ;;  %v2227_v57 = vmul.f32 %v5870_v2, %v2175_v25  ;;  %v2277_v63 = vadd.f32 %v6399_v27, %v1984_v45  ;;  %v2602_v25 = vmul.f32 %v5821_v35, %v6478_v54 }
 0x185   : > { %v6633_v24 = vadd.f32 %v6441_v32, %v1986_v7  ;;  %v2278_v55 = vadd.f32 %v6414_v40, %v1985_v52  ;;  %v2423_v27 = vrot.slane %v2358_v56, 1  ;;  %v9249_v62 = vrot.slane %v6380_v33, 1 }
 0x186   : > { %v2274_v41 = vadd.f32 %v2226_v48, %v9247_v5  ;;  %v2275_v18 = vadd.f32 %v2227_v57, %v9248_v11  ;;  %v2700_v61 = vrot.slane %v2602_v25, 2  ;;  %v9251_v6 = vrot.slane %v9250_v1, 4  ;;  %v9256_v1 = vld [vmem:[#allocation46_spill] sm:$0xff] }
 0x187   : > { %v6640_v60 = vadd.f32 %v9249_v62, %v2277_v63  ;;  %v3070_v39 = vmul.f32 %v9204_v14, %v1332_v0  ;;  %v2424_v50 = vsel %vm1572_vm1, %v2422_v31, %v2423_v27  ;;  %v2520_v52 = vadd.f32 %v2423_v27, %v2276_v26  ;;  %v9255_v62 = vld [vmem:[#allocation45_spill] sm:$0xff] }
 0x188   : > { %v2938_v32 = vsel %vm1243_vm0, %v9251_v6, %v6476_v22  ;;  %v2518_v40 = vadd.f32 %v2422_v31, %v2274_v41  ;;  %v6651_v45 = vadd.f32 %v6421_v29, %v2278_v55  ;;  %v2519_v33 = vadd.f32 %v2424_v50, %v2275_v18  ;;  %v9253_v41 = vld [vmem:[#allocation28_spill] sm:$0xff] }
 0x189   : > { %v2701_v7 = vrot.slane %v2603_v49, 2  ;;  %v3016_v48 = vunpack.c.l.bf16 %v2938_v32  ;;  %v3017_v57 = vunpack.c.h.bf16 %v2938_v32  ;;  %v3118_v56 = vadd.f32 %v3070_v39, %v9252_v59 }
 0x18a   : > { %v2826_v63 = vadd.f32 %v2700_v61, %v2518_v40  ;;  %v3200_v5 = vmul.f32 %v5892_v36, %v6478_v54  ;;  %v3201_v22 = vmul.f32 %v5892_v36, %v6496_v51  ;;  %v9254_v26 = vrot.slane %v9253_v41, 2 }
 0x18b   : > { %v2702_v0 = vsel %vm1849_vm2, %v2700_v61, %v2701_v7  ;;  %v3068_v11 = vmul.f32 %v9204_v14, %v3016_v48  ;;  %v3069_v18 = vmul.f32 %v9204_v14, %v3017_v57  ;;  %v3444_v61 = vmul.f32 %v6560_v3, %v6478_v54 }
 0x18c   : > { %v2704_v29 = vsel %vm1849_vm2, %v2701_v7, %v9254_v26  ;;  %v2827_v25 = vadd.f32 %v2702_v0, %v2519_v33  ;;  %v3119_v31 = vadd.f32 %v6451_v28, %v2826_v63  ;;  %v3264_v27 = vrot.slane %v3200_v5, 1 }
 0x18d   : > { %v2828_v55 = vadd.f32 %v2704_v29, %v2520_v52  ;;  %v3116_v49 = vadd.f32 %v3068_v11, %v9255_v62  ;;  %v3117_v6 = vadd.f32 %v3069_v18, %v9256_v1  ;;  %v3265_v32 = vrot.slane %v3201_v22, 1  ;;  %v9262_v62 = vld [vmem:[#allocation32_spill] sm:$0xff] }
 0x18e   : > { %v3120_v39 = vadd.f32 %v6454_v34, %v2827_v25  ;;  %v9257_v40 = vrot.slane %v6407_v9, 1  ;;  %v3445_v52 = vmul.f32 %v6560_v3, %v6496_v51  ;;  %v3540_v57 = vrot.slane %v3444_v61, 2  ;;  %v6682_v9 = vld [vmem:[%s8936_s4] ss:$0 sm:$0xff] }
 0x18f   : > { %v3121_v50 = vadd.f32 %v6444_v46, %v2828_v55  ;;  %v3266_v28 = vsel %vm1572_vm1, %v3264_v27, %v3265_v32  ;;  %v3360_v33 = vadd.f32 %v3264_v27, %v3116_v49  ;;  %v3362_v48 = vadd.f32 %v3265_v32, %v3118_v56 }
 0x190   : > { %v3363_v7 = vadd.f32 %v9257_v40, %v3119_v31  ;;  %v3361_v63 = vadd.f32 %v3266_v28, %v3117_v6  ;;  %v3364_v59 = vadd.f32 %v6461_v30, %v3120_v39  ;;  %v9258_v54 = vrot.slane %v6411_v8, 1  ;;  %v9260_v8 = vld [vmem:[#allocation30_spill] sm:$0xff] }
 0x191   : > { %v3541_v34 = vrot.slane %v3445_v52, 2  ;;  %v3668_v46 = vadd.f32 %v3540_v57, %v3360_v33  ;;  %v9259_v51 = vrot.slane %v6424_v17, 2  ;;  %v6687_v0 = vrot.slane %v6463_v12, 4 }
 0x192   : > { %v3365_v5 = vadd.f32 %v9258_v54, %v3121_v50  ;;  %v6690_v56 = vunpack.c.l.bf16 %v6463_v12  ;;  %v9261_v41 = vrot.slane %v9260_v8, 2  ;;  %v3672_v29 = vadd.f32 %v6468_v19, %v3364_v59 }
 0x193   : > { %v3671_v22 = vadd.f32 %v9259_v51, %v3363_v7  ;;  %v3542_v30 = vsel %vm1849_vm2, %v3540_v57, %v3541_v34  ;;  %v6699_v17 = vadd.f32 %v6682_v9, %v3668_v46  ;;  %v9263_v49 = vrot.slane %v9262_v62, 4 }
 0x194   : > { %v3544_v26 = vsel %vm1849_vm2, %v3541_v34, %v9261_v41  ;;  %v3673_v11 = vadd.f32 %v6474_v38, %v3365_v5  ;;  %v3669_v18 = vadd.f32 %v3542_v30, %v3361_v63  ;;  %v6705_v31 = vadd.f32 %v6682_v9, %v3672_v29  ;;  %v9264_v5 = vld [vmem:[#allocation34_spill] sm:$0xff] }
 0x195   : > { %v3670_v25 = vadd.f32 %v3544_v26, %v3362_v48  ;;  %v6702_v55 = vadd.f32 %v6682_v9, %v3671_v22  ;;  %v1282_v19 = vsel %vm1243_vm0, %v9263_v49, %v6687_v0  ;;  %v6715_v38 = vunpack.c.l.bf16 %v6687_v0 }
 0x196   : > { %v6708_v27 = vadd.f32 %v6682_v9, %v3673_v11  ;;  %v6718_v1 = vadd.f32 %v6682_v9, %v3669_v18  ;;  %v4980_v32 = vmul.f32 -1.442695, %v6699_v17  ;;  %v4984_v39 = vmul.f32 -1.442695, %v6705_v31 }
 0x197   : > { %v6721_v6 = vadd.f32 %v6682_v9, %v3670_v25  ;;  %v4983_v61 = vmul.f32 -1.442695, %v6702_v55  ;;  %v1360_v40 = vunpack.c.l.bf16 %v1282_v19  ;;  %v1361_v7 = vunpack.c.h.bf16 %v1282_v19  ;;  %v6754_v19 = vpop.f32.mrb[12].mxu0 }
 0x198   : > { %v4985_v50 = vmul.f32 -1.442695, %v6708_v27  ;;  %5352 = vpow2.f32 %v4980_v32  ;;  %v4981_v52 = vmul.f32 -1.442695, %v6718_v1  ;;  %v1414_v33 = vmul.f32 %v5765_v42, %v6715_v38 }
 0x199   : > { %v4982_v28 = vmul.f32 -1.442695, %v6721_v6  ;;  %5354 = vpow2.f32 %v4983_v61  ;;  %v1412_v48 = vmul.f32 %v5765_v42, %v1360_v40  ;;  %v1413_v57 = vmul.f32 %v5765_v42, %v1361_v7 }
 0x19a   : > { %v6734_v63 = vunpack.c.h.bf16 %v6463_v12  ;;  %5356 = vpow2.f32 %v4981_v52  ;;  %v1532_v59 = vmul.f32 %v5760_v37, %v6690_v56  ;;  %v1789_v54 = vmul.f32 %v5770_v47, %v6690_v56 }
 0x19b   : > { %v9265_v34 = vrot.slane %v9264_v5, 4  ;;  %5358 = vpow2.f32 %v4982_v28  ;;  %v2258_v62 = vmul.f32 %v5870_v2, %v6715_v38  ;;  %v2377_v49 = vmul.f32 %v5874_v20, %v6690_v56 }
 0x19c   : > { %v1533_v51 = vmul.f32 %v5760_v37, %v6734_v63  ;;  %v1790_v12 = vmul.f32 %v5770_v47, %v6734_v63  ;;  %5360 = vpow2.f32 %v4984_v39  ;;  %v1609_v30 = vrot.slane %v1532_v59, 1 }
 0x19d   : > { %v2126_v46 = vsel %vm1243_vm0, %v9265_v34, %v6687_v0  ;;  %v1910_v8 = vrot.slane %v1789_v54, 2  ;;  %5362 = vpow2.f32 %v4985_v50  ;;  %v9266_v50 = vld [vmem:[#allocation35_spill] sm:$0xff]  ;;  %v2306_v5 = vadd.f32 %v2258_v62, %v6343_v21 }
 0x19e   : > { %v2204_v22 = vunpack.c.l.bf16 %v2126_v46  ;;  %v2205_v41 = vunpack.c.h.bf16 %v2126_v46  ;;  %v1610_v26 = vrot.slane %v1533_v51, 1  ;;  %v1911_v29 = vrot.slane %v1790_v12, 2 }
 0x19f   : > { %v1705_v18 = vadd.f32 %v1609_v30, %v1412_v48  ;;  %v9267_v40 = vrot.slane %v9266_v50, 2  ;;  %v2378_v34 = vmul.f32 %v5874_v20, %v6734_v63  ;;  %v2452_v46 = vrot.slane %v2377_v49, 1 }
 0x1a0   : > { %v2256_v11 = vmul.f32 %v5870_v2, %v2204_v22  ;;  %v2257_v25 = vmul.f32 %v5870_v2, %v2205_v41  ;;  %v1611_v32 = vsel %vm1572_vm1, %v1609_v30, %v1610_v26  ;;  %v1707_v61 = vadd.f32 %v1610_v26, %v1414_v33 }
 0x1a1   : > { %v1912_v39 = vsel %vm1849_vm2, %v1910_v8, %v1911_v29  ;;  %v1914_v7 = vsel %vm1849_vm2, %v1911_v29, %v9267_v40  ;;  %v1706_v52 = vadd.f32 %v1611_v32, %v1413_v57  ;;  %v2014_v28 = vadd.f32 %v1910_v8, %v1705_v18 }
 0x1a2   : > { %v2304_v48 = vadd.f32 %v2256_v11, %v6311_v16  ;;  %v2305_v59 = vadd.f32 %v2257_v25, %v6341_v15  ;;  %v2016_v54 = vadd.f32 %v1914_v7, %v1707_v61  ;;  %v5353_v33 = vpop.eup %5352  ;;  %v2632_v22 = vmul.f32 %v5821_v35, %v6690_v56 }
 0x1a3   : > { %v2015_v51 = vadd.f32 %v1912_v39, %v1706_v52  ;;  %v2307_v12 = vadd.f32 %v6504_v58, %v2014_v28  ;;  %v2633_v57 = vmul.f32 %v5821_v35, %v6734_v63  ;;  %v5355_v16 = vpop.eup %5354  ;;  %v3915_v30 = vadd.f32 1.0, %v5353_v33  ;;  %v9269_v28 = vld [vmem:[#allocation36_spill] sm:$0xff] }
 0x1a4   : > { %v6772_v15 = vadd.f32 %v6507_v13, %v2016_v54  ;;  %v2453_v21 = vrot.slane %v2378_v34, 1  ;;  %v2548_v8 = vadd.f32 %v2452_v46, %v2304_v48  ;;  %v5357_v41 = vpop.eup %5356  ;;  %v3918_v26 = vadd.f32 1.0, %v5355_v16 }
 0x1a5   : > { %v2308_v29 = vadd.f32 %v6531_v23, %v2015_v51  ;;  %v9268_v11 = vrot.slane %v6494_v44, 1  ;;  %v2750_v18 = vrot.slane %v2632_v22, 2  ;;  %v5359_v25 = vpop.eup %5358  ;;  %v3916_v62 = vadd.f32 1.0, %v5357_v41 }
 0x1a6   : > { %5364 = vrcp.f32 %v3915_v30  ;;  %v2454_v49 = vsel %vm1572_vm1, %v2452_v46, %v2453_v21  ;;  %v2550_v32 = vadd.f32 %v2453_v21, %v2306_v5  ;;  %v5361_v61 = vpop.eup %5360  ;;  %v3917_v13 = vadd.f32 1.0, %v5359_v25  ;;  %v9275_v25 = vld [vmem:[#allocation80_spill] sm:$0xff] }
 0x1a7   : > { %v6777_v58 = vadd.f32 %v9268_v11, %v2307_v12  ;;  %5366 = vrcp.f32 %v3918_v26  ;;  %v2549_v39 = vadd.f32 %v2454_v49, %v2305_v59  ;;  %v6781_v50 = vadd.f32 %v6549_v53, %v2308_v29  ;;  %v5363_v40 = vpop.eup %5362  ;;  %v9271_v59 = vld [vmem:[#allocation37_spill] sm:$0xff]  ;;  %v9274_v29 = vld [vmem:[#allocation72_spill] sm:$0xff] }
 0x1a8   : > { %v3919_v23 = vadd.f32 1.0, %v5361_v61  ;;  %5368 = vrcp.f32 %v3916_v62  ;;  %v2751_v44 = vrot.slane %v2633_v57, 2  ;;  %v2856_v7 = vadd.f32 %v2750_v18, %v2548_v8  ;;  %v9273_v8 = vld [vmem:[#allocation82_spill] sm:$0xff]  ;;  %v9277_v49 = vld [vmem:[#allocation73_spill] sm:$0xff] }
 0x1a9   : > { %v3920_v52 = vadd.f32 1.0, %v5363_v40  ;;  %5370 = vrcp.f32 %v3917_v13  ;;  %v9270_v48 = vrot.slane %v9269_v28, 4  ;;  %v3100_v5 = vmul.f32 %v9204_v14, %v6715_v38 }
 0x1aa   : > { %5372 = vrcp.f32 %v3919_v23  ;;  %v2752_v53 = vsel %vm1849_vm2, %v2750_v18, %v2751_v44  ;;  %v9272_v34 = vrot.slane %v9271_v59, 2  ;;  %v3220_v38 = vmul.f32 %v5892_v36, %v6690_v56 }
 0x1ab   : > { %v2968_v54 = vsel %vm1243_vm0, %v9270_v48, %v6687_v0  ;;  %5374 = vrcp.f32 %v3920_v52  ;;  %v2857_v51 = vadd.f32 %v2752_v53, %v2549_v39  ;;  %v3148_v16 = vadd.f32 %v3100_v5, %v6345_v10  ;;  %v9279_v39 = vld [vmem:[#allocation81_spill] sm:$0xff] }
 0x1ac   : > { %v2754_v46 = vsel %vm1849_vm2, %v2751_v44, %v9272_v34  ;;  %v3046_v33 = vunpack.c.l.bf16 %v2968_v54  ;;  %v3047_v22 = vunpack.c.h.bf16 %v2968_v54  ;;  %v3149_v0 = vadd.f32 %v6552_v4, %v2856_v7  ;;  %v6812_v44 = vpop.f32.mrb[13].mxu0  ;;  %v9281_v54 = vld [vmem:[#allocation83_spill] sm:$0xff] }
 0x1ad   : > { %v2858_v12 = vadd.f32 %v2754_v46, %v2550_v32  ;;  %v3150_v21 = vadd.f32 %v6573_v43, %v2857_v51  ;;  %v3221_v26 = vmul.f32 %v5892_v36, %v6734_v63  ;;  %v3294_v18 = vrot.slane %v3220_v38, 1  ;;  %v9278_v43 = vld [vmem:[#allocation24_spill] sm:$0xff] }
 0x1ae   : > { %v3098_v57 = vmul.f32 %v9204_v14, %v3046_v33  ;;  %v3099_v30 = vmul.f32 %v9204_v14, %v3047_v22  ;;  %v9276_v62 = vrot.slane %v9275_v25, 1  ;;  %v3474_v4 = vmul.f32 %v6560_v3, %v6690_v56  ;;  %v9283_v33 = vld [vmem:[#allocation85_spill] sm:$0xff] }
 0x1af   : > { %v3151_v41 = vadd.f32 %v9273_v8, %v2858_v12  ;;  %v3295_v61 = vrot.slane %v3221_v26, 1  ;;  %v3394_v13 = vadd.f32 %v9278_v43, %v3150_v21  ;;  %v9280_v40 = vrot.slane %v9279_v39, 1 }
 0x1b0   : > { %v3146_v11 = vadd.f32 %v3098_v57, %v9274_v29  ;;  %v3393_v10 = vadd.f32 %v9276_v62, %v3149_v0  ;;  %v3147_v32 = vadd.f32 %v3099_v30, %v9277_v49  ;;  %v5365_v7 = vpop.eup %5364  ;;  %v3475_v28 = vmul.f32 %v6560_v3, %v6734_v63 }
 0x1b1   : > { %v3395_v23 = vadd.f32 %v9280_v40, %v3151_v41  ;;  %v3590_v48 = vrot.slane %v3474_v4, 2  ;;  %v9282_v56 = vrot.slane %v9281_v54, 2  ;;  %v5367_v53 = vpop.eup %5366  ;;  %v4059_v59 = vmul.f32 %v5365_v7, %v6699_v17  ;;  %v9284_v41 = vld [vmem:[#allocation23_spill] sm:$0xff] }
 0x1b2   : > { %v3390_v52 = vadd.f32 %v3294_v18, %v3146_v11  ;;  %v3296_v34 = vsel %vm1572_vm1, %v3294_v18, %v3295_v61  ;;  %v3392_v46 = vadd.f32 %v3295_v61, %v3148_v16  ;;  %v6823_v51 = vadd.f32 %v9283_v33, %v3394_v13  ;;  %v5369_v12 = vpop.eup %5368 }
 0x1b3   : > { %v6818_v5 = vadd.f32 %v9282_v56, %v3393_v10  ;;  %v4062_v22 = vmul.f32 %v5367_v53, %v6702_v55  ;;  %v3391_v57 = vadd.f32 %v3296_v34, %v3147_v32  ;;  %v3591_v0 = vrot.slane %v3475_v28, 2  ;;  %v5371_v38 = vpop.eup %5370 }
 0x1b4   : > { %v3698_v63 = vadd.f32 %v3590_v48, %v3390_v52  ;;  %v4060_v30 = vmul.f32 %v5369_v12, %v6718_v1  ;;  %v5095_v21 = vpack.c.bf16 %v4059_v59, %v4059_v59  ;;  %v4687_v8 = vsel %vm4686_vm3, %v4059_v59, 0.0  ;;  %v5373_v26 = vpop.eup %5372 }
 0x1b5   : > { %v3703_v17 = vadd.f32 %v9284_v41, %v3395_v23  ;;  %v4061_v16 = vmul.f32 %v5371_v38, %v6721_v6  ;;  %v5098_v29 = vpack.c.bf16 %v4062_v22, %v4062_v22  ;;  %v4688_v11 = vsel %vm4686_vm3, %v4062_v22, 0.0  ;;  %v5375_v18 = vpop.eup %5374 }
 0x1b6   : > { %v3592_v55 = vsel %vm1849_vm2, %v3590_v48, %v3591_v0  ;;  %v4063_v25 = vmul.f32 %v5373_v26, %v6705_v31  ;;  %v5096_v62 = vpack.c.bf16 %v4060_v30, %v4060_v30  ;;  %v4271_v10 = vshrl.u32 %v5095_v21, 16 }
 0x1b7   : > { %v6833_v1 = vadd.f32 %v4688_v11, %v4687_v8  ;;  %v4064_v4 = vmul.f32 %v5375_v18, %v6708_v27  ;;  %v5097_v49 = vpack.c.bf16 %v4061_v16, %v4061_v16  ;;  %v4293_v32 = vshrl.u32 %v5098_v29, 16  ;;  %v9291_v8 = vld [vmem:[#allocation8_spill] sm:$0xff] }
 0x1b8   : > { %v4733_v61 = vsel %vm1572_vm1, %v4061_v16, 0.0  ;;  %v5099_v6 = vpack.c.bf16 %v4063_v25, %v4063_v25  ;;  %v5076_v43 = vrot.slane %v4271_v10, 11  ;;  %v4276_v13 = vshrl.u32 %v5096_v62, 16 }
 0x1b9   : > { %9285 = vst [vmem:[#allocation27_spill] sm:$0xff] %v6833_v1  ;;  %v4279_v39 = vshll.u32 %v5096_v62, 16  ;;  %v5100_v40 = vpack.c.bf16 %v4064_v4, %v4064_v4  ;;  %v4285_v23 = vshrl.u32 %v5097_v49, 16  ;;  %v4288_v7 = vshll.u32 %v5097_v49, 16  ;;  %v9332_v1 = vld [vmem:[#allocation38_spill] sm:$0xff] }
 0x1ba   : > { %v5077_v52 = vrot.slane %v4293_v32, 11  ;;  %v4278_v31 = vrot.slane %v4276_v13, 7  ;;  %v4298_v28 = vshrl.u32 %v5099_v6, 16  ;;  %v4301_v48 = vshll.u32 %v5099_v6, 16 }
 0x1bb   : > { %v6838_v54 = vadd.f32 %v4063_v25, %v4060_v30  ;;  %v9287_v27 = vmov 0  ;;  %v4287_v56 = vrot.slane %v4285_v23, 7  ;;  %v4307_v53 = vshrl.u32 %v5100_v40, 16  ;;  %v2566_v23 = vld [vmem:[#allocation2 + $0x70] sm:$0x1] }
 0x1bc   : > { %v9288_v27 = vsel %vm6842_vm6, 4294967295, %v9287_v27  ;;  %v4310_v59 = vshll.u32 %v5100_v40, 16  ;;  %v4734_v34 = vsel %vm1572_vm1, %v4064_v4, 0.0  ;;  %v4281_v33 = vor.u32 %v4279_v39, %v4278_v31  ;;  %v6899_v40 = vld [vmem:[%s8934_s2] ss:$0 sm:$0xff] }
 0x1bd   : > { %9286 = vst [vmem:[#allocation25_spill] sm:$0xff] %v6838_v54  ;;  %9289 = vst [vmem:[#allocation44_spill] sm:$0xff] %v9288_v27  ;;  %v4283_v12 = vrot.slane %v4278_v31, 4  ;;  %v4300_v22 = vrot.slane %v4298_v28, 7  ;;  %v6852_v38 = vadd.f32 %v4734_v34, %v4733_v61  ;;  %v4290_v30 = vor.u32 %v4288_v7, %v4287_v56  ;;  %v9297_v31 = vld [vmem:[#allocation56_spill] sm:$0xff]  ;;  %v9299_v56 = vld [vmem:[#allocation6_spill] sm:$0xff] }
 0x1be   : > { %v4309_v21 = vrot.slane %v4307_v53, 7  ;;  %v9292_v41 = vrot.slane %v9291_v8, 2  ;;  %v3699_v16 = vadd.f32 %v3592_v55, %v3391_v57  ;;  %v4282_v29 = vsel %vm6842_vm6, %v5076_v43, %v4281_v33  ;;  %v9293_v43 = vld [vmem:[#allocation21_spill] sm:$0xff]  ;;  %v9302_v33 = vld [vmem:[#allocation58_spill] sm:$0xff] }
 0x1bf   : > { %9290 = vst [vmem:[#allocation42_spill] sm:$0xff] %v6852_v38  ;;  %v4303_v11 = vor.u32 %v4301_v48, %v4300_v22  ;;  %v4305_v18 = vrot.slane %v4300_v22, 4  ;;  %v4291_v62 = vsel %vm6842_vm6, %v4283_v12, %v4290_v30  ;;  %4654 = vst [vmem:[%s6850_s14] sm:$0xf] %v4282_v29  ;;  %v6863_v4 = vadd.f32 %v6682_v9, %v3698_v63  ;;  %v9298_v48 = vld [vmem:[#allocation39_spill] sm:$0xff]  ;;  %v9306_v29 = vld [vmem:[#allocation41_spill] sm:$0xff]  ;;  %v7011_v38 = vpop.f32.mrb[14].mxu0 }
 0x1c0   : > { %v3594_v26 = vsel %vm1849_vm2, %v3591_v0, %v9292_v41  ;;  %v4312_v10 = vor.u32 %v4310_v59, %v4309_v21  ;;  %v6866_v49 = vadd.f32 %v6682_v9, %v3699_v16  ;;  %4655 = vst [vmem:[%s6850_s14 + $0x4] sm:$0xf] %v4291_v62  ;;  %v6880_v55 = vadd.f32 %v6682_v9, %v6823_v51  ;;  %v9304_v21 = vld [vmem:[#allocation26_spill] sm:$0xff]  ;;  %v9315_v30 = vld [vmem:[#allocation75_spill] sm:$0xff] }
 0x1c1   : > { %v3700_v25 = vadd.f32 %v3594_v26, %v3392_v46  ;;  %v4304_v57 = vsel %vm6842_vm6, %v5077_v52, %v4303_v11  ;;  %v6876_v46 = vadd.f32 %v6682_v9, %v6818_v5  ;;  %v6886_v32 = vadd.f32 %v6682_v9, %v3703_v17  ;;  %v9305_v41 = vld [vmem:[#allocation54_spill] sm:$0xff]  ;;  %9327 = vst [vmem:[#allocation34_spill] sm:$0xff] %v7011_v38 }
 0x1c2   : > { %v4313_v63 = vsel %vm6842_vm6, %v4305_v18, %v4312_v10  ;;  %4656 = vst [vmem:[%s6850_s14 + $0x8] sm:$0xf] %v4304_v57  ;;  %v5010_v61 = vmul.f32 -1.442695, %v6863_v4  ;;  %v5011_v6 = vmul.f32 -1.442695, %v6866_v49  ;;  %v9294_v13 = vunpack.c.l.bf16 %v9293_v43 }
 0x1c3   : > { %v6872_v0 = vadd.f32 %v6682_v9, %v3700_v25  ;;  %4657 = vst [vmem:[%s6850_s14 + $0xc] sm:$0xf] %v4313_v63  ;;  %v5013_v51 = vmul.f32 -1.442695, %v6876_v46  ;;  %v9295_v9 = vld [vmem:[#allocation40_spill] sm:$0xff]  ;;  %v6909_v28 = vadd.f32 %v6899_v40, %v9297_v31  ;;  %v9300_v53 = vrot.slane %v9299_v56, 4 }
 0x1c4   : > { %v2637_v5 = vmul.f32 %v5821_v35, %v9294_v13  ;;  %v6903_v17 = vadd.f32 %v6899_v40, %v9295_v9  ;;  %5376 = vpow2.f32 %v5010_v61  ;;  %v5014_v52 = vmul.f32 -1.442695, %v6880_v55  ;;  %v1722_v16 = vld [vmem:[#allocation2 + $0x88] sm:$0x1]  ;;  %v6932_v63 = vld [vmem:[#allocation2 + $0x78] sm:$0x80] }
 0x1c5   : > { %v5012_v39 = vmul.f32 -1.442695, %v6872_v0  ;;  %v6915_v59 = vsel %vm1243_vm0, %v9300_v53, %v9298_v48  ;;  %5378 = vpow2.f32 %v5011_v6  ;;  %v5015_v34 = vmul.f32 -1.442695, %v6886_v32  ;;  %v2567_v62 = vld [vmem:[#allocation2 + $0x88] sm:$0x1] }
 0x1c6   : > { %9301 = vst [vmem:[#allocation43_spill] sm:$0xff] %v6915_v59  ;;  %v6920_v12 = vadd.f32 %v6899_v40, %v9302_v33  ;;  %v2708_v8 = vrot.slane %v9304_v21, 2  ;;  %v883_v26 = vadd.f32 1.0, %v9305_v41  ;;  %v6927_v11 = vmul.f32 %v9204_v14, %v9306_v29  ;;  %v9308_v61 = vld [vmem:[#allocation69_spill] sm:$0xff]  ;;  %v6943_v48 = vld [vmem:[#allocation2 + $0x78] sm:$0x80] }
 0x1c7   : > { %5380 = vpow2.f32 %v5012_v39  ;;  %v2758_v18 = vrot.slane %v2637_v5, 2  ;;  %v4950_v25 = vmul.f32 -1.442695, %v6903_v17  ;;  %v4970_v57 = vmul.f32 -1.442695, %v6909_v28  ;;  %v9309_v9 = vld [vmem:[#allocation77_spill] sm:$0xff] }
 0x1c8   : > { %9307 = vst [vmem:[#allocation29_spill] sm:$0xff] %v6927_v11  ;;  %5382 = vpow2.f32 %v5013_v51  ;;  %v6936_v6 = vadd.f32 %v6899_v40, %v9308_v61  ;;  %v4953_v13 = vmul.f32 -1.442695, %v6920_v12  ;;  %v1738_v5 = vunpack.c.l.bf16 %v1722_v16  ;;  %v3411_v39 = vld [vmem:[#allocation2 + $0x88] sm:$0x1]  ;;  %v9311_v21 = vld [vmem:[#allocation79_spill] sm:$0xff] }
 0x1c9   : > { %5384 = vpow2.f32 %v5014_v52  ;;  %v1732_v51 = vld [vmem:[#allocation2 + $0x178] sm:$0x1]  ;;  %v9310_v31 = vrot.slane %v9309_v9, 2  ;;  %v2583_v56 = vunpack.c.l.bf16 %v2567_v62  ;;  %v6945_v53 = vld [vmem:[#allocation2 + $0x78] sm:$0x80]  ;;  %v9312_v41 = vrot.slane %v9311_v21, 2 }
 0x1ca   : > { %5386 = vpow2.f32 %v5015_v34  ;;  %v4973_v33 = vmul.f32 -1.442695, %v6936_v6  ;;  %v9313_v16 = vld [vmem:[#allocation33_spill] sm:$0xff]  ;;  %v9314_v29 = vld [vmem:[#allocation31_spill] sm:$0xff]  ;;  %v3427_v9 = vunpack.c.l.bf16 %v3411_v39  ;;  %v6958_v62 = vld [vmem:[#allocation2 + $0x168] sm:$0x80]  ;;  %v6962_v7 = vadd.f32 %v6899_v40, %v9315_v30 }
 0x1cb   : > { %v2709_v52 = vsel %vm1849_vm2, %v9310_v31, %v2708_v8  ;;  %5388 = vrcp.f32 %v883_v26  ;;  %v6951_v34 = vsel %vm1849_vm2, %v9312_v41, %v2758_v18  ;;  %v6955_v61 = vmul.f32 %v9314_v29, %v9313_v16  ;;  %v3421_v26 = vld [vmem:[#allocation2 + $0x178] sm:$0x1]  ;;  %v1721_v21 = vld [vmem:[#allocation2 + $0x70] sm:$0x1] }
 0x1cc   : > { %5390 = vpow2.f32 %v4950_v25  ;;  %v1748_v31 = vunpack.c.l.bf16 %v1732_v51  ;;  %v6965_v18 = vmul.f32 %v5770_v47, %v1738_v5  ;;  %v2577_v39 = vld [vmem:[#allocation2 + $0x178] sm:$0x1]  ;;  %v3437_v51 = vunpack.c.l.bf16 %v3421_v26  ;;  %v9317_v5 = vld [vmem:[#allocation74_spill] sm:$0xff] }
 0x1cd   : > { %5392 = vpow2.f32 %v4970_v57  ;;  %v6970_v57 = vmul.f32 %v5821_v35, %v2583_v56  ;;  %v4951_v29 = vmul.f32 -1.442695, %v6962_v7  ;;  %v1737_v10 = vunpack.c.l.bf16 %v1721_v21  ;;  %v9319_v21 = vld [vmem:[#allocation76_spill] sm:$0xff] }
 0x1ce   : > { %5394 = vpow2.f32 %v4953_v13  ;;  %v5377_v16 = vpop.eup %5376  ;;  %v9318_v8 = vrot.slane %v9317_v5, 1  ;;  %v6978_v22 = vmul.f32 %v6560_v3, %v3427_v9  ;;  %v6981_v56 = vmul.f32 %v5770_v47, %v1748_v31  ;;  %v6990_v9 = vld [vmem:[#allocation2 + $0x168] sm:$0x80] }
 0x1cf   : > { %9316 = vst [vmem:[#allocation47_spill] sm:$0xff] %v6970_v57  ;;  %5396 = vpow2.f32 %v4973_v33  ;;  %v5379_v30 = vpop.eup %5378  ;;  %v3945_v43 = vadd.f32 1.0, %v5377_v16  ;;  %v2593_v16 = vunpack.c.l.bf16 %v2577_v39  ;;  %v9320_v13 = vrot.slane %v9319_v21, 2  ;;  %v6999_v39 = vpop.f32.mrb[13].mxu1 }
 0x1d0   : > { %v2523_v41 = vadd.f32 %v9318_v8, %v6633_v24  ;;  %v3946_v25 = vadd.f32 1.0, %v5379_v30  ;;  %5398 = vpow2.f32 %v4951_v29  ;;  %v6988_v30 = vld [vmem:[#allocation2 + $0x168] sm:$0x80]  ;;  %v6993_v31 = vmul.f32 %v6560_v3, %v3437_v51  ;;  %9325 = vst [vmem:[#allocation30_spill] sm:$0xff] %v6999_v39  ;;  %v5220_v51 = vpop.f32.mrb[14].mxu1 }
 0x1d1   : > { %v5381_v11 = vpop.eup %5380  ;;  %5400 = vrcp.f32 %v3945_v43  ;;  %v6986_v59 = vadd.f32 %v9320_v13, %v6640_v60  ;;  %v7001_v60 = vld [vmem:[#allocation2 + $0x60] sm:$0x80]  ;;  %v3410_v39 = vld [vmem:[#allocation2 + $0x70] sm:$0x1] }
 0x1d2   : > { %v5383_v33 = vpop.eup %5382  ;;  %v3947_v26 = vadd.f32 1.0, %v5381_v11  ;;  %5402 = vrcp.f32 %v3946_v25  ;;  %9322 = vst [vmem:[#allocation45_spill] sm:$0xff] %v6993_v31  ;;  %v9323_v11 = vld [vmem:[#allocation15_spill] sm:$0xff]  ;;  %v7004_v25 = vmul.f32 %v5770_v47, %v1737_v10  ;;  %v7006_v13 = vld [vmem:[#allocation2 + $0x60] sm:$0x80]  ;;  %v9334_v31 = vld [vmem:[#allocation78_spill] sm:$0xff] }
 0x1d3   : > { %9321 = vst [vmem:[#allocation28_spill] sm:$0xff] %v6986_v59  ;;  %v5385_v24 = vpop.eup %5384  ;;  %v3948_v8 = vadd.f32 1.0, %v5383_v33  ;;  %v6997_v43 = vadd.f32 %v9323_v11, %v6651_v45  ;;  %v7008_v33 = vadd.f32 %v2709_v52, %v2523_v41  ;;  %v2582_v11 = vunpack.c.l.bf16 %v2566_v23 }
 0x1d4   : > { %v5387_v29 = vpop.eup %5386  ;;  %v3949_v5 = vadd.f32 1.0, %v5385_v24  ;;  %5404 = vrcp.f32 %v3947_v26  ;;  %v3426_v45 = vunpack.c.l.bf16 %v3410_v39  ;;  %v9333_v24 = vld [vmem:[#allocation22_spill] sm:$0xff]  ;;  %v1731_v39 = vld [vmem:[#allocation2 + $0x160] sm:$0x1] }
 0x1d5   : > { %9324 = vst [vmem:[#allocation46_spill] sm:$0xff] %v6997_v43  ;;  %9326 = vst [vmem:[#allocation32_spill] sm:$0xff] %v7008_v33  ;;  %v5389_v21 = vpop.eup %5388  ;;  %v3950_v57 = vadd.f32 1.0, %v5387_v29  ;;  %5406 = vrcp.f32 %v3948_v8  ;;  %v7018_v8 = vmul.f32 %v5821_v35, %v2593_v16  ;;  %v7021_v29 = vld [vmem:[#allocation2 + $0x60] sm:$0x80]  ;;  %v7027_v41 = vmul.f32 %v5821_v35, %v2582_v11  ;;  %v9330_v16 = vld [vmem:[#allocation18_spill] sm:$0xff] }
 0x1d6   : > { %v5391_v26 = vpop.eup %5390  ;;  %5408 = vrcp.f32 %v3949_v5  ;;  %9329 = vst [vmem:[#allocation36_spill] sm:$0xff] %v7021_v29  ;;  %v7033_v43 = vmul.f32 %v5389_v21, %v9332_v1  ;;  %v7038_v10 = vadd.f32 %v6899_v40, %v9333_v24  ;;  %v7040_v11 = vld [vmem:[#allocation2 + $0x150] sm:$0x80]  ;;  %v9337_v1 = vld [vmem:[#allocation84_spill] sm:$0xff] }
 0x1d7   : > { %v5393_v52 = vpop.eup %5392  ;;  %5410 = vrcp.f32 %v3950_v57  ;;  %9328 = vst [vmem:[#allocation35_spill] sm:$0xff] %v7018_v8  ;;  %v861_v38 = vadd.f32 1.0, %v5391_v26  ;;  %v9331_v8 = vrot.slane %v9330_v16, 1  ;;  %v2576_v26 = vld [vmem:[#allocation2 + $0x160] sm:$0x1]  ;;  %v9335_v16 = vrot.slane %v9334_v31, 2 }
 0x1d8   : > { %v5395_v51 = vpop.eup %5394  ;;  %v7057_v33 = vld [vmem:[#allocation2 + $0x150] sm:$0x80]  ;;  %v1747_v31 = vunpack.c.l.bf16 %v1731_v39 }
 0x1d9   : > { %v5397_v54 = vpop.eup %5396  ;;  %v864_v57 = vadd.f32 1.0, %v5395_v51  ;;  %v2553_v23 = vadd.f32 %v9331_v8, %v6772_v15  ;;  %v7045_v15 = vadd.f32 %v9335_v16, %v6777_v58  ;;  %v881_v8 = vadd.f32 1.0, %v5393_v52  ;;  %9340 = vst [vmem:[#allocation80_spill] sm:$0xff] %v7057_v33  ;;  %v7098_v52 = vpop.f32.mrb[15].mxu0  ;;  %v7112_v33 = vld [vmem:[#allocation2 + $0x150] sm:$0x80] }
 0x1da   : > { %v884_v59 = vadd.f32 1.0, %v5397_v54  ;;  %v5399_v51 = vpop.eup %5398  ;;  %v7049_v54 = vadd.f32 %v9337_v1, %v6781_v50  ;;  %v2592_v50 = vunpack.c.l.bf16 %v2576_v26  ;;  %v7080_v26 = vld [vmem:[#allocation2 + $0x160] sm:$0x1]  ;;  %9348 = vst [vmem:[#allocation21_spill] sm:$0xff] %v7098_v52  ;;  %9350 = vst [vmem:[#allocation56_spill] sm:$0xff] %v7112_v33 }
 0x1db   : > { %5412 = vrcp.f32 %v864_v57  ;;  %9336 = vst [vmem:[#allocation37_spill] sm:$0xff] %v7045_v15  ;;  %v7052_v21 = vadd.f32 %v6951_v34, %v2553_v23  ;;  %v5401_v24 = vpop.eup %5400  ;;  %v862_v5 = vadd.f32 1.0, %v5399_v51  ;;  %v7055_v57 = vmul.f32 %v6560_v3, %v3426_v45 }
 0x1dc   : > { %9338 = vst [vmem:[#allocation82_spill] sm:$0xff] %v7049_v54  ;;  %5414 = vrcp.f32 %v884_v59  ;;  %v5403_v29 = vpop.eup %5402  ;;  %v7060_v58 = vmul.f32 %v5401_v24, %v6863_v4  ;;  %v7088_v24 = vmul.f32 %v5770_v47, %v1747_v31  ;;  %v3436_v31 = vunpack.c.l.bf16 %v7080_v26 }
 0x1dd   : > { %9339 = vst [vmem:[#allocation72_spill] sm:$0xff] %v7052_v21  ;;  %5416 = vrcp.f32 %v861_v38  ;;  %v7063_v34 = vmul.f32 %v5403_v29, %v6866_v49  ;;  %v4971_v38 = vmul.f32 -1.442695, %v7038_v10 }
 0x1de   : > { %9341 = vst [vmem:[#allocation73_spill] sm:$0xff] %v7060_v58  ;;  %v5405_v16 = vpop.eup %5404  ;;  %5418 = vrcp.f32 %v862_v5  ;;  %v5125_v4 = vpack.c.bf16 %v7060_v58, %v7060_v58 }
 0x1df   : > { %9342 = vst [vmem:[#allocation24_spill] sm:$0xff] %v7063_v34  ;;  %v5407_v3 = vpop.eup %5406  ;;  %v7068_v45 = vmul.f32 %v5405_v16, %v6872_v0  ;;  %v5126_v29 = vpack.c.bf16 %v7063_v34, %v7063_v34  ;;  %5420 = vrcp.f32 %v881_v8 }
 0x1e0   : > { %v5409_v39 = vpop.eup %5408  ;;  %v7075_v49 = vmul.f32 %v5407_v3, %v6876_v46  ;;  %v7091_v46 = vmul.f32 %v5821_v35, %v2592_v50  ;;  %v4491_v3 = vshrl.u32 %v5125_v4, 16  ;;  %5422 = vpow2.f32 %v4971_v38 }
 0x1e1   : > { %9343 = vst [vmem:[#allocation81_spill] sm:$0xff] %v7068_v45  ;;  %v5411_v0 = vpop.eup %5410  ;;  %v7083_v51 = vmul.f32 %v5409_v39, %v6880_v55  ;;  %v5127_v1 = vpack.c.bf16 %v7068_v45, %v7068_v45  ;;  %v4496_v23 = vshrl.u32 %v5126_v29, 16 }
 0x1e2   : > { %9344 = vst [vmem:[#allocation83_spill] sm:$0xff] %v7075_v49  ;;  %9346 = vst [vmem:[#allocation23_spill] sm:$0xff] %v7091_v46  ;;  %v7094_v16 = vmul.f32 %v5411_v0, %v6886_v32  ;;  %v5128_v8 = vpack.c.bf16 %v7075_v49, %v7075_v49  ;;  %v4499_v32 = vshll.u32 %v5126_v29, 16  ;;  %v7107_v49 = vadd.f32 %v6899_v40, %v6754_v19 }
 0x1e3   : > { %9345 = vst [vmem:[#allocation85_spill] sm:$0xff] %v7083_v51  ;;  %v5129_v55 = vpack.c.bf16 %v7083_v51, %v7083_v51  ;;  %v4505_v39 = vshrl.u32 %v5127_v1, 16  ;;  %v4498_v5 = vrot.slane %v4496_v23, 7  ;;  %v4508_v34 = vshll.u32 %v5127_v1, 16 }
 0x1e4   : > { %9347 = vst [vmem:[#allocation8_spill] sm:$0xff] %v7094_v16  ;;  %v5130_v50 = vpack.c.bf16 %v7094_v16, %v7094_v16  ;;  %v4513_v0 = vshrl.u32 %v5128_v8, 16  ;;  %9349 = vst [vmem:[#allocation40_spill] sm:$0xff] %v7107_v49  ;;  %v5086_v51 = vrot.slane %v4491_v3, 11 }
 0x1e5   : > { %v5413_v59 = vpop.eup %5412  ;;  %v4507_v45 = vrot.slane %v4505_v39, 7  ;;  %v4518_v4 = vshrl.u32 %v5129_v55, 16  ;;  %v4501_v52 = vor.u32 %v4499_v32, %v4498_v5  ;;  %v4503_v38 = vrot.slane %v4498_v5, 4 }
 0x1e6   : > { %v5415_v58 = vpop.eup %5414  ;;  %v4527_v26 = vshrl.u32 %v5130_v50, 16  ;;  %v5087_v16 = vrot.slane %v4513_v0, 11  ;;  %v4521_v29 = vshll.u32 %v5129_v55, 16  ;;  %v4530_v21 = vshll.u32 %v5130_v50, 16 }
 0x1e7   : > { %v5417_v54 = vpop.eup %5416  ;;  %v4510_v15 = vor.u32 %v4508_v34, %v4507_v45  ;;  %v4520_v23 = vrot.slane %v4518_v4, 7  ;;  %v4502_v1 = vsel %vm6842_vm6, %v5086_v51, %v4501_v52  ;;  %v972_v19 = vmul.f32 %v5413_v59, %v6920_v12 }
 0x1e8   : > { %v5419_v8 = vpop.eup %5418  ;;  %v4529_v39 = vrot.slane %v4527_v26, 7  ;;  %4674 = vst [vmem:[%s6850_s14 + $0x50] sm:$0xf] %v4502_v1  ;;  %v992_v45 = vmul.f32 %v5415_v58, %v6936_v6 }
 0x1e9   : > { %v4511_v5 = vsel %vm6842_vm6, %v4503_v38, %v4510_v15  ;;  %v4523_v3 = vor.u32 %v4521_v29, %v4520_v23  ;;  %v4525_v34 = vrot.slane %v4520_v23, 4  ;;  %v5421_v55 = vpop.eup %5420  ;;  %v1146_v52 = vpack.c.bf16 %v972_v19, %v6955_v61 }
 0x1ea   : > { %v4532_v32 = vor.u32 %v4530_v21, %v4529_v39  ;;  %4675 = vst [vmem:[%s6850_s14 + $0x54] sm:$0xf] %v4511_v5  ;;  %v970_v51 = vmul.f32 %v5419_v8, %v6962_v7  ;;  %v969_v15 = vmul.f32 %v5417_v54, %v6903_v17  ;;  %v1156_v50 = vpack.c.bf16 %v992_v45, %v7033_v43  ;;  %v5423_v7 = vpop.eup %5422  ;;  %v7141_v17 = vld [vmem:[%s8935_s3 + $0x8] ss:$0 sm:$0xff] }
 0x1eb   : > { %v4524_v59 = vsel %vm6842_vm6, %v5087_v16, %v4523_v3  ;;  %v1260_v21 = vrot.slane %v1146_v52, 4  ;;  %v7130_v58 = vunpack.c.l.bf16 %v1146_v52  ;;  %v7132_v61 = vunpack.c.h.bf16 %v1146_v52 }
 0x1ec   : > { %v4533_v6 = vsel %vm6842_vm6, %v4525_v34, %v4532_v32  ;;  %4676 = vst [vmem:[%s6850_s14 + $0x58] sm:$0xf] %v4524_v59  ;;  %v7135_v4 = vpack.c.bf16 %v970_v51, %v969_v15  ;;  %v7144_v43 = vmul.f32 %v7141_v17, %v3436_v31  ;;  %v4956_v54 = vmul.f32 -1.442695, %v7107_v49 }
 0x1ed   : > { %4677 = vst [vmem:[%s6850_s14 + $0x5c] sm:$0xf] %v4533_v6  ;;  %v9352_v38 = vrot.slane %v6932_v63, 4  ;;  %v1341_v23 = vunpack.c.l.bf16 %v1260_v21  ;;  %v1518_v29 = vmul.f32 %v5760_v37, %v7130_v58  ;;  %v1519_v8 = vmul.f32 %v5760_v37, %v7132_v61 }
 0x1ee   : > { %9351 = vst [vmem:[#allocation39_spill] sm:$0xff] %v7144_v43  ;;  %v1768_v19 = vmul.f32 %v5770_v47, %v7130_v58  ;;  %v1769_v31 = vmul.f32 %v5770_v47, %v7132_v61  ;;  %v9353_v34 = vrot.slane %v6943_v48, 4  ;;  %v7165_v15 = vmul.f32 %v5421_v55, %v6909_v28 }
 0x1ef   : > { %v1261_v26 = vsel %vm1243_vm0, %v9352_v38, %v1260_v21  ;;  %v1393_v5 = vmul.f32 %v5765_v42, %v1341_v23  ;;  %v1588_v63 = vrot.slane %v1518_v29, 1  ;;  %v1589_v3 = vrot.slane %v1519_v8, 1 }
 0x1f0   : > { %v1339_v1 = vunpack.c.l.bf16 %v1261_v26  ;;  %v1340_v39 = vunpack.c.h.bf16 %v1261_v26  ;;  %v2105_v45 = vsel %vm1243_vm0, %v9353_v34, %v1260_v21  ;;  %v1875_v51 = vrot.slane %v1768_v19, 2  ;;  %v7180_v34 = vpop.f32.mrb[15].mxu1 }
 0x1f1   : > { %v1876_v59 = vrot.slane %v1769_v31, 2  ;;  %v1590_v6 = vsel %vm1572_vm1, %v1588_v63, %v1589_v3  ;;  %v1686_v38 = vadd.f32 %v1589_v3, %v1393_v5  ;;  %v7170_v26 = vadd.f32 %v6899_v40, %v6812_v44  ;;  %9357 = vst [vmem:[#allocation26_spill] sm:$0xff] %v7180_v34 }
 0x1f2   : > { %v1391_v32 = vmul.f32 %v5765_v42, %v1339_v1  ;;  %v1392_v52 = vmul.f32 %v5765_v42, %v1340_v39  ;;  %v9355_v1 = vrot.slane %v6965_v18, 2  ;;  %v2183_v31 = vunpack.c.l.bf16 %v2105_v45 }
 0x1f3   : > { %9354 = vst [vmem:[#allocation6_spill] sm:$0xff] %v7170_v26  ;;  %v1877_v8 = vsel %vm1849_vm2, %v1875_v51, %v1876_v59  ;;  %v2184_v28 = vunpack.c.h.bf16 %v2105_v45  ;;  %v7178_v55 = vadd.f32 1.0, %v5423_v7  ;;  %v7188_v40 = vmul.f32 %v5874_v20, %v7130_v58 }
 0x1f4   : > { %v1684_v29 = vadd.f32 %v1588_v63, %v1391_v32  ;;  %v1685_v48 = vadd.f32 %v1590_v6, %v1392_v52  ;;  %v1879_v39 = vsel %vm1849_vm2, %v1876_v59, %v9355_v1  ;;  %v7192_v18 = vmul.f32 %v5874_v20, %v7132_v61 }
 0x1f5   : > { %v7176_v19 = vadd.f32 %v1879_v39, %v1686_v38  ;;  %v7196_v63 = vmul.f32 %v5821_v35, %v7130_v58  ;;  %v7200_v7 = vmul.f32 %v5821_v35, %v7132_v61  ;;  %5424 = vpow2.f32 %v4956_v54 }
 0x1f6   : > { %v7182_v5 = vadd.f32 %v1875_v51, %v1684_v29  ;;  %v7184_v44 = vadd.f32 %v1877_v8, %v1685_v48  ;;  %9360 = vst [vmem:[#allocation69_spill] sm:$0xff] %v7192_v18  ;;  %v9032_v45 = vrot.slane %v7188_v40, 1  ;;  %v9029_v32 = vrot.slane %v7192_v18, 1 }
 0x1f7   : > { %9356 = vst [vmem:[#allocation58_spill] sm:$0xff] %v7176_v19  ;;  %9361 = vst [vmem:[#allocation77_spill] sm:$0xff] %v7196_v63  ;;  %v9363_v52 = vrot.slane %v6945_v53, 4  ;;  %v1290_v59 = vrot.slane %v1156_v50, 4  ;;  %v9030_v6 = vrot.slane %v7196_v63, 2  ;;  %v9031_v38 = vrot.slane %v7200_v7, 2 }
 0x1f8   : > { %9358 = vst [vmem:[#allocation54_spill] sm:$0xff] %v7182_v5  ;;  %9359 = vst [vmem:[#allocation41_spill] sm:$0xff] %v7184_v44  ;;  %v7210_v29 = vunpack.c.l.bf16 %v1156_v50  ;;  %v7212_v48 = vunpack.c.h.bf16 %v1156_v50  ;;  %v7215_v8 = vmul.f32 %v5870_v2, %v2183_v31  ;;  %v7218_v54 = vmul.f32 %v5870_v2, %v2184_v28 }
 0x1f9   : > { %9362 = vst [vmem:[#allocation79_spill] sm:$0xff] %v7200_v7  ;;  %v2947_v51 = vsel %vm1243_vm0, %v9363_v52, %v1260_v21  ;;  %v7225_v53 = vsel %vm1572_vm1, %v9032_v45, %v9029_v32  ;;  %v7229_v21 = vmul.f32 %v5892_v36, %v7130_v58  ;;  %v7232_v50 = vmul.f32 %v5870_v2, %v1341_v23 }
 0x1fa   : > { %v7239_v1 = vsel %vm1849_vm2, %v9030_v6, %v9031_v38  ;;  %v3025_v39 = vunpack.c.l.bf16 %v2947_v51  ;;  %v7242_v31 = vmul.f32 %v9204_v14, %v1341_v23  ;;  %v3026_v28 = vunpack.c.h.bf16 %v2947_v51 }
 0x1fb   : > { %9364 = vst [vmem:[#allocation33_spill] sm:$0xff] %v7239_v1  ;;  %v7246_v52 = vmul.f32 %v5892_v36, %v7132_v61  ;;  %v9365_v32 = vrot.slane %v6958_v62, 4  ;;  %v1371_v16 = vunpack.c.l.bf16 %v1290_v59  ;;  %v7253_v0 = vmul.f32 %v7141_v17, %v7130_v58 }
 0x1fc   : > { %v1538_v23 = vmul.f32 %v5760_v37, %v7210_v29  ;;  %v1539_v45 = vmul.f32 %v5760_v37, %v7212_v48  ;;  %v1798_v62 = vmul.f32 %v5770_v47, %v7210_v29  ;;  %v3454_v51 = vmul.f32 %v7141_v17, %v7132_v61 }
 0x1fd   : > { %v1291_v3 = vsel %vm1243_vm0, %v9365_v32, %v1290_v59  ;;  %v1423_v12 = vmul.f32 %v5765_v42, %v1371_v16  ;;  %v7273_v63 = vmul.f32 %v9204_v14, %v3025_v39  ;;  %v9038_v18 = vrot.slane %v7253_v0, 2 }
 0x1fe   : > { %v1369_v6 = vunpack.c.l.bf16 %v1291_v3  ;;  %v1370_v38 = vunpack.c.h.bf16 %v1291_v3  ;;  %v1618_v44 = vrot.slane %v1538_v23, 1  ;;  %v1799_v3 = vmul.f32 %v5770_v47, %v7212_v48 }
 0x1ff   : > { %v1619_v19 = vrot.slane %v1539_v45, 1  ;;  %v1925_v34 = vrot.slane %v1798_v62, 2  ;;  %v7270_v1 = vpop.eup %5424  ;;  %v9367_v7 = vrot.slane %v6988_v30, 4  ;;  %v9368_v39 = vrot.slane %v6981_v56, 2 }
 0x200   : > { %v1421_v32 = vmul.f32 %v5765_v42, %v1369_v6  ;;  %v1422_v58 = vmul.f32 %v5765_v42, %v1370_v38  ;;  %9366 = vst [vmem:[#allocation31_spill] sm:$0xff] %v7270_v1  ;;  %v7276_v6 = vmul.f32 %v9204_v14, %v3026_v28  ;;  %v1926_v23 = vrot.slane %v1799_v3, 2 }
 0x201   : > { %v1620_v49 = vsel %vm1572_vm1, %v1618_v44, %v1619_v19  ;;  %v1716_v5 = vadd.f32 %v1619_v19, %v1423_v12  ;;  %v2135_v61 = vsel %vm1243_vm0, %v9367_v7, %v1290_v59  ;;  %v9371_v3 = vrot.slane %v7229_v21, 1 }
 0x202   : > { %v1714_v38 = vadd.f32 %v1618_v44, %v1421_v32  ;;  %v1715_v45 = vadd.f32 %v1620_v49, %v1422_v58  ;;  %v1927_v62 = vsel %vm1849_vm2, %v1925_v34, %v1926_v23  ;;  %v1929_v26 = vsel %vm1849_vm2, %v1926_v23, %v9368_v39 }
 0x203   : > { %v9370_v32 = vrot.slane %v7246_v52, 1  ;;  %v3556_v12 = vrot.slane %v3454_v51, 2  ;;  %v7296_v30 = vadd.f32 %v1929_v26, %v1716_v5  ;;  %v7300_v49 = vmul.f32 %v5874_v20, %v7210_v29 }
 0x204   : > { %v7287_v28 = vadd.f32 %v1925_v34, %v1714_v38  ;;  %v7302_v19 = vadd.f32 %v1927_v62, %v1715_v45  ;;  %v7306_v56 = vmul.f32 %v5874_v20, %v7212_v48  ;;  %v7310_v34 = vmul.f32 %v5821_v35, %v7210_v29 }
 0x205   : > { %v7294_v44 = vsel %vm1572_vm1, %v9371_v3, %v9370_v32  ;;  %9372 = vst [vmem:[#allocation74_spill] sm:$0xff] %v7296_v30  ;;  %9373 = vst [vmem:[#allocation76_spill] sm:$0xff] %v7300_v49  ;;  %v7314_v7 = vmul.f32 %v5821_v35, %v7212_v48  ;;  %v2213_v26 = vunpack.c.l.bf16 %v2135_v61  ;;  %v2214_v5 = vunpack.c.h.bf16 %v2135_v61 }
 0x206   : > { %9369 = vst [vmem:[#allocation75_spill] sm:$0xff] %v7287_v28  ;;  %9374 = vst [vmem:[#allocation15_spill] sm:$0xff] %v7302_v19  ;;  %v9040_v51 = vrot.slane %v7300_v49, 1  ;;  %v9378_v58 = vrot.slane %v6990_v9, 4  ;;  %v9039_v23 = vrot.slane %v7306_v56, 1  ;;  %v7325_v39 = vmul.f32 %v5892_v36, %v7210_v29 }
 0x207   : > { %9375 = vst [vmem:[#allocation18_spill] sm:$0xff] %v7306_v56  ;;  %9376 = vst [vmem:[#allocation38_spill] sm:$0xff] %v7310_v34  ;;  %v9041_v62 = vrot.slane %v7314_v7, 2  ;;  %v7330_v61 = vsel %vm1849_vm2, %v9038_v18, %v3556_v12  ;;  %v7334_v9 = vmul.f32 %v5892_v36, %v7212_v48  ;;  %v7342_v45 = vmul.f32 %v5870_v2, %v1371_v16 }
 0x208   : > { %9377 = vst [vmem:[#allocation22_spill] sm:$0xff] %v7314_v7  ;;  %v2977_v38 = vsel %vm1243_vm0, %v9378_v58, %v1290_v59  ;;  %v9379_v59 = vrot.slane %v6978_v22, 2  ;;  %v7349_v18 = vsel %vm1572_vm1, %v9040_v51, %v9039_v23  ;;  %v7359_v22 = vmul.f32 %v5870_v2, %v2213_v26 }
 0x209   : > { %v3055_v32 = vunpack.c.l.bf16 %v2977_v38  ;;  %v3056_v3 = vunpack.c.h.bf16 %v2977_v38  ;;  %9380 = vst [vmem:[#allocation78_spill] sm:$0xff] %v7342_v45  ;;  %9381 = vst [vmem:[#allocation84_spill] sm:$0xff] %v7349_v18  ;;  %v9382_v38 = vrot.slane %v7310_v34, 2  ;;  %v7369_v23 = vmul.f32 %v7141_v17, %v7210_v29  ;;  %v9395_v18 = vld [vmem:[#allocation11_spill] sm:$0xff] }
 0x20a   : > { %v7339_v58 = vsel %vm1849_vm2, %v3556_v12, %v9379_v59  ;;  %9384 = vst [vmem:[#allocation87_spill] sm:$0xff] %v7359_v22  ;;  %v7362_v12 = vmul.f32 %v5870_v2, %v2214_v5  ;;  %v7365_v59 = vmul.f32 %v9204_v14, %v1371_v16  ;;  %v1257_v28 = vrot.slane %v7135_v4, 4  ;;  %v7425_v22 = vpop.f32.mrb[16].mxu0 }
 0x20b   : > { %v7356_v19 = vsel %vm1849_vm2, %v9382_v38, %v9041_v62  ;;  %9387 = vst [vmem:[#allocation90_spill] sm:$0xff] %v7369_v23  ;;  %v7374_v38 = vunpack.c.l.bf16 %v7135_v4  ;;  %v7377_v26 = vunpack.c.h.bf16 %v7135_v4  ;;  %v7380_v5 = vmul.f32 %v9204_v14, %v3055_v32 }
 0x20c   : > { %9383 = vst [vmem:[#allocation86_spill] sm:$0xff] %v7356_v19  ;;  %9385 = vst [vmem:[#allocation88_spill] sm:$0xff] %v7362_v12  ;;  %v7383_v16 = vmul.f32 %v9204_v14, %v3056_v3  ;;  %v7388_v29 = vmul.f32 %v7141_v17, %v7212_v48  ;;  %v9390_v51 = vrot.slane %v7001_v60, 4  ;;  %v1338_v19 = vunpack.c.l.bf16 %v1257_v28 }
 0x20d   : > { %9386 = vst [vmem:[#allocation89_spill] sm:$0xff] %v7365_v59  ;;  %9388 = vst [vmem:[#allocation91_spill] sm:$0xff] %v7380_v5  ;;  %v1516_v4 = vmul.f32 %v5760_v37, %v7374_v38  ;;  %v1517_v32 = vmul.f32 %v5760_v37, %v7377_v26  ;;  %5426 = vrcp.f32 %v7178_v55  ;;  %v1765_v60 = vmul.f32 %v5770_v47, %v7374_v38 }
 0x20e   : > { %9389 = vst [vmem:[#allocation92_spill] sm:$0xff] %v7383_v16  ;;  %v1258_v30 = vsel %vm1243_vm0, %v9390_v51, %v1257_v28  ;;  %v1390_v48 = vmul.f32 %v5765_v42, %v1338_v19  ;;  %v1766_v43 = vmul.f32 %v5770_v47, %v7377_v26  ;;  %v9391_v3 = vrot.slane %v7006_v13, 4 }
 0x20f   : > { %v1336_v34 = vunpack.c.l.bf16 %v1258_v30  ;;  %v1337_v56 = vunpack.c.h.bf16 %v1258_v30  ;;  %v1585_v62 = vrot.slane %v1516_v4, 1  ;;  %v1586_v7 = vrot.slane %v1517_v32, 1 }
 0x210   : > { %v2102_v30 = vsel %vm1243_vm0, %v9391_v3, %v1257_v28  ;;  %v1870_v16 = vrot.slane %v1765_v60, 2  ;;  %v1871_v23 = vrot.slane %v1766_v43, 2  ;;  %v2361_v33 = vmul.f32 %v5874_v20, %v7374_v38 }
 0x211   : > { %v1388_v51 = vmul.f32 %v5765_v42, %v1336_v34  ;;  %v1389_v27 = vmul.f32 %v5765_v42, %v1337_v56  ;;  %v1587_v55 = vsel %vm1572_vm1, %v1585_v62, %v1586_v7  ;;  %v1683_v59 = vadd.f32 %v1586_v7, %v1390_v48 }
 0x212   : > { %v2180_v4 = vunpack.c.l.bf16 %v2102_v30  ;;  %v2181_v46 = vunpack.c.h.bf16 %v2102_v30  ;;  %v2234_v56 = vmul.f32 %v5870_v2, %v1338_v19  ;;  %v2362_v13 = vmul.f32 %v5874_v20, %v7377_v26 }
 0x213   : > { %v1681_v32 = vadd.f32 %v1585_v62, %v1388_v51  ;;  %v1682_v5 = vadd.f32 %v1587_v55, %v1389_v27  ;;  %v1872_v3 = vsel %vm1849_vm2, %v1870_v16, %v1871_v23  ;;  %v9392_v7 = vrot.slane %v7004_v25, 2  ;;  %v9393_v51 = vld [vmem:[#allocation10_spill] sm:$0xff]  ;;  %v9394_v55 = vld [vmem:[#allocation13_spill] sm:$0xff] }
 0x214   : > { %v2232_v34 = vmul.f32 %v5870_v2, %v2180_v4  ;;  %v2233_v27 = vmul.f32 %v5870_v2, %v2181_v46  ;;  %v2282_v4 = vadd.f32 %v2234_v56, %v9394_v55  ;;  %v2428_v12 = vrot.slane %v2361_v33, 1  ;;  %9396 = vst [vmem:[#allocation10_spill] sm:$0xff] %v7425_v22 }
 0x215   : > { %v1874_v48 = vsel %vm1849_vm2, %v1871_v23, %v9392_v7  ;;  %v1990_v62 = vadd.f32 %v1870_v16, %v1681_v32  ;;  %v1991_v43 = vadd.f32 %v1872_v3, %v1682_v5  ;;  %v2429_v45 = vrot.slane %v2362_v13, 1  ;;  %v9398_v13 = vld [vmem:[#allocation36_spill] sm:$0xff] }
 0x216   : > { %v1992_v60 = vadd.f32 %v1874_v48, %v1683_v59  ;;  %v2280_v30 = vadd.f32 %v2232_v34, %v9393_v51  ;;  %v2281_v49 = vadd.f32 %v2233_v27, %v9395_v18  ;;  %v2608_v46 = vmul.f32 %v5821_v35, %v7374_v38 }
 0x217   : > { %v2283_v1 = vadd.f32 %v7215_v8, %v1990_v62  ;;  %v2284_v25 = vadd.f32 %v7218_v54, %v1991_v43  ;;  %v2609_v59 = vmul.f32 %v5821_v35, %v7377_v26  ;;  %v5427_v5 = vpop.eup %5426  ;;  %v2430_v18 = vsel %vm1572_vm1, %v2428_v12, %v2429_v45 }
 0x218   : > { %v7429_v23 = vadd.f32 %v7232_v50, %v1992_v60  ;;  %v2524_v16 = vadd.f32 %v2428_v12, %v2280_v30  ;;  %v2526_v8 = vadd.f32 %v2429_v45, %v2282_v4  ;;  %v9397_v33 = vrot.slane %v7188_v40, 1 }
 0x219   : > { %v2525_v34 = vadd.f32 %v2430_v18, %v2281_v49  ;;  %v7441_v54 = vadd.f32 %v7225_v53, %v2284_v25  ;;  %v2710_v50 = vrot.slane %v2608_v46, 2  ;;  %v2711_v56 = vrot.slane %v2609_v59, 2  ;;  %v9402_v18 = vld [vmem:[#allocation28_spill] sm:$0xff] }
 0x21a   : > { %v7438_v32 = vadd.f32 %v9397_v33, %v2283_v1  ;;  %v9399_v3 = vrot.slane %v9398_v13, 4  ;;  %v3076_v48 = vmul.f32 %v9204_v14, %v1338_v19  ;;  %v3204_v12 = vmul.f32 %v5892_v36, %v7374_v38 }
 0x21b   : > { %v3205_v40 = vmul.f32 %v5892_v36, %v7377_v26  ;;  %v2712_v1 = vsel %vm1849_vm2, %v2710_v50, %v2711_v56  ;;  %v9400_v49 = vrot.slane %v7027_v41, 2  ;;  %v2832_v45 = vadd.f32 %v2710_v50, %v2524_v16 }
 0x21c   : > { %v2944_v7 = vsel %vm1243_vm0, %v9399_v3, %v1257_v28  ;;  %v2833_v27 = vadd.f32 %v2712_v1, %v2525_v34  ;;  %v9401_v28 = vld [vmem:[#allocation32_spill] sm:$0xff]  ;;  %v3270_v55 = vrot.slane %v3204_v12, 1  ;;  %v3450_v59 = vmul.f32 %v7141_v17, %v7374_v38 }
 0x21d   : > { %v2714_v53 = vsel %vm1849_vm2, %v2711_v56, %v9400_v49  ;;  %v3022_v62 = vunpack.c.l.bf16 %v2944_v7  ;;  %v3023_v60 = vunpack.c.h.bf16 %v2944_v7  ;;  %v3124_v51 = vadd.f32 %v3076_v48, %v9401_v28 }
 0x21e   : > { %v2834_v43 = vadd.f32 %v2714_v53, %v2526_v8  ;;  %v3125_v30 = vadd.f32 %v7273_v63, %v2832_v45  ;;  %v3271_v4 = vrot.slane %v3205_v40, 1  ;;  %v3126_v46 = vadd.f32 %v7276_v6, %v2833_v27  ;;  %v9404_v63 = vld [vmem:[#allocation46_spill] sm:$0xff] }
 0x21f   : > { %v3074_v19 = vmul.f32 %v9204_v14, %v3022_v62  ;;  %v3075_v25 = vmul.f32 %v9204_v14, %v3023_v60  ;;  %v9403_v34 = vrot.slane %v7229_v21, 1  ;;  %v9405_v3 = vrot.slane %v7246_v52, 1 }
 0x220   : > { %v3127_v41 = vadd.f32 %v7242_v31, %v2834_v43  ;;  %v3272_v8 = vsel %vm1572_vm1, %v3270_v55, %v3271_v4  ;;  %v3368_v33 = vadd.f32 %v3271_v4, %v3124_v51  ;;  %v3370_v13 = vadd.f32 %v7294_v44, %v3126_v46 }
 0x221   : > { %v3122_v16 = vadd.f32 %v3074_v19, %v9402_v18  ;;  %v3369_v50 = vadd.f32 %v9403_v34, %v3125_v30  ;;  %v3123_v56 = vadd.f32 %v3075_v25, %v9404_v63  ;;  %v3451_v31 = vmul.f32 %v7141_v17, %v7377_v26 }
 0x222   : > { %v3371_v6 = vadd.f32 %v9405_v3, %v3127_v41  ;;  %v3550_v38 = vrot.slane %v3450_v59, 2  ;;  %v9406_v48 = vrot.slane %v7253_v0, 2  ;;  %v990_v40 = vmul.f32 %v5427_v5, %v7038_v10  ;;  %v7488_v0 = vld [vmem:[%s8936_s4] ss:$0 sm:$0xff] }
 0x223   : > { %v3366_v7 = vadd.f32 %v3270_v55, %v3122_v16  ;;  %v3367_v1 = vadd.f32 %v3272_v8, %v3123_v56  ;;  %v3551_v21 = vrot.slane %v3451_v31, 2  ;;  %v3678_v49 = vadd.f32 %v7330_v61, %v3370_v13 }
 0x224   : > { %v3677_v12 = vadd.f32 %v9406_v48, %v3369_v50  ;;  %v3679_v53 = vadd.f32 %v7339_v58, %v3371_v6  ;;  %v9407_v44 = vrot.slane %v7334_v9, 1  ;;  %v9408_v52 = vrot.slane %v7325_v39, 1 }
 0x225   : > { %v3674_v26 = vadd.f32 %v3550_v38, %v3366_v7  ;;  %v1155_v61 = vpack.c.bf16 %v990_v40, %v7165_v15  ;;  %v3552_v58 = vsel %vm1849_vm2, %v3550_v38, %v3551_v21  ;;  %v9409_v5 = vrot.slane %v7055_v57, 2  ;;  %v9411_v40 = vld [vmem:[#allocation80_spill] sm:$0xff] }
 0x226   : > { %v7483_v45 = vsel %vm1572_vm1, %v9408_v52, %v9407_v44  ;;  %v7491_v10 = vadd.f32 %v7488_v0, %v3677_v12  ;;  %v7499_v27 = vadd.f32 %v7488_v0, %v3678_v49  ;;  %v7502_v43 = vadd.f32 %v7488_v0, %v3679_v53 }
 0x227   : > { %v3554_v62 = vsel %vm1849_vm2, %v3551_v21, %v9409_v5  ;;  %v3675_v60 = vadd.f32 %v3552_v58, %v3367_v1  ;;  %v7505_v51 = vadd.f32 %v7488_v0, %v3674_v26  ;;  %v3606_v15 = vrot.slane %v7388_v29, 2  ;;  %v9413_v5 = vld [vmem:[#allocation16_spill] sm:$0xff] }
 0x228   : > { %v3676_v28 = vadd.f32 %v3554_v62, %v3368_v33  ;;  %v4989_v19 = vmul.f32 -1.442695, %v7491_v10  ;;  %v4991_v30 = vmul.f32 -1.442695, %v7502_v43  ;;  %v7510_v57 = vrot.slane %v1155_v61, 4 }
 0x229   : > { %v7512_v55 = vunpack.c.l.bf16 %v1155_v61  ;;  %v7515_v4 = vadd.f32 %v7488_v0, %v3675_v60  ;;  %v4986_v46 = vmul.f32 -1.442695, %v7505_v51  ;;  %v4990_v41 = vmul.f32 -1.442695, %v7499_v27 }
 0x22a   : > { %v7518_v25 = vadd.f32 %v7488_v0, %v3676_v28  ;;  %5428 = vpow2.f32 %v4989_v19  ;;  %v9410_v59 = vrot.slane %v7040_v11, 4  ;;  %v7527_v16 = vunpack.c.l.bf16 %v7510_v57 }
 0x22b   : > { %v7529_v8 = vunpack.c.h.bf16 %v1155_v61  ;;  %5430 = vpow2.f32 %v4986_v46  ;;  %v4987_v33 = vmul.f32 -1.442695, %v7515_v4  ;;  %v1536_v11 = vmul.f32 %v5760_v37, %v7512_v55 }
 0x22c   : > { %v1288_v18 = vsel %vm1243_vm0, %v9410_v59, %v7510_v57  ;;  %v4988_v34 = vmul.f32 -1.442695, %v7518_v25  ;;  %5432 = vpow2.f32 %v4991_v30  ;;  %v1420_v56 = vmul.f32 %v5765_v42, %v7527_v16 }
 0x22d   : > { %v1366_v50 = vunpack.c.l.bf16 %v1288_v18  ;;  %v1367_v63 = vunpack.c.h.bf16 %v1288_v18  ;;  %5434 = vpow2.f32 %v4987_v33  ;;  %v1537_v3 = vmul.f32 %v5760_v37, %v7529_v8 }
 0x22e   : > { %v1795_v6 = vmul.f32 %v5770_v47, %v7512_v55  ;;  %5436 = vpow2.f32 %v4988_v34  ;;  %v1615_v7 = vrot.slane %v1536_v11, 1  ;;  %v1796_v38 = vmul.f32 %v5770_v47, %v7529_v8 }
 0x22f   : > { %v1418_v13 = vmul.f32 %v5765_v42, %v1366_v50  ;;  %v1419_v31 = vmul.f32 %v5765_v42, %v1367_v63  ;;  %v1616_v48 = vrot.slane %v1537_v3, 1  ;;  %v9412_v1 = vrot.slane %v9411_v40, 4 }
 0x230   : > { %v1920_v12 = vrot.slane %v1795_v6, 2  ;;  %v2264_v49 = vmul.f32 %v5870_v2, %v7527_v16  ;;  %v1921_v44 = vrot.slane %v1796_v38, 2  ;;  %v2381_v60 = vmul.f32 %v5874_v20, %v7512_v55  ;;  %v9417_v38 = vld [vmem:[#allocation17_spill] sm:$0xff] }
 0x231   : > { %v2132_v21 = vsel %vm1243_vm0, %v9412_v1, %v7510_v57  ;;  %v1711_v53 = vadd.f32 %v1615_v7, %v1418_v13  ;;  %v1617_v61 = vsel %vm1572_vm1, %v1615_v7, %v1616_v48  ;;  %v1713_v58 = vadd.f32 %v1616_v48, %v1420_v56  ;;  %v9415_v13 = vld [vmem:[#allocation87_spill] sm:$0xff] }
 0x232   : > { %v2210_v52 = vunpack.c.l.bf16 %v2132_v21  ;;  %v2211_v26 = vunpack.c.h.bf16 %v2132_v21  ;;  %v2312_v62 = vadd.f32 %v2264_v49, %v9413_v5  ;;  %v1712_v28 = vadd.f32 %v1617_v61, %v1419_v31  ;;  %v9419_v49 = vld [vmem:[#allocation88_spill] sm:$0xff] }
 0x233   : > { %v1922_v19 = vsel %vm1849_vm2, %v1920_v12, %v1921_v44  ;;  %v9414_v30 = vrot.slane %v7088_v24, 2  ;;  %v2020_v59 = vadd.f32 %v1920_v12, %v1711_v53  ;;  %v2382_v63 = vmul.f32 %v5874_v20, %v7529_v8  ;;  %v9416_v24 = vld [vmem:[#allocation14_spill] sm:$0xff] }
 0x234   : > { %v5429_v18 = vpop.eup %5428  ;;  %v2262_v34 = vmul.f32 %v5870_v2, %v2210_v52  ;;  %v2263_v50 = vmul.f32 %v5870_v2, %v2211_v26  ;;  %v2021_v11 = vadd.f32 %v1922_v19, %v1712_v28  ;;  %v2458_v6 = vrot.slane %v2381_v60, 1  ;;  %v9418_v12 = vld [vmem:[#allocation78_spill] sm:$0xff]  ;;  %v9420_v52 = vld [vmem:[#allocation31_spill] sm:$0xff] }
 0x235   : > { %v1924_v46 = vsel %vm1849_vm2, %v1921_v44, %v9414_v30  ;;  %v3924_v56 = vadd.f32 1.0, %v5429_v18  ;;  %v2313_v3 = vadd.f32 %v9415_v13, %v2020_v59  ;;  %v5431_v31 = vpop.eup %5430  ;;  %5438 = vpow2.f32 %v4990_v41  ;;  %v9421_v41 = vld [vmem:[#allocation76_spill] sm:$0xff]  ;;  %v7578_v18 = vpop.f32.mrb[17].mxu0 }
 0x236   : > { %v2022_v33 = vadd.f32 %v1924_v46, %v1713_v58  ;;  %v2310_v7 = vadd.f32 %v2262_v34, %v9416_v24  ;;  %v2311_v48 = vadd.f32 %v2263_v50, %v9417_v38  ;;  %v5433_v1 = vpop.eup %5432  ;;  %v3921_v21 = vadd.f32 1.0, %v5431_v31  ;;  %9423 = vst [vmem:[#allocation13_spill] sm:$0xff] %v7578_v18  ;;  %v9424_v50 = vld [vmem:[#allocation84_spill] sm:$0xff]  ;;  %v9474_v18 = vld [vmem:[#allocation26_spill] sm:$0xff] }
 0x237   : > { %v2314_v53 = vadd.f32 %v9419_v49, %v2021_v11  ;;  %v2459_v44 = vrot.slane %v2382_v63, 1  ;;  %v7571_v26 = vadd.f32 1.0, %v9420_v52  ;;  %v5435_v61 = vpop.eup %5434  ;;  %v3926_v58 = vadd.f32 1.0, %v5433_v1  ;;  %v9425_v13 = vld [vmem:[#allocation56_spill] sm:$0xff] }
 0x238   : > { %v7567_v40 = vadd.f32 %v9418_v12, %v2022_v33  ;;  %5440 = vrcp.f32 %v3924_v56  ;;  %v2554_v5 = vadd.f32 %v2458_v6, %v2310_v7  ;;  %v9422_v60 = vrot.slane %v9421_v41, 1  ;;  %v5437_v19 = vpop.eup %5436  ;;  %v9427_v49 = vld [vmem:[#allocation72_spill] sm:$0xff] }
 0x239   : > { %v3922_v30 = vadd.f32 1.0, %v5435_v61  ;;  %5442 = vrcp.f32 %v3921_v21  ;;  %v2460_v46 = vsel %vm1572_vm1, %v2458_v6, %v2459_v44  ;;  %v2556_v59 = vadd.f32 %v2459_v44, %v2312_v62 }
 0x23a   : > { %v7575_v28 = vadd.f32 %v9422_v60, %v2313_v3  ;;  %v3923_v33 = vadd.f32 1.0, %v5437_v19  ;;  %5444 = vrcp.f32 %v3926_v58  ;;  %v2555_v34 = vadd.f32 %v2460_v46, %v2311_v48  ;;  %v9430_v46 = vld [vmem:[#allocation37_spill] sm:$0xff] }
 0x23b   : > { %v7581_v63 = vadd.f32 %v9424_v50, %v2314_v53  ;;  %5446 = vrcp.f32 %v3922_v30  ;;  %v2638_v56 = vmul.f32 %v5821_v35, %v7512_v55  ;;  %v2639_v11 = vmul.f32 %v5821_v35, %v7529_v8  ;;  %v9431_v50 = vld [vmem:[#allocation82_spill] sm:$0xff] }
 0x23c   : > { %v9426_v3 = vrot.slane %v9425_v13, 4  ;;  %5448 = vrcp.f32 %v3923_v33  ;;  %v3106_v24 = vmul.f32 %v9204_v14, %v7527_v16  ;;  %v3224_v48 = vmul.f32 %v5892_v36, %v7512_v55  ;;  %v9428_v16 = vld [vmem:[#allocation23_spill] sm:$0xff] }
 0x23d   : > { %v2760_v7 = vrot.slane %v2638_v56, 2  ;;  %v2761_v38 = vrot.slane %v2639_v11, 2  ;;  %v3225_v12 = vmul.f32 %v5892_v36, %v7529_v8  ;;  %v3480_v53 = vmul.f32 %v7141_v17, %v7512_v55  ;;  %v9432_v11 = vld [vmem:[#allocation90_spill] sm:$0xff] }
 0x23e   : > { %v2974_v62 = vsel %vm1243_vm0, %v9426_v3, %v7510_v57  ;;  %v3154_v57 = vadd.f32 %v3106_v24, %v9427_v49  ;;  %v9429_v52 = vrot.slane %v9428_v16, 2  ;;  %v3300_v41 = vrot.slane %v3224_v48, 1  ;;  %v9434_v3 = vld [vmem:[#allocation91_spill] sm:$0xff]  ;;  %v9435_v24 = vld [vmem:[#allocation45_spill] sm:$0xff] }
 0x23f   : > { %v3052_v6 = vunpack.c.l.bf16 %v2974_v62  ;;  %v3053_v31 = vunpack.c.h.bf16 %v2974_v62  ;;  %v2762_v44 = vsel %vm1849_vm2, %v2760_v7, %v2761_v38  ;;  %v2862_v58 = vadd.f32 %v2760_v7, %v2554_v5  ;;  %v5439_v60 = vpop.eup %5438  ;;  %v9437_v7 = vld [vmem:[#allocation92_spill] sm:$0xff]  ;;  %v9438_v48 = vld [vmem:[#allocation89_spill] sm:$0xff] }
 0x240   : > { %v2764_v61 = vsel %vm1849_vm2, %v2761_v38, %v9429_v52  ;;  %v2863_v19 = vadd.f32 %v2762_v44, %v2555_v34  ;;  %v9433_v13 = vrot.slane %v9432_v11, 2  ;;  %v3481_v5 = vmul.f32 %v7141_v17, %v7529_v8 }
 0x241   : > { %v3104_v1 = vmul.f32 %v9204_v14, %v3052_v6  ;;  %v3105_v21 = vmul.f32 %v9204_v14, %v3053_v31  ;;  %v2864_v30 = vadd.f32 %v2764_v61, %v2556_v59  ;;  %v3155_v62 = vadd.f32 %v9434_v3, %v2862_v58 }
 0x242   : > { %v3607_v55 = vsel %vm1849_vm2, %v9433_v13, %v3606_v15  ;;  %v3301_v6 = vrot.slane %v3225_v12, 1  ;;  %v5441_v31 = vpop.eup %5440  ;;  %v9436_v34 = vrot.slane %v9435_v24, 2  ;;  %v3156_v38 = vadd.f32 %v9437_v7, %v2863_v19  ;;  %v9444_v7 = vld [vmem:[#allocation42_spill] sm:$0xff] }
 0x243   : > { %v3152_v33 = vadd.f32 %v3104_v1, %v9430_v46  ;;  %v3153_v56 = vadd.f32 %v3105_v21, %v9431_v50  ;;  %v3157_v1 = vadd.f32 %v9438_v48, %v2864_v30  ;;  %v5443_v49 = vpop.eup %5442  ;;  %v3925_v44 = vadd.f32 1.0, %v5439_v60  ;;  %v9445_v48 = vld [vmem:[#allocation39_spill] sm:$0xff] }
 0x244   : > { %v3609_v59 = vsel %vm1849_vm2, %v3606_v15, %v9436_v34  ;;  %v3302_v16 = vsel %vm1572_vm1, %v3300_v41, %v3301_v6  ;;  %v3398_v12 = vadd.f32 %v3301_v6, %v3154_v57  ;;  %v9439_v52 = vrot.slane %v7325_v39, 1  ;;  %v5445_v61 = vpop.eup %5444 }
 0x245   : > { %v3396_v21 = vadd.f32 %v3300_v41, %v3152_v33  ;;  %v4065_v58 = vmul.f32 %v5443_v49, %v7505_v51  ;;  %v3397_v46 = vadd.f32 %v3302_v16, %v3153_v56  ;;  %v3400_v29 = vadd.f32 %v7483_v45, %v3156_v38  ;;  %v5447_v50 = vpop.eup %5446  ;;  %v7647_v56 = vpop.f32.mrb[18].mxu0 }
 0x246   : > { %v3399_v8 = vadd.f32 %v9439_v52, %v3155_v62  ;;  %v3600_v15 = vrot.slane %v3480_v53, 2  ;;  %v7629_v19 = vmul.f32 %v5441_v31, %v7491_v10  ;;  %v7632_v30 = vmul.f32 %v5445_v61, %v7502_v43  ;;  %v5449_v39 = vpop.eup %5448  ;;  %v9441_v43 = vld [vmem:[#allocation27_spill] sm:$0xff]  ;;  %9442 = vst [vmem:[#allocation11_spill] sm:$0xff] %v7647_v56  ;;  %v9443_v62 = vld [vmem:[#allocation25_spill] sm:$0xff] }
 0x247   : > { %v9440_v41 = vrot.slane %v7334_v9, 1  ;;  %v3601_v60 = vrot.slane %v3481_v5, 2  ;;  %v4066_v33 = vmul.f32 %v5447_v50, %v7515_v4  ;;  %v5101_v13 = vpack.c.bf16 %v4065_v58, %v4065_v58  ;;  %v2568_v56 = vld [vmem:[#allocation2 + $0xa0] sm:$0x1] }
 0x248   : > { %v4690_v51 = vsel %vm4686_vm3, %v4065_v58, 0.0  ;;  %5450 = vrcp.f32 %v7571_v26  ;;  %v4067_v45 = vmul.f32 %v5449_v39, %v7518_v25  ;;  %v7642_v10 = vpack.c.bf16 %v7632_v30, %v7632_v30 }
 0x249   : > { %v3401_v57 = vadd.f32 %v9440_v41, %v3157_v1  ;;  %v7645_v53 = vadd.f32 %v4690_v51, %v9441_v43  ;;  %v3704_v9 = vadd.f32 %v3600_v15, %v3396_v21  ;;  %5452 = vrcp.f32 %v3925_v44 }
 0x24a   : > { %v5102_v3 = vpack.c.bf16 %v4066_v33, %v4066_v33  ;;  %v4315_v4 = vshrl.u32 %v5101_v13, 16  ;;  %v7650_v6 = vadd.f32 %v9443_v62, %v4066_v33  ;;  %v5103_v5 = vpack.c.bf16 %v4067_v45, %v4067_v45  ;;  %v9449_v62 = vld [vmem:[#allocation47_spill] sm:$0xff] }
 0x24b   : > { %v5104_v25 = vpack.c.bf16 %v7629_v19, %v7629_v19  ;;  %v4736_v26 = vsel %vm1572_vm1, %v4067_v45, 0.0  ;;  %v3602_v31 = vsel %vm1849_vm2, %v3600_v15, %v3601_v60  ;;  %v4351_v34 = vshrl.u32 %v7642_v10, 16 }
 0x24c   : > { %v4320_v24 = vshrl.u32 %v5102_v3, 16  ;;  %v7658_v38 = vadd.f32 %v4736_v26, %v9444_v7  ;;  %v9446_v1 = vrot.slane %v9445_v48, 2  ;;  %v5078_v49 = vrot.slane %v4315_v4, 11  ;;  %v9450_v26 = vld [vmem:[#allocation35_spill] sm:$0xff]  ;;  %v1724_v7 = vld [vmem:[#allocation2 + $0xb8] sm:$0x1] }
 0x24d   : > { %v4323_v44 = vshll.u32 %v5102_v3, 16  ;;  %v4329_v16 = vshrl.u32 %v5103_v5, 16  ;;  %v3705_v52 = vadd.f32 %v3602_v31, %v3397_v46  ;;  %v9447_v50 = vrot.slane %v9432_v11, 2 }
 0x24e   : > { %v3604_v21 = vsel %vm1849_vm2, %v3601_v60, %v9446_v1  ;;  %v4322_v61 = vrot.slane %v4320_v24, 7  ;;  %v3708_v15 = vadd.f32 %v3607_v55, %v3400_v29  ;;  %v4332_v33 = vshll.u32 %v5103_v5, 16 }
 0x24f   : > { %v3706_v58 = vadd.f32 %v3604_v21, %v3398_v12  ;;  %v3707_v41 = vadd.f32 %v9447_v50, %v3399_v8  ;;  %v4331_v39 = vrot.slane %v4329_v16, 7  ;;  %v3709_v13 = vadd.f32 %v3609_v59, %v3401_v57  ;;  %v7699_v21 = vld [vmem:[%s8934_s2] ss:$0 sm:$0xff]  ;;  %v9453_v16 = vld [vmem:[#allocation34_spill] sm:$0xff] }
 0x250   : > { %v7666_v51 = vadd.f32 %v7488_v0, %v3704_v9  ;;  %v4325_v45 = vor.u32 %v4323_v44, %v4322_v61  ;;  %v4327_v43 = vrot.slane %v4322_v61, 4  ;;  %v7669_v60 = vadd.f32 %v7488_v0, %v3705_v52  ;;  %9451 = vst [vmem:[#allocation36_spill] sm:$0xff] %v7699_v21  ;;  %v3413_v61 = vld [vmem:[#allocation2 + $0xb8] sm:$0x1] }
 0x251   : > { %v7672_v46 = vadd.f32 %v7488_v0, %v3706_v58  ;;  %v4334_v12 = vor.u32 %v4332_v33, %v4331_v39  ;;  %v7675_v11 = vadd.f32 %v7488_v0, %v3707_v41  ;;  %v7678_v55 = vadd.f32 %v7488_v0, %v3708_v15  ;;  %v9454_v15 = vld [vmem:[#allocation52_spill] sm:$0xff]  ;;  %v9455_v39 = vld [vmem:[#allocation9_spill] sm:$0xff] }
 0x252   : > { %v7681_v59 = vadd.f32 %v7488_v0, %v3709_v13  ;;  %v5451_v8 = vpop.eup %5450  ;;  %v4326_v57 = vsel %vm6842_vm6, %v5078_v49, %v4325_v45  ;;  %v5016_v9 = vmul.f32 -1.442695, %v7666_v51  ;;  %v5017_v3 = vmul.f32 -1.442695, %v7669_v60  ;;  %v9452_v49 = vld [vmem:[#allocation30_spill] sm:$0xff] }
 0x253   : > { %v5018_v4 = vmul.f32 -1.442695, %v7672_v46  ;;  %v2718_v5 = vrot.slane %v9449_v62, 2  ;;  %v2768_v31 = vrot.slane %v9450_v26, 2  ;;  %v4335_v24 = vsel %vm6842_vm6, %v4327_v43, %v4334_v12  ;;  %4658 = vst [vmem:[%s6850_s14 + $0x10] sm:$0xf] %v4326_v57  ;;  %v5453_v48 = vpop.eup %5452 }
 0x254   : > { %v5019_v0 = vmul.f32 -1.442695, %v7675_v11  ;;  %4659 = vst [vmem:[%s6850_s14 + $0x14] sm:$0xf] %v4335_v24  ;;  %5454 = vpow2.f32 %v5016_v9  ;;  %v5020_v1 = vmul.f32 -1.442695, %v7678_v55  ;;  %v7703_v44 = vadd.f32 %v7699_v21, %v9452_v49 }
 0x255   : > { %v7707_v52 = vadd.f32 %v7699_v21, %v9453_v16  ;;  %v7709_v58 = vshrl.u32 %v5104_v25, 16  ;;  %v4353_v50 = vrot.slane %v4351_v34, 7  ;;  %5456 = vpow2.f32 %v5017_v3  ;;  %v9458_v45 = vld [vmem:[#allocation6_spill] sm:$0xff]  ;;  %v9459_v34 = vld [vmem:[#allocation79_spill] sm:$0xff]  ;;  %v9461_v49 = vld [vmem:[#allocation21_spill] sm:$0xff] }
 0x256   : > { %v5021_v41 = vmul.f32 -1.442695, %v7681_v59  ;;  %v9456_v33 = vrot.slane %v9455_v39, 4  ;;  %5458 = vpow2.f32 %v5018_v4  ;;  %v4954_v43 = vmul.f32 -1.442695, %v9458_v45 }
 0x257   : > { %v1740_v12 = vunpack.c.l.bf16 %v1724_v7  ;;  %v4354_v57 = vshll.u32 %v7642_v10, 16  ;;  %5460 = vpow2.f32 %v5019_v0  ;;  %v4974_v25 = vmul.f32 -1.442695, %v7703_v44  ;;  %v7725_v24 = vld [vmem:[#allocation2 + $0xa8] sm:$0x80] }
 0x258   : > { %v7716_v13 = vsel %vm1243_vm0, %v9456_v33, %v9454_v15  ;;  %v3429_v9 = vunpack.c.l.bf16 %v3413_v61  ;;  %v9460_v3 = vrot.slane %v9459_v34, 2  ;;  %5462 = vpow2.f32 %v5020_v1  ;;  %v9462_v7 = vld [vmem:[#allocation22_spill] sm:$0xff]  ;;  %v9464_v1 = vld [vmem:[#allocation40_spill] sm:$0xff] }
 0x259   : > { %9457 = vst [vmem:[#allocation32_spill] sm:$0xff] %v7716_v13  ;;  %v4957_v26 = vmul.f32 -1.442695, %v7707_v52  ;;  %v7729_v4 = vadd.f32 %v7699_v21, %v9461_v49  ;;  %v9463_v16 = vrot.slane %v9462_v7, 2  ;;  %v7737_v61 = vor.u32 %v4354_v57, %v4353_v50  ;;  %v7745_v34 = vld [vmem:[#allocation2 + $0xa8] sm:$0x80] }
 0x25a   : > { %v2719_v62 = vsel %vm1849_vm2, %v9460_v3, %v2718_v5  ;;  %5464 = vpow2.f32 %v5021_v41  ;;  %v1723_v5 = vld [vmem:[#allocation2 + $0xa0] sm:$0x1]  ;;  %v7740_v39 = vmul.f32 %v5451_v8, %v9464_v1  ;;  %v7743_v33 = vmul.f32 %v5770_v47, %v1740_v12  ;;  %v7747_v3 = vld [vmem:[#allocation2 + $0xa8] sm:$0x80]  ;;  %v7754_v41 = vld [vmem:[#allocation2 + $0x90] sm:$0x80] }
 0x25b   : > { %v7734_v10 = vsel %vm1849_vm2, %v9463_v16, %v2768_v31  ;;  %5466 = vpow2.f32 %v4954_v43  ;;  %v4955_v31 = vmul.f32 -1.442695, %v7729_v4  ;;  %v7752_v50 = vmul.f32 %v7141_v17, %v3429_v9  ;;  %v9465_v8 = vld [vmem:[#allocation69_spill] sm:$0xff]  ;;  %v7759_v12 = vpop.f32.mrb[19].mxu0  ;;  %v7761_v16 = vld [vmem:[#allocation2 + $0x90] sm:$0x80] }
 0x25c   : > { %5468 = vpow2.f32 %v4974_v25  ;;  %v9466_v43 = vrot.slane %v9465_v8, 1  ;;  %9467 = vst [vmem:[#allocation28_spill] sm:$0xff] %v7759_v12  ;;  %v1739_v7 = vunpack.c.l.bf16 %v1723_v5  ;;  %v9468_v1 = vld [vmem:[#allocation77_spill] sm:$0xff] }
 0x25d   : > { %5470 = vpow2.f32 %v4957_v26  ;;  %v9469_v25 = vrot.slane %v9468_v1, 2  ;;  %v9470_v9 = vld [vmem:[#allocation33_spill] sm:$0xff]  ;;  %v4069_v1 = vmul.f32 %v5453_v48, %v7499_v27 }
 0x25e   : > { %v2529_v57 = vadd.f32 %v9466_v43, %v7429_v23  ;;  %v7770_v49 = vadd.f32 %v9470_v9, %v7441_v54  ;;  %5472 = vpow2.f32 %v4955_v31  ;;  %v5455_v26 = vpop.eup %5454  ;;  %v7789_v27 = vmul.f32 %v5770_v47, %v1739_v7  ;;  %v3412_v48 = vld [vmem:[#allocation2 + $0xa0] sm:$0x1]  ;;  %v2578_v43 = vld [vmem:[#allocation2 + $0x190] sm:$0x1] }
 0x25f   : > { %v7766_v0 = vadd.f32 %v9469_v25, %v7438_v32  ;;  %v4692_v32 = vsel %vm4686_vm3, %v7629_v19, 0.0  ;;  %v5457_v25 = vpop.eup %5456  ;;  %v3951_v54 = vadd.f32 1.0, %v5455_v26  ;;  %v5105_v19 = vpack.c.bf16 %v4069_v1, %v4069_v1 }
 0x260   : > { %v7774_v23 = vadd.f32 %v2719_v62, %v2529_v57  ;;  %v7783_v8 = vadd.f32 %v4692_v32, %v7645_v53  ;;  %v4738_v62 = vsel %vm1572_vm1, %v7632_v30, 0.0  ;;  %v5459_v31 = vpop.eup %5458  ;;  %v3952_v57 = vadd.f32 1.0, %v5457_v25 }
 0x261   : > { %v5461_v5 = vpop.eup %5460  ;;  %v3953_v26 = vadd.f32 1.0, %v5459_v31  ;;  %5474 = vrcp.f32 %v3951_v54  ;;  %v7792_v9 = vadd.f32 %v7650_v6, %v4069_v1  ;;  %v7795_v53 = vadd.f32 %v4738_v62, %v7658_v38 }
 0x262   : > { %9471 = vst [vmem:[#allocation46_spill] sm:$0xff] %v7783_v8  ;;  %v5463_v32 = vpop.eup %5462  ;;  %v3954_v30 = vadd.f32 1.0, %v5461_v5  ;;  %5476 = vrcp.f32 %v3952_v57  ;;  %v2584_v25 = vunpack.c.l.bf16 %v2568_v56  ;;  %v4342_v12 = vshrl.u32 %v5105_v19, 16  ;;  %v9475_v56 = vld [vmem:[#allocation18_spill] sm:$0xff] }
 0x263   : > { %9472 = vst [vmem:[#allocation80_spill] sm:$0xff] %v7792_v9  ;;  %9473 = vst [vmem:[#allocation16_spill] sm:$0xff] %v7795_v53  ;;  %v3955_v7 = vadd.f32 1.0, %v5463_v32  ;;  %5478 = vrcp.f32 %v3953_v26  ;;  %v3428_v8 = vunpack.c.l.bf16 %v3412_v48  ;;  %v7799_v31 = vadd.f32 %v7699_v21, %v9474_v18 }
 0x264   : > { %v5465_v15 = vpop.eup %5464  ;;  %5480 = vrcp.f32 %v3954_v30  ;;  %v4344_v1 = vrot.slane %v4342_v12, 7  ;;  %v4345_v38 = vshll.u32 %v5105_v19, 16  ;;  %v9476_v57 = vrot.slane %v9475_v56, 1  ;;  %v7815_v56 = vld [vmem:[#allocation2 + $0x90] sm:$0x80] }
 0x265   : > { %v5467_v54 = vpop.eup %5466  ;;  %v3956_v6 = vadd.f32 1.0, %v5465_v15  ;;  %5482 = vrcp.f32 %v3955_v7  ;;  %v2594_v9 = vunpack.c.l.bf16 %v2578_v43  ;;  %v7805_v48 = vmul.f32 %v5821_v35, %v2584_v25  ;;  %v9477_v7 = vld [vmem:[#allocation38_spill] sm:$0xff]  ;;  %v2902_v43 = vld [vmem:[#allocation2 + $0x198] sm:$0x80] }
 0x266   : > { %v5469_v62 = vpop.eup %5468  ;;  %v865_v5 = vadd.f32 1.0, %v5467_v54  ;;  %v2559_v53 = vadd.f32 %v9476_v57, %v7567_v40  ;;  %v4347_v18 = vor.u32 %v4345_v38, %v4344_v1  ;;  %v4349_v15 = vrot.slane %v4344_v1, 4 }
 0x267   : > { %v5471_v32 = vpop.eup %5470  ;;  %5484 = vrcp.f32 %v3956_v6  ;;  %v885_v12 = vadd.f32 1.0, %v5469_v62  ;;  %v7808_v30 = vmul.f32 %v7141_v17, %v3428_v8  ;;  %v9478_v54 = vrot.slane %v9477_v7, 2  ;;  %v7830_v8 = vld [vmem:[#allocation2 + $0x180] sm:$0x80]  ;;  %v9481_v62 = vld [vmem:[#allocation86_spill] sm:$0xff] }
 0x268   : > { %v5473_v26 = vpop.eup %5472  ;;  %v868_v19 = vadd.f32 1.0, %v5471_v32  ;;  %v9480_v25 = vrot.slane %v7709_v58, 11  ;;  %v4357_v38 = vsel %vm6842_vm6, %v4349_v15, %v7737_v61  ;;  %v7825_v17 = vmul.f32 %v5821_v35, %v2594_v9  ;;  %v7840_v32 = vld [vmem:[#allocation2 + $0x180] sm:$0x80] }
 0x269   : > { %v7813_v40 = vadd.f32 %v9478_v54, %v7575_v28  ;;  %v866_v6 = vadd.f32 1.0, %v5473_v26  ;;  %5486 = vrcp.f32 %v865_v5  ;;  %4661 = vst [vmem:[%s6850_s14 + $0x1c] sm:$0xf] %v4357_v38  ;;  %v4975_v28 = vmul.f32 -1.442695, %v7799_v31  ;;  %v7842_v5 = vld [vmem:[#allocation2 + $0x8] sm:$0xff] }
 0x26a   : > { %v4348_v1 = vsel %vm6842_vm6, %v9480_v25, %v4347_v18  ;;  %v7834_v58 = vadd.f32 %v9481_v62, %v7581_v63  ;;  %v7837_v57 = vadd.f32 %v7734_v10, %v2559_v53  ;;  %5488 = vrcp.f32 %v868_v19  ;;  %9483 = vst [vmem:[#allocation17_spill] sm:$0xff] %v7842_v5 }
 0x26b   : > { %9479 = vst [vmem:[#allocation87_spill] sm:$0xff] %v7813_v40  ;;  %4660 = vst [vmem:[%s6850_s14 + $0x18] sm:$0xf] %v4348_v1  ;;  %v2981_v9 = vrot.slane %v2902_v43, 4  ;;  %v2982_v18 = vrot.slane %v7842_v5, 4  ;;  %v5475_v15 = vpop.eup %5474  ;;  %5490 = vrcp.f32 %v866_v6  ;;  %v9061_v54 = vunpack.c.l.bf16 %v7842_v5 }
 0x26c   : > { %9482 = vst [vmem:[#allocation14_spill] sm:$0xff] %v7834_v58  ;;  %v5477_v10 = vpop.eup %5476  ;;  %v7849_v53 = vmul.f32 %v5475_v15, %v7666_v51  ;;  %5492 = vrcp.f32 %v885_v12  ;;  %v7853_v43 = vld [vmem:[#allocation2 + $0x190] sm:$0x1] }
 0x26d   : > { %9485 = vst [vmem:[#allocation88_spill] sm:$0xff] %v7853_v43  ;;  %v5479_v25 = vpop.eup %5478  ;;  %v7856_v6 = vmul.f32 %v5477_v10, %v7669_v60  ;;  %5494 = vpow2.f32 %v4975_v28  ;;  %v2983_v38 = vsel %vm1243_vm0, %v2981_v9, %v2982_v18  ;;  %v3063_v15 = vunpack.c.l.bf16 %v2982_v18 }
 0x26e   : > { %9484 = vst [vmem:[#allocation78_spill] sm:$0xff] %v7849_v53  ;;  %v5481_v62 = vpop.eup %5480  ;;  %v7861_v51 = vmul.f32 %v5479_v25, %v7672_v46  ;;  %v5131_v12 = vpack.c.bf16 %v7849_v53, %v7849_v53  ;;  %v3061_v1 = vunpack.c.l.bf16 %v2983_v38  ;;  %v3062_v63 = vunpack.c.h.bf16 %v2983_v38 }
 0x26f   : > { %9486 = vst [vmem:[#allocation31_spill] sm:$0xff] %v7856_v6  ;;  %v5483_v19 = vpop.eup %5482  ;;  %v7867_v7 = vmul.f32 %v5481_v62, %v7675_v11  ;;  %v5132_v60 = vpack.c.bf16 %v7856_v6, %v7856_v6 }
 0x270   : > { %9487 = vst [vmem:[#allocation76_spill] sm:$0xff] %v7861_v51  ;;  %v7874_v46 = vmul.f32 %v5483_v19, %v7678_v55  ;;  %v5133_v18 = vpack.c.bf16 %v7861_v51, %v7861_v51  ;;  %v4535_v25 = vshrl.u32 %v5131_v12, 16  ;;  %v7886_v55 = vmul.f32 %v9204_v14, %v3063_v15 }
 0x271   : > { %9488 = vst [vmem:[#allocation84_spill] sm:$0xff] %v7867_v7  ;;  %v5485_v10 = vpop.eup %5484  ;;  %v5134_v11 = vpack.c.bf16 %v7867_v7, %v7867_v7  ;;  %v4540_v62 = vshrl.u32 %v5132_v60, 16  ;;  %v7891_v19 = vmul.f32 %v5892_v36, %v9061_v54  ;;  %v4543_v28 = vshll.u32 %v5132_v60, 16 }
 0x272   : > { %9489 = vst [vmem:[#allocation56_spill] sm:$0xff] %v7874_v46  ;;  %v7879_v26 = vmul.f32 %v5485_v10, %v7681_v59  ;;  %v5135_v9 = vpack.c.bf16 %v7874_v46, %v7874_v46  ;;  %v4549_v61 = vshrl.u32 %v5133_v18, 16  ;;  %9491 = vst [vmem:[#allocation23_spill] sm:$0xff] %v7886_v55  ;;  %v5088_v6 = vrot.slane %v4535_v25, 11 }
 0x273   : > { %9492 = vst [vmem:[#allocation37_spill] sm:$0xff] %v7891_v19  ;;  %v5487_v12 = vpop.eup %5486  ;;  %v4542_v10 = vrot.slane %v4540_v62, 7  ;;  %v4557_v51 = vshrl.u32 %v5134_v11, 16  ;;  %v4552_v46 = vshll.u32 %v5133_v18, 16 }
 0x274   : > { %9490 = vst [vmem:[#allocation72_spill] sm:$0xff] %v7879_v26  ;;  %v5136_v59 = vpack.c.bf16 %v7879_v26, %v7879_v26  ;;  %v5489_v38 = vpop.eup %5488  ;;  %v4551_v7 = vrot.slane %v4549_v61, 7  ;;  %v4562_v53 = vshrl.u32 %v5135_v9, 16  ;;  %v4565_v22 = vshll.u32 %v5135_v9, 16 }
 0x275   : > { %v5491_v13 = vpop.eup %5490  ;;  %v4545_v15 = vor.u32 %v4543_v28, %v4542_v10  ;;  %v4547_v21 = vrot.slane %v4542_v10, 4  ;;  %v5089_v58 = vrot.slane %v4557_v51, 11  ;;  %v973_v61 = vmul.f32 %v5487_v12, %v9458_v45 }
 0x276   : > { %v4571_v55 = vshrl.u32 %v5136_v59, 16  ;;  %v5493_v54 = vpop.eup %5492  ;;  %v4554_v43 = vor.u32 %v4552_v46, %v4551_v7  ;;  %v4564_v40 = vrot.slane %v4562_v53, 7  ;;  %v4574_v26 = vshll.u32 %v5136_v59, 16 }
 0x277   : > { %v5495_v62 = vpop.eup %5494  ;;  %v4546_v60 = vsel %vm6842_vm6, %v5088_v6, %v4545_v15  ;;  %v976_v18 = vmul.f32 %v5489_v38, %v7707_v52  ;;  %v974_v7 = vmul.f32 %v5491_v13, %v7729_v4  ;;  %v7906_v6 = vmul.f32 %v9204_v14, %v3061_v1 }
 0x278   : > { %v4573_v25 = vrot.slane %v4571_v55, 7  ;;  %v4555_v28 = vsel %vm6842_vm6, %v4547_v21, %v4554_v43  ;;  %v4567_v9 = vor.u32 %v4565_v22, %v4564_v40  ;;  %v4569_v11 = vrot.slane %v4564_v40, 4  ;;  %4678 = vst [vmem:[%s6850_s14 + $0x60] sm:$0xf] %v4546_v60 }
 0x279   : > { %4679 = vst [vmem:[%s6850_s14 + $0x64] sm:$0xf] %v4555_v28  ;;  %v1148_v51 = vpack.c.bf16 %v976_v18, %v7740_v39  ;;  %9493 = vst [vmem:[#allocation82_spill] sm:$0xff] %v7906_v6  ;;  %v7909_v45 = vmul.f32 %v9204_v14, %v3062_v63  ;;  %v7914_v22 = vmul.f32 %v5493_v54, %v7703_v44  ;;  %v886_v40 = vadd.f32 1.0, %v5495_v62 }
 0x27a   : > { %v4576_v53 = vor.u32 %v4574_v26, %v4573_v25  ;;  %v4568_v52 = vsel %vm6842_vm6, %v5089_v58, %v4567_v9  ;;  %v1147_v21 = vpack.c.bf16 %v974_v7, %v973_v61  ;;  %v9495_v1 = vunpack.c.h.bf16 %v7842_v5 }
 0x27b   : > { %9494 = vst [vmem:[#allocation90_spill] sm:$0xff] %v7909_v45  ;;  %4680 = vst [vmem:[%s6850_s14 + $0x68] sm:$0xf] %v4568_v52  ;;  %v1266_v4 = vrot.slane %v1148_v51, 4  ;;  %v1486_v39 = vunpack.c.l.bf16 %v1148_v51  ;;  %v1487_v26 = vunpack.c.h.bf16 %v1148_v51  ;;  %v9496_v54 = vrot.slane %v7725_v24, 4 }
 0x27c   : > { %v4577_v13 = vsel %vm6842_vm6, %v4569_v11, %v4576_v53  ;;  %v7920_v43 = vrot.slane %v1147_v21, 4  ;;  %v7922_v63 = vunpack.c.l.bf16 %v1147_v21  ;;  %v7927_v58 = vmul.f32 %v5892_v36, %v9495_v1 }
 0x27d   : > { %4681 = vst [vmem:[%s6850_s14 + $0x6c] sm:$0xf] %v4577_v13  ;;  %v1267_v46 = vsel %vm1243_vm0, %v9496_v54, %v1266_v4  ;;  %v1347_v55 = vunpack.c.l.bf16 %v1266_v4  ;;  %v1522_v12 = vmul.f32 %v5760_v37, %v1486_v39  ;;  %v1523_v59 = vmul.f32 %v5760_v37, %v1487_v26 }
 0x27e   : > { %v1345_v10 = vunpack.c.l.bf16 %v1267_v46  ;;  %v1346_v38 = vunpack.c.h.bf16 %v1267_v46  ;;  %v1774_v15 = vmul.f32 %v5770_v47, %v1486_v39  ;;  %v1775_v62 = vmul.f32 %v5770_v47, %v1487_v26 }
 0x27f   : > { %v1399_v60 = vmul.f32 %v5765_v42, %v1347_v55  ;;  %v1594_v25 = vrot.slane %v1522_v12, 1  ;;  %v1595_v61 = vrot.slane %v1523_v59, 1  ;;  %v9497_v18 = vrot.slane %v7745_v34, 4 }
 0x280   : > { %v1397_v28 = vmul.f32 %v5765_v42, %v1345_v10  ;;  %v1398_v9 = vmul.f32 %v5765_v42, %v1346_v38  ;;  %v1885_v11 = vrot.slane %v1774_v15, 2  ;;  %v1886_v7 = vrot.slane %v1775_v62, 2 }
 0x281   : > { %v2111_v24 = vsel %vm1243_vm0, %v9497_v18, %v1266_v4  ;;  %v1596_v53 = vsel %vm1572_vm1, %v1594_v25, %v1595_v61  ;;  %v1692_v51 = vadd.f32 %v1595_v61, %v1399_v60  ;;  %v9498_v12 = vrot.slane %v7743_v33, 2 }
 0x282   : > { %v2189_v52 = vunpack.c.l.bf16 %v2111_v24  ;;  %v2190_v13 = vunpack.c.h.bf16 %v2111_v24  ;;  %v1690_v1 = vadd.f32 %v1594_v25, %v1397_v28  ;;  %v1691_v54 = vadd.f32 %v1596_v53, %v1398_v9 }
 0x283   : > { %v1887_v46 = vsel %vm1849_vm2, %v1885_v11, %v1886_v7  ;;  %v1889_v34 = vsel %vm1849_vm2, %v1886_v7, %v9498_v12  ;;  %v7953_v38 = vunpack.c.h.bf16 %v1147_v21  ;;  %5496 = vrcp.f32 %v886_v40 }
 0x284   : > { %v7948_v59 = vadd.f32 %v1889_v34, %v1692_v51  ;;  %v7951_v10 = vmul.f32 %v5870_v2, %v2189_v52  ;;  %v7955_v15 = vadd.f32 %v1885_v11, %v1690_v1  ;;  %v7957_v62 = vadd.f32 %v1887_v46, %v1691_v54  ;;  %v8001_v1 = vld [vmem:[%s8935_s3 + $0x8] ss:$0 sm:$0xff] }
 0x285   : > { %v7960_v60 = vmul.f32 %v5874_v20, %v1486_v39  ;;  %v7963_v25 = vmul.f32 %v5874_v20, %v1487_v26  ;;  %v7966_v33 = vmul.f32 %v5870_v2, %v2190_v13  ;;  %v7969_v61 = vmul.f32 %v5821_v35, %v1486_v39 }
 0x286   : > { %9499 = vst [vmem:[#allocation91_spill] sm:$0xff] %v7948_v59  ;;  %9500 = vst [vmem:[#allocation45_spill] sm:$0xff] %v7955_v15  ;;  %v7972_v21 = vmul.f32 %v5821_v35, %v1487_v26  ;;  %v9505_v40 = vrot.slane %v7747_v3, 4  ;;  %v7982_v51 = vmul.f32 %v5892_v36, %v1486_v39  ;;  %v7985_v52 = vmul.f32 %v5892_v36, %v1487_v26 }
 0x287   : > { %9501 = vst [vmem:[#allocation92_spill] sm:$0xff] %v7957_v62  ;;  %9502 = vst [vmem:[#allocation89_spill] sm:$0xff] %v7963_v25  ;;  %v9067_v24 = vrot.slane %v7960_v60, 1  ;;  %v9064_v28 = vrot.slane %v7963_v25, 1  ;;  %v9066_v7 = vrot.slane %v7969_v61, 2  ;;  %v2243_v3 = vmul.f32 %v5870_v2, %v1347_v55 }
 0x288   : > { %9503 = vst [vmem:[#allocation27_spill] sm:$0xff] %v7969_v61  ;;  %9504 = vst [vmem:[#allocation25_spill] sm:$0xff] %v7972_v21  ;;  %v2953_v18 = vsel %vm1243_vm0, %v9505_v40, %v1266_v4  ;;  %v9065_v53 = vrot.slane %v7972_v21, 2  ;;  %v7996_v13 = vmul.f32 %v9204_v14, %v1347_v55  ;;  %v8004_v54 = vmul.f32 %v8001_v1, %v1486_v39 }
 0x289   : > { %v3031_v9 = vunpack.c.l.bf16 %v2953_v18  ;;  %v3032_v11 = vunpack.c.h.bf16 %v2953_v18  ;;  %v7993_v4 = vsel %vm1572_vm1, %v9067_v24, %v9064_v28  ;;  %v8019_v40 = vmul.f32 %v8001_v1, %v1487_v26 }
 0x28a   : > { %v8011_v46 = vsel %vm1849_vm2, %v9066_v7, %v9065_v53  ;;  %v9507_v18 = vrot.slane %v7754_v41, 4  ;;  %v1344_v53 = vunpack.c.l.bf16 %v7920_v43  ;;  %v1520_v24 = vmul.f32 %v5760_v37, %v7922_v63 }
 0x28b   : > { %9506 = vst [vmem:[#allocation42_spill] sm:$0xff] %v8011_v46  ;;  %v8014_v12 = vmul.f32 %v9204_v14, %v3031_v9  ;;  %v8028_v7 = vmul.f32 %v9204_v14, %v3032_v11  ;;  %v1521_v39 = vmul.f32 %v5760_v37, %v7953_v38  ;;  %v1771_v41 = vmul.f32 %v5770_v47, %v7922_v63 }
 0x28c   : > { %v1264_v28 = vsel %vm1243_vm0, %v9507_v18, %v7920_v43  ;;  %v1396_v55 = vmul.f32 %v5765_v42, %v1344_v53  ;;  %v1772_v59 = vmul.f32 %v5770_v47, %v7953_v38  ;;  %v9508_v26 = vrot.slane %v7985_v52, 1 }
 0x28d   : > { %v1342_v9 = vunpack.c.l.bf16 %v1264_v28  ;;  %v1343_v44 = vunpack.c.h.bf16 %v1264_v28  ;;  %v8038_v18 = vpop.eup %5496  ;;  %v1591_v28 = vrot.slane %v1520_v24, 1  ;;  %v9509_v62 = vrot.slane %v7982_v51, 1 }
 0x28e   : > { %v9510_v37 = vrot.slane %v8019_v40, 2  ;;  %v9511_v46 = vrot.slane %v8004_v54, 2  ;;  %v9512_v47 = vrot.slane %v7761_v16, 4  ;;  %v2240_v25 = vmul.f32 %v5870_v2, %v1344_v53 }
 0x28f   : > { %v1394_v11 = vmul.f32 %v5765_v42, %v1342_v9  ;;  %v1395_v34 = vmul.f32 %v5765_v42, %v1343_v44  ;;  %v8049_v15 = vsel %vm1572_vm1, %v9509_v62, %v9508_v26  ;;  %v1592_v9 = vrot.slane %v1521_v39, 1 }
 0x290   : > { %v8056_v21 = vsel %vm1849_vm2, %v9511_v46, %v9510_v37  ;;  %v1880_v44 = vrot.slane %v1771_v41, 2  ;;  %v1881_v42 = vrot.slane %v1772_v59, 2  ;;  %v2108_v61 = vsel %vm1243_vm0, %v9512_v47, %v7920_v43 }
 0x291   : > { %v1687_v24 = vadd.f32 %v1591_v28, %v1394_v11  ;;  %v1593_v62 = vsel %vm1572_vm1, %v1591_v28, %v1592_v9  ;;  %v1689_v26 = vadd.f32 %v1592_v9, %v1396_v55  ;;  %v2186_v29 = vunpack.c.l.bf16 %v2108_v61  ;;  %v9514_v11 = vld [vmem:[#allocation58_spill] sm:$0xff] }
 0x292   : > { %v2187_v5 = vunpack.c.h.bf16 %v2108_v61  ;;  %v1688_v19 = vadd.f32 %v1593_v62, %v1395_v34  ;;  %v1882_v37 = vsel %vm1849_vm2, %v1880_v44, %v1881_v42  ;;  %v9513_v46 = vrot.slane %v7789_v27, 2  ;;  %v9515_v27 = vld [vmem:[#allocation54_spill] sm:$0xff] }
 0x293   : > { %v1996_v59 = vadd.f32 %v1880_v44, %v1687_v24  ;;  %v2238_v16 = vmul.f32 %v5870_v2, %v2186_v29  ;;  %v2288_v45 = vadd.f32 %v2240_v25, %v9514_v11  ;;  %v2365_v61 = vmul.f32 %v5874_v20, %v7922_v63 }
 0x294   : > { %v1884_v39 = vsel %vm1849_vm2, %v1881_v42, %v9513_v46  ;;  %v2239_v47 = vmul.f32 %v5870_v2, %v2187_v5  ;;  %v1997_v6 = vadd.f32 %v1882_v37, %v1688_v19  ;;  %v2366_v34 = vmul.f32 %v5874_v20, %v7953_v38  ;;  %v9516_v42 = vld [vmem:[#allocation41_spill] sm:$0xff] }
 0x295   : > { %v1998_v41 = vadd.f32 %v1884_v39, %v1689_v26  ;;  %v2289_v55 = vadd.f32 %v7951_v10, %v1996_v59  ;;  %v2286_v28 = vadd.f32 %v2238_v16, %v9515_v27  ;;  %v2614_v29 = vmul.f32 %v5821_v35, %v7922_v63 }
 0x296   : > { %v2287_v9 = vadd.f32 %v2239_v47, %v9516_v42  ;;  %v2290_v5 = vadd.f32 %v7966_v33, %v1997_v6  ;;  %v2434_v19 = vrot.slane %v2365_v61, 1  ;;  %v2435_v25 = vrot.slane %v2366_v34, 1 }
 0x297   : > { %v8078_v44 = vadd.f32 %v2243_v3, %v1998_v41  ;;  %v9517_v10 = vrot.slane %v7960_v60, 1  ;;  %v2615_v62 = vmul.f32 %v5821_v35, %v7953_v38  ;;  %v2720_v26 = vrot.slane %v2614_v29, 2 }
 0x298   : > { %v9518_v37 = vrot.slane %v7815_v56, 4  ;;  %v3082_v46 = vmul.f32 %v9204_v14, %v1344_v53  ;;  %v2436_v39 = vsel %vm1572_vm1, %v2434_v19, %v2435_v25  ;;  %v2530_v6 = vadd.f32 %v2434_v19, %v2286_v28 }
 0x299   : > { %v8085_v24 = vadd.f32 %v9517_v10, %v2289_v55  ;;  %v2532_v33 = vadd.f32 %v2435_v25, %v2288_v45  ;;  %v8096_v59 = vadd.f32 %v7993_v4, %v2290_v5  ;;  %v2531_v60 = vadd.f32 %v2436_v39, %v2287_v9 }
 0x29a   : > { %v2950_v3 = vsel %vm1243_vm0, %v9518_v37, %v7920_v43  ;;  %v2721_v41 = vrot.slane %v2615_v62, 2  ;;  %v2838_v11 = vadd.f32 %v2720_v26, %v2530_v6  ;;  %v3130_v55 = vadd.f32 %v3082_v46, %v7774_v23 }
 0x29b   : > { %v3028_v16 = vunpack.c.l.bf16 %v2950_v3  ;;  %v3029_v47 = vunpack.c.h.bf16 %v2950_v3  ;;  %v3208_v56 = vmul.f32 %v5892_v36, %v7922_v63  ;;  %v3209_v43 = vmul.f32 %v5892_v36, %v7953_v38 }
 0x29c   : > { %v2722_v53 = vsel %vm1849_vm2, %v2720_v26, %v2721_v41  ;;  %v9519_v45 = vrot.slane %v7805_v48, 2  ;;  %v3131_v23 = vadd.f32 %v8014_v12, %v2838_v11  ;;  %v3456_v19 = vmul.f32 %v8001_v1, %v7922_v63 }
 0x29d   : > { %v3080_v61 = vmul.f32 %v9204_v14, %v3028_v16  ;;  %v3081_v34 = vmul.f32 %v9204_v14, %v3029_v47  ;;  %v2839_v27 = vadd.f32 %v2722_v53, %v2531_v60  ;;  %v3276_v42 = vrot.slane %v3208_v56, 1 }
 0x29e   : > { %v2724_v4 = vsel %vm1849_vm2, %v2721_v41, %v9519_v45  ;;  %v3277_v5 = vrot.slane %v3209_v43, 1  ;;  %v9520_v10 = vrot.slane %v7982_v51, 1  ;;  %v3457_v26 = vmul.f32 %v8001_v1, %v7953_v38 }
 0x29f   : > { %v2840_v28 = vadd.f32 %v2724_v4, %v2532_v33  ;;  %v3128_v9 = vadd.f32 %v3080_v61, %v7766_v0  ;;  %v3129_v29 = vadd.f32 %v3081_v34, %v7770_v49  ;;  %v3132_v48 = vadd.f32 %v8028_v7, %v2839_v27 }
 0x2a0   : > { %v3375_v62 = vadd.f32 %v9520_v10, %v3131_v23  ;;  %v3278_v12 = vsel %vm1572_vm1, %v3276_v42, %v3277_v5  ;;  %v3374_v0 = vadd.f32 %v3277_v5, %v3130_v55  ;;  %v3560_v3 = vrot.slane %v3456_v19, 2  ;;  %v8141_v55 = vld [vmem:[%s8936_s4] ss:$0 sm:$0xff] }
 0x2a1   : > { %v3133_v25 = vadd.f32 %v7996_v13, %v2840_v28  ;;  %v3372_v37 = vadd.f32 %v3276_v42, %v3128_v9  ;;  %v3373_v49 = vadd.f32 %v3278_v12, %v3129_v29  ;;  %v3376_v46 = vadd.f32 %v8049_v15, %v3132_v48 }
 0x2a2   : > { %v9521_v63 = vrot.slane %v7985_v52, 1  ;;  %v3561_v7 = vrot.slane %v3457_v26, 2  ;;  %v9522_v13 = vrot.slane %v7752_v50, 2  ;;  %v9523_v51 = vrot.slane %v8019_v40, 2 }
 0x2a3   : > { %v3680_v33 = vadd.f32 %v3560_v3, %v3372_v37  ;;  %v9524_v38 = vrot.slane %v8004_v54, 2  ;;  %v994_v41 = vmul.f32 %v8038_v18, %v7799_v31  ;;  %v9525_v15 = vrot.slane %v7808_v30, 2 }
 0x2a4   : > { %v3377_v39 = vadd.f32 %v9521_v63, %v3133_v25  ;;  %v3569_v6 = vsel %vm1849_vm2, %v9523_v51, %v9522_v13  ;;  %v3562_v16 = vsel %vm1849_vm2, %v3560_v3, %v3561_v7  ;;  %v3684_v47 = vadd.f32 %v8056_v21, %v3376_v46  ;;  %v9527_v3 = vld [vmem:[#allocation74_spill] sm:$0xff]  ;;  %v9529_v13 = vld [vmem:[#allocation15_spill] sm:$0xff] }
 0x2a5   : > { %v3683_v60 = vadd.f32 %v9524_v38, %v3375_v62  ;;  %v3564_v52 = vsel %vm1849_vm2, %v3561_v7, %v9525_v15  ;;  %v3681_v11 = vadd.f32 %v3562_v16, %v3373_v49  ;;  %v8144_v54 = vadd.f32 %v8141_v55, %v3680_v33 }
 0x2a6   : > { %v3685_v50 = vadd.f32 %v3569_v6, %v3377_v39  ;;  %v3682_v40 = vadd.f32 %v3564_v52, %v3374_v0  ;;  %v8150_v30 = vadd.f32 %v8141_v55, %v3684_v47  ;;  %v1157_v21 = vpack.c.bf16 %v994_v41, %v7914_v22  ;;  %v9528_v39 = vld [vmem:[#allocation75_spill] sm:$0xff] }
 0x2a7   : > { %v8147_v31 = vadd.f32 %v8141_v55, %v3683_v60  ;;  %v3310_v56 = vrot.slane %v7927_v58, 1  ;;  %v8158_v43 = vadd.f32 %v8141_v55, %v3681_v11  ;;  %v4992_v45 = vmul.f32 -1.442695, %v8144_v54 }
 0x2a8   : > { %v8153_v18 = vadd.f32 %v8141_v55, %v3685_v50  ;;  %v8161_v53 = vadd.f32 %v8141_v55, %v3682_v40  ;;  %v4996_v61 = vmul.f32 -1.442695, %v8150_v30  ;;  %v2137_v27 = vrot.slane %v1157_v21, 4 }
 0x2a9   : > { %v4995_v4 = vmul.f32 -1.442695, %v8147_v31  ;;  %v8167_v28 = vunpack.c.l.bf16 %v1157_v21  ;;  %5498 = vpow2.f32 %v4992_v45  ;;  %v4993_v22 = vmul.f32 -1.442695, %v8158_v43 }
 0x2aa   : > { %v4997_v34 = vmul.f32 -1.442695, %v8153_v18  ;;  %v4994_v23 = vmul.f32 -1.442695, %v8161_v53  ;;  %v8171_v42 = vunpack.c.h.bf16 %v1157_v21  ;;  %v9526_v9 = vrot.slane %v7830_v8, 4 }
 0x2ab   : > { %5500 = vpow2.f32 %v4995_v4  ;;  %v2218_v5 = vunpack.c.l.bf16 %v2137_v27  ;;  %v2385_v19 = vmul.f32 %v5874_v20, %v8167_v28  ;;  %v2644_v12 = vmul.f32 %v5821_v35, %v8167_v28 }
 0x2ac   : > { %v2138_v29 = vsel %vm1243_vm0, %v9526_v9, %v2137_v27  ;;  %5502 = vpow2.f32 %v4993_v22  ;;  %v2386_v10 = vmul.f32 %v5874_v20, %v8171_v42  ;;  %v2645_v46 = vmul.f32 %v5821_v35, %v8171_v42 }
 0x2ad   : > { %v2216_v48 = vunpack.c.l.bf16 %v2138_v29  ;;  %v2217_v25 = vunpack.c.h.bf16 %v2138_v29  ;;  %5504 = vpow2.f32 %v4994_v23  ;;  %v2270_v62 = vmul.f32 %v5870_v2, %v2218_v5 }
 0x2ae   : > { %v2464_v26 = vrot.slane %v2385_v19, 1  ;;  %5506 = vpow2.f32 %v4996_v61  ;;  %v2465_v0 = vrot.slane %v2386_v10, 1  ;;  %v2770_v63 = vrot.slane %v2644_v12, 2  ;;  %v3423_v61 = vld [vmem:[#allocation2 + $0x1a8] sm:$0x1]  ;;  %v9532_v19 = vld [vmem:[#allocation87_spill] sm:$0xff] }
 0x2af   : > { %v2268_v8 = vmul.f32 %v5870_v2, %v2216_v48  ;;  %v2269_v37 = vmul.f32 %v5870_v2, %v2217_v25  ;;  %5508 = vpow2.f32 %v4997_v34  ;;  %v2318_v49 = vadd.f32 %v2270_v62, %v9527_v3  ;;  %v9533_v25 = vld [vmem:[#allocation14_spill] sm:$0xff] }
 0x2b0   : > { %v2466_v6 = vsel %vm1572_vm1, %v2464_v26, %v2465_v0  ;;  %v9530_v33 = vrot.slane %v7840_v32, 4  ;;  %v2771_v41 = vrot.slane %v2645_v46, 2  ;;  %v3112_v50 = vmul.f32 %v9204_v14, %v2218_v5  ;;  %v9534_v12 = vld [vmem:[#allocation82_spill] sm:$0xff] }
 0x2b1   : > { %v2316_v7 = vadd.f32 %v2268_v8, %v9528_v39  ;;  %v2317_v51 = vadd.f32 %v2269_v37, %v9529_v13  ;;  %v2562_v60 = vadd.f32 %v2465_v0, %v2318_v49  ;;  %v3228_v11 = vmul.f32 %v5892_v36, %v8167_v28  ;;  %v9535_v37 = vld [vmem:[#allocation90_spill] sm:$0xff]  ;;  %v9536_v13 = vld [vmem:[#allocation37_spill] sm:$0xff] }
 0x2b2   : > { %v2980_v38 = vsel %vm1243_vm0, %v9530_v33, %v2137_v27  ;;  %v2772_v40 = vsel %vm1849_vm2, %v2770_v63, %v2771_v41  ;;  %v9531_v21 = vrot.slane %v7825_v17, 2  ;;  %v3160_v9 = vadd.f32 %v3112_v50, %v7837_v57  ;;  %v9538_v33 = vld [vmem:[#allocation88_spill] sm:$0xff] }
 0x2b3   : > { %v3058_v16 = vunpack.c.l.bf16 %v2980_v38  ;;  %v3059_v15 = vunpack.c.h.bf16 %v2980_v38  ;;  %v2560_v52 = vadd.f32 %v2464_v26, %v2316_v7  ;;  %v2561_v47 = vadd.f32 %v2466_v6, %v2317_v51  ;;  %v5499_v34 = vpop.eup %5498 }
 0x2b4   : > { %v2774_v45 = vsel %vm1849_vm2, %v2771_v41, %v9531_v21  ;;  %v3927_v5 = vadd.f32 1.0, %v5499_v34  ;;  %v3229_v17 = vmul.f32 %v5892_v36, %v8171_v42  ;;  %v3439_v3 = vunpack.c.l.bf16 %v3423_v61  ;;  %v9542_v34 = vld [vmem:[#allocation17_spill] sm:$0xff] }
 0x2b5   : > { %v3110_v32 = vmul.f32 %v9204_v14, %v3058_v16  ;;  %v3111_v4 = vmul.f32 %v9204_v14, %v3059_v15  ;;  %v2868_v27 = vadd.f32 %v2770_v63, %v2560_v52  ;;  %v2869_v22 = vadd.f32 %v2772_v40, %v2561_v47  ;;  %v5501_v29 = vpop.eup %5500  ;;  %v9540_v16 = vld [vmem:[#allocation23_spill] sm:$0xff] }
 0x2b6   : > { %v2870_v23 = vadd.f32 %v2774_v45, %v2562_v60  ;;  %v5503_v62 = vpop.eup %5502  ;;  %v3930_v26 = vadd.f32 1.0, %v5501_v29  ;;  %5510 = vrcp.f32 %v3927_v5  ;;  %v3306_v57 = vrot.slane %v3228_v11, 1 }
 0x2b7   : > { %v3158_v48 = vadd.f32 %v3110_v32, %v9532_v19  ;;  %v3159_v10 = vadd.f32 %v3111_v4, %v9533_v25  ;;  %v3161_v8 = vadd.f32 %v9534_v12, %v2868_v27  ;;  %v3162_v0 = vadd.f32 %v9535_v37, %v2869_v22  ;;  %v5505_v49 = vpop.eup %5504  ;;  %v9545_v37 = vld [vmem:[#allocation10_spill] sm:$0xff] }
 0x2b8   : > { %v3928_v46 = vadd.f32 1.0, %v5503_v62  ;;  %v3307_v63 = vrot.slane %v3229_v17, 1  ;;  %v5507_v39 = vpop.eup %5506  ;;  %v3929_v7 = vadd.f32 1.0, %v5505_v49  ;;  %5512 = vrcp.f32 %v3930_v26  ;;  %v8235_v62 = vld [vmem:[#allocation2 + $0xb8] sm:$0x1] }
 0x2b9   : > { %v9537_v51 = vrot.slane %v9536_v13, 1  ;;  %v9539_v38 = vunpack.c.l.bf16 %v9538_v33  ;;  %v5509_v41 = vpop.eup %5508  ;;  %v3163_v15 = vadd.f32 %v9540_v16, %v2870_v23  ;;  %v3402_v47 = vadd.f32 %v3306_v57, %v3158_v48  ;;  %v9549_v13 = vld [vmem:[#allocation32_spill] sm:$0xff] }
 0x2ba   : > { %5514 = vrcp.f32 %v3928_v46  ;;  %v3308_v52 = vsel %vm1572_vm1, %v3306_v57, %v3307_v63  ;;  %v3932_v50 = vadd.f32 1.0, %v5509_v41  ;;  %v3404_v40 = vadd.f32 %v3307_v63, %v3160_v9  ;;  %v9547_v63 = vld [vmem:[#allocation43_spill] sm:$0xff] }
 0x2bb   : > { %v3311_v6 = vsel %vm1572_vm1, %v9537_v51, %v3310_v56  ;;  %v3488_v60 = vmul.f32 %v8001_v1, %v9539_v38  ;;  %5516 = vrcp.f32 %v3929_v7  ;;  %v3403_v11 = vadd.f32 %v3308_v52, %v3159_v10 }
 0x2bc   : > { %v9541_v21 = vmov %v9537_v51  ;;  %v3406_v32 = vadd.f32 %v3311_v6, %v3162_v0  ;;  %v3486_v4 = vmul.f32 %v8001_v1, %v8167_v28  ;;  %v3487_v61 = vmul.f32 %v8001_v1, %v8171_v42  ;;  %v9546_v0 = vld [vmem:[#allocation36_spill] sm:$0xff] }
 0x2bd   : > { %v3405_v45 = vadd.f32 %v9541_v21, %v3161_v8  ;;  %5518 = vrcp.f32 %v3932_v50  ;;  %v9543_v27 = vunpack.c.l.bf16 %v9542_v34  ;;  %v9544_v23 = vunpack.c.h.bf16 %v9542_v34 }
 0x2be   : > { %v3491_v9 = vmul.f32 %v8001_v1, %v3439_v3  ;;  %v3931_v5 = vadd.f32 1.0, %v5507_v39  ;;  %v3610_v19 = vrot.slane %v3486_v4, 2  ;;  %v3611_v48 = vrot.slane %v3487_v61, 2 }
 0x2bf   : > { %v3489_v22 = vmul.f32 %v8001_v1, %v9543_v27  ;;  %v3490_v29 = vmul.f32 %v8001_v1, %v9544_v23  ;;  %v3613_v25 = vrot.slane %v3488_v60, 2  ;;  %v3407_v28 = vadd.f32 %v3310_v56, %v3163_v15  ;;  %v9551_v27 = vld [vmem:[#allocation46_spill] sm:$0xff] }
 0x2c0   : > { %v3618_v17 = vrot.slane %v3491_v9, 2  ;;  %v3612_v26 = vsel %vm1849_vm2, %v3610_v19, %v3611_v48  ;;  %v3710_v8 = vadd.f32 %v3610_v19, %v3402_v47  ;;  %v8241_v3 = vadd.f32 %v9546_v0, %v9545_v37  ;;  %v5511_v57 = vpop.eup %5510 }
 0x2c1   : > { %v3615_v10 = vrot.slane %v3489_v22, 2  ;;  %v3616_v42 = vrot.slane %v3490_v29, 2  ;;  %v3614_v12 = vsel %vm1849_vm2, %v3611_v48, %v3613_v25  ;;  %v3711_v58 = vadd.f32 %v3612_v26, %v3403_v11  ;;  %v9550_v11 = vld [vmem:[#allocation13_spill] sm:$0xff] }
 0x2c2   : > { %v3712_v56 = vadd.f32 %v3614_v12, %v3404_v40  ;;  %v9548_v39 = vunpack.c.l.bf16 %v9547_v63  ;;  %v2198_v51 = vunpack.c.l.bf16 %v9549_v13  ;;  %v8252_v33 = vadd.f32 %v8141_v55, %v3710_v8  ;;  %v5513_v38 = vpop.eup %5512 }
 0x2c3   : > { %v3617_v49 = vsel %vm1849_vm2, %v3615_v10, %v3616_v42  ;;  %v3619_v46 = vsel %vm1849_vm2, %v3616_v42, %v3618_v17  ;;  %v3713_v6 = vadd.f32 %v3615_v10, %v3405_v45  ;;  %v2585_v60 = vunpack.c.l.bf16 %v8235_v62  ;;  %v9553_v42 = vld [vmem:[#allocation16_spill] sm:$0xff] }
 0x2c4   : > { %v8248_v7 = vmul.f32 %v9204_v14, %v9548_v39  ;;  %5520 = vrcp.f32 %v3931_v5  ;;  %v4071_v41 = vmul.f32 %v5511_v57, %v8144_v54  ;;  %v8257_v16 = vadd.f32 %v8141_v55, %v3711_v58  ;;  %v5515_v15 = vpop.eup %5514  ;;  %v9552_v5 = vld [vmem:[#allocation80_spill] sm:$0xff] }
 0x2c5   : > { %v3714_v52 = vadd.f32 %v3617_v49, %v3406_v32  ;;  %v3715_v47 = vadd.f32 %v3619_v46, %v3407_v28  ;;  %v4960_v50 = vmul.f32 -1.442695, %v8241_v3  ;;  %v8262_v40 = vadd.f32 %v9546_v0, %v9550_v11  ;;  %v5517_v21 = vpop.eup %5516 }
 0x2c6   : > { %v4072_v45 = vmul.f32 %v5515_v15, %v8158_v43  ;;  %v5107_v4 = vpack.c.bf16 %v4071_v41, %v4071_v41  ;;  %v4694_v61 = vsel %vm4686_vm3, %v4071_v41, 0.0  ;;  %v5022_v54 = vmul.f32 -1.442695, %v8252_v33  ;;  %v9554_v41 = vld [vmem:[#allocation52_spill] sm:$0xff] }
 0x2c7   : > { %v4073_v34 = vmul.f32 %v5517_v21, %v8161_v53  ;;  %v8269_v22 = vadd.f32 %v4694_v61, %v9551_v27  ;;  %v8272_v32 = vadd.f32 %v8141_v55, %v3712_v56  ;;  %v8275_v23 = vadd.f32 %v8141_v55, %v3713_v6  ;;  %v5519_v29 = vpop.eup %5518  ;;  %v9555_v15 = vld [vmem:[#allocation12_spill] sm:$0xff]  ;;  %v5618_v61 = vld [vmem:[%s8934_s2] ss:$0 sm:$0xff] }
 0x2c8   : > { %v5108_v9 = vpack.c.bf16 %v4072_v45, %v4072_v45  ;;  %v8278_v43 = vadd.f32 %v9552_v5, %v4072_v45  ;;  %5522 = vpow2.f32 %v5022_v54  ;;  %v5023_v19 = vmul.f32 -1.442695, %v8257_v16  ;;  %v9558_v54 = vld [vmem:[#allocation11_spill] sm:$0xff] }
 0x2c9   : > { %v5109_v48 = vpack.c.bf16 %v4073_v34, %v4073_v34  ;;  %v4359_v25 = vshrl.u32 %v5107_v4, 16  ;;  %v4740_v53 = vsel %vm1572_vm1, %v4073_v34, 0.0  ;;  %v8283_v28 = vadd.f32 %v8141_v55, %v3714_v52 }
 0x2ca   : > { %v4364_v10 = vshrl.u32 %v5108_v9, 16  ;;  %v8286_v17 = vadd.f32 %v4740_v53, %v9553_v42  ;;  %v8289_v62 = vadd.f32 %v8141_v55, %v3715_v47  ;;  %5524 = vpow2.f32 %v4960_v50  ;;  %v9560_v42 = vld [vmem:[#allocation7_spill] sm:$0xff] }
 0x2cb   : > { %v8292_v26 = vmul.f32 %v5513_v38, %v8147_v31  ;;  %v8295_v12 = vmul.f32 %v5519_v29, %v8153_v18  ;;  %v4367_v8 = vshll.u32 %v5108_v9, 16  ;;  %v4373_v37 = vshrl.u32 %v5109_v48, 16 }
 0x2cc   : > { %v4366_v0 = vrot.slane %v4364_v10, 7  ;;  %5526 = vpow2.f32 %v5023_v19  ;;  %v5024_v49 = vmul.f32 -1.442695, %v8272_v32  ;;  %v5025_v46 = vmul.f32 -1.442695, %v8275_v23 }
 0x2cd   : > { %v5080_v58 = vrot.slane %v4359_v25, 11  ;;  %v4375_v56 = vrot.slane %v4373_v37, 7  ;;  %v4376_v57 = vshll.u32 %v5109_v48, 16  ;;  %v5026_v39 = vmul.f32 -1.442695, %v8283_v28 }
 0x2ce   : > { %v8300_v6 = vpop.eup %5520  ;;  %v4369_v31 = vor.u32 %v4367_v8, %v4366_v0  ;;  %v4371_v38 = vrot.slane %v4366_v0, 4  ;;  %5528 = vpow2.f32 %v5024_v49  ;;  %v5027_v18 = vmul.f32 -1.442695, %v8289_v62  ;;  %v9562_v8 = vld [vmem:[#allocation51_spill] sm:$0xff] }
 0x2cf   : > { %v9556_v52 = vrot.slane %v9555_v15, 4  ;;  %v8309_v50 = vpack.c.bf16 %v8295_v12, %v8295_v12  ;;  %v4378_v11 = vor.u32 %v4376_v57, %v4375_v56  ;;  %5530 = vpow2.f32 %v5025_v46 }
 0x2d0   : > { %v4370_v45 = vsel %vm6842_vm6, %v5080_v58, %v4369_v31  ;;  %5532 = vpow2.f32 %v5026_v39  ;;  %v4958_v4 = vmul.f32 -1.442695, %v8262_v40  ;;  %v8318_v34 = vadd.f32 %v5618_v61, %v9558_v54  ;;  %v9564_v58 = vld [vmem:[#allocation53_spill] sm:$0xff]  ;;  %v9565_v39 = vld [vmem:[#allocation28_spill] sm:$0xff] }
 0x2d1   : > { %v2962_v47 = vsel %vm1243_vm0, %v9556_v52, %v9554_v41  ;;  %v2199_v27 = vunpack.c.h.bf16 %v9549_v13  ;;  %v2619_v29 = vmul.f32 %v5821_v35, %v2585_v60  ;;  %v4379_v9 = vsel %vm6842_vm6, %v4371_v38, %v4378_v11  ;;  %4662 = vst [vmem:[%s6850_s14 + $0x20] sm:$0xf] %v4370_v45  ;;  %v9566_v45 = vld [vmem:[#allocation19_spill] sm:$0xff] }
 0x2d2   : > { %5534 = vpow2.f32 %v5027_v18  ;;  %v5523_v5 = vpop.eup %5522  ;;  %v9559_v19 = vunpack.c.h.bf16 %v9547_v63  ;;  %v3040_v25 = vunpack.c.l.bf16 %v2962_v47  ;;  %v5110_v53 = vpack.c.bf16 %v8292_v26, %v8292_v26  ;;  %4663 = vst [vmem:[%s6850_s14 + $0x24] sm:$0xf] %v4379_v9  ;;  %v9570_v9 = vld [vmem:[#allocation89_spill] sm:$0xff] }
 0x2d3   : > { %v4961_v10 = vmul.f32 -1.442695, %v8318_v34  ;;  %v9561_v60 = vrot.slane %v9560_v42, 2  ;;  %v9563_v37 = vrot.slane %v9562_v8, 2  ;;  %v3041_v49 = vunpack.c.h.bf16 %v2962_v47  ;;  %v9574_v42 = vld [vmem:[#allocation68_spill] sm:$0xff] }
 0x2d4   : > { %v8328_v48 = vmul.f32 %v9204_v14, %v9559_v19  ;;  %v3957_v46 = vadd.f32 1.0, %v5523_v5  ;;  %5536 = vpow2.f32 %v4958_v4  ;;  %v5525_v63 = vpop.eup %5524  ;;  %v8343_v56 = vmul.f32 %v5870_v2, %v9564_v58  ;;  %v9568_v4 = vld [vmem:[#allocation62_spill] sm:$0xff] }
 0x2d5   : > { %v8339_v0 = vsel %vm1849_vm2, %v9563_v37, %v9561_v60  ;;  %v4395_v57 = vshrl.u32 %v8309_v50, 16  ;;  %5538 = vpow2.f32 %v4961_v10  ;;  %v8347_v31 = vadd.f32 %v5618_v61, %v9565_v39 }
 0x2d6   : > { %v8352_v38 = vmul.f32 %v5870_v2, %v2198_v51  ;;  %v8355_v18 = vmul.f32 %v5870_v2, %v2199_v27  ;;  %v2728_v41 = vrot.slane %v2619_v29, 2  ;;  %5540 = vrcp.f32 %v3957_v46  ;;  %v5527_v15 = vpop.eup %5526  ;;  %v9577_v46 = vld [vmem:[#allocation27_spill] sm:$0xff] }
 0x2d7   : > { %v8358_v52 = vmul.f32 %v9204_v14, %v3040_v25  ;;  %v8362_v47 = vmul.f32 %v9204_v14, %v9564_v58  ;;  %v8364_v11 = vshrl.u32 %v5110_v53, 16  ;;  %v4959_v13 = vmul.f32 -1.442695, %v8347_v31  ;;  %v9572_v53 = vld [vmem:[#allocation20_spill] sm:$0xff] }
 0x2d8   : > { %v9567_v51 = vrot.slane %v9566_v45, 2  ;;  %v9569_v61 = vrot.slane %v9568_v4, 2  ;;  %v8375_v27 = vmul.f32 %v9204_v14, %v3041_v49  ;;  %v3958_v29 = vadd.f32 1.0, %v5527_v15  ;;  %v5529_v25 = vpop.eup %5528  ;;  %v9579_v15 = vld [vmem:[#allocation25_spill] sm:$0xff]  ;;  %v1726_v4 = vld [vmem:[#allocation2 + $0xe8] sm:$0x1] }
 0x2d9   : > { %v9571_v5 = vrot.slane %v9570_v9, 1  ;;  %v9573_v10 = vrot.slane %v9572_v53, 2  ;;  %v9575_v60 = vrot.slane %v9574_v42, 2  ;;  %v4397_v37 = vrot.slane %v4395_v57, 7  ;;  %v5531_v39 = vpop.eup %5530 }
 0x2da   : > { %v8372_v54 = vsel %vm1849_vm2, %v9569_v61, %v9567_v51  ;;  %5542 = vpow2.f32 %v4959_v13  ;;  %v9578_v58 = vrot.slane %v9577_v46, 2  ;;  %v9580_v45 = vrot.slane %v9579_v15, 2  ;;  %v9581_v61 = vld [vmem:[#allocation42_spill] sm:$0xff] }
 0x2db   : > { %v2535_v19 = vadd.f32 %v9571_v5, %v8078_v44  ;;  %v8385_v8 = vsel %vm1849_vm2, %v9575_v60, %v9573_v10  ;;  %v3959_v51 = vadd.f32 1.0, %v5529_v25  ;;  %5544 = vrcp.f32 %v3958_v29  ;;  %v5533_v5 = vpop.eup %5532  ;;  %v3415_v25 = vld [vmem:[#allocation2 + $0xe8] sm:$0x1] }
 0x2dc   : > { %9576 = vst [vmem:[#allocation39_spill] sm:$0xff] %v8385_v8  ;;  %v8390_v49 = vadd.f32 %v9578_v58, %v8085_v24  ;;  %v2729_v44 = vsel %vm1849_vm2, %v9580_v45, %v2728_v41  ;;  %v8397_v9 = vadd.f32 %v9581_v61, %v8096_v59  ;;  %v5081_v57 = vrot.slane %v8364_v11, 11  ;;  %v2571_v24 = vld [vmem:[#allocation2 + $0xe8] sm:$0x1]  ;;  %v5535_v42 = vpop.eup %5534  ;;  %v8405_v58 = vld [vmem:[#allocation2 + $0xd8] sm:$0x80] }
 0x2dd   : > { %v4398_v13 = vshll.u32 %v8309_v50, 16  ;;  %v3960_v53 = vadd.f32 1.0, %v5531_v39  ;;  %v8401_v10 = vadd.f32 %v2729_v44, %v2535_v19  ;;  %v3961_v60 = vadd.f32 1.0, %v5533_v5  ;;  %v1725_v45 = vld [vmem:[#allocation2 + $0xd0] sm:$0x1] }
 0x2de   : > { %5546 = vrcp.f32 %v3959_v51  ;;  %v871_v41 = vadd.f32 1.0, %v5525_v63  ;;  %v4075_v29 = vmul.f32 %v8300_v6, %v8150_v30  ;;  %v3962_v59 = vadd.f32 1.0, %v5535_v42  ;;  %v5537_v39 = vpop.eup %5536  ;;  %v8416_v5 = vld [vmem:[#allocation2 + $0xd8] sm:$0x80] }
 0x2df   : > { %v4400_v46 = vor.u32 %v4398_v13, %v4397_v37  ;;  %5548 = vrcp.f32 %v3960_v53  ;;  %v4696_v50 = vsel %vm4686_vm3, %v8292_v26, 0.0  ;;  %v1742_v19 = vunpack.c.l.bf16 %v1726_v4  ;;  %v5539_v51 = vpop.eup %5538  ;;  %v8423_v42 = vld [vmem:[#allocation2 + $0xd8] sm:$0x80] }
 0x2e0   : > { %5550 = vrcp.f32 %v3961_v60  ;;  %v2587_v15 = vunpack.c.l.bf16 %v2571_v24  ;;  %v5111_v44 = vpack.c.bf16 %v4075_v29, %v4075_v29  ;;  %v3431_v63 = vunpack.c.l.bf16 %v3415_v25  ;;  %v5541_v6 = vpop.eup %5540 }
 0x2e1   : > { %5552 = vrcp.f32 %v3962_v59  ;;  %v8410_v61 = vadd.f32 %v4696_v50, %v8269_v22  ;;  %v8413_v30 = vadd.f32 %v8278_v43, %v4075_v29  ;;  %v872_v37 = vadd.f32 1.0, %v5539_v51  ;;  %v8425_v43 = vld [vmem:[#allocation2 + $0xc0] sm:$0x80] }
 0x2e2   : > { %5554 = vrcp.f32 %v871_v41  ;;  %v4386_v4 = vshrl.u32 %v5111_v44, 16  ;;  %v8419_v13 = vmul.f32 %v5541_v6, %v8252_v33  ;;  %v869_v53 = vadd.f32 1.0, %v5537_v39  ;;  %v9586_v59 = vld [vmem:[#allocation5_spill] sm:$0xff] }
 0x2e3   : > { %9582 = vst [vmem:[#allocation47_spill] sm:$0xff] %v8410_v61  ;;  %9583 = vst [vmem:[#allocation35_spill] sm:$0xff] %v8413_v30  ;;  %v1741_v24 = vunpack.c.l.bf16 %v1725_v45  ;;  %v4742_v22 = vsel %vm1572_vm1, %v8295_v12, 0.0  ;;  %5556 = vrcp.f32 %v872_v37  ;;  %v4389_v41 = vshll.u32 %v5111_v44, 16  ;;  %v8442_v6 = vld [vmem:[#allocation2 + $0xc0] sm:$0x80] }
 0x2e4   : > { %9584 = vst [vmem:[#allocation30_spill] sm:$0xff] %v8419_v13  ;;  %v4388_v60 = vrot.slane %v4386_v4, 7  ;;  %v8428_v25 = vadd.f32 %v4742_v22, %v8286_v17  ;;  %v5543_v29 = vpop.eup %5542  ;;  %v8431_v50 = vmul.f32 %v9586_v59, %v1742_v19  ;;  %v8435_v39 = vmul.f32 %v5821_v35, %v2587_v15 }
 0x2e5   : > { %v8438_v12 = vmul.f32 %v8001_v1, %v3431_v63  ;;  %v5545_v45 = vpop.eup %5544  ;;  %v5137_v51 = vpack.c.bf16 %v8419_v13, %v8419_v13  ;;  %v870_v44 = vadd.f32 1.0, %v5543_v29  ;;  %5558 = vrcp.f32 %v869_v53  ;;  %v2570_v29 = vld [vmem:[#allocation2 + $0xd0] sm:$0x1] }
 0x2e6   : > { %9585 = vst [vmem:[#allocation34_spill] sm:$0xff] %v8428_v25  ;;  %v4391_v17 = vor.u32 %v4389_v41, %v4388_v60  ;;  %v4393_v37 = vrot.slane %v4388_v60, 4  ;;  %v8445_v19 = vmul.f32 %v5545_v45, %v8257_v16  ;;  %v8450_v22 = vmul.f32 %v9586_v59, %v1741_v24  ;;  %v3414_v63 = vld [vmem:[#allocation2 + $0xd0] sm:$0x1] }
 0x2e7   : > { %5560 = vrcp.f32 %v870_v44  ;;  %v2586_v44 = vunpack.c.l.bf16 %v2570_v29 }
 0x2e8   : > { %9587 = vst [vmem:[#allocation9_spill] sm:$0xff] %v8445_v19  ;;  %v5547_v4 = vpop.eup %5546  ;;  %v4392_v60 = vsel %vm6842_vm6, %v5081_v57, %v4391_v17  ;;  %v4401_v16 = vsel %vm6842_vm6, %v4393_v37, %v4400_v46  ;;  %v5138_v45 = vpack.c.bf16 %v8445_v19, %v8445_v19  ;;  %v4579_v17 = vshrl.u32 %v5137_v51, 16 }
 0x2e9   : > { %v5549_v53 = vpop.eup %5548  ;;  %v8459_v41 = vmul.f32 %v5547_v4, %v8272_v32  ;;  %4664 = vst [vmem:[%s6850_s14 + $0x28] sm:$0xf] %v4392_v60  ;;  %4665 = vst [vmem:[%s6850_s14 + $0x2c] sm:$0xf] %v4401_v16 }
 0x2ea   : > { %v5551_v11 = vpop.eup %5550  ;;  %v8468_v57 = vmul.f32 %v5549_v53, %v8275_v23  ;;  %v4584_v24 = vshrl.u32 %v5138_v45, 16  ;;  %v3430_v53 = vunpack.c.l.bf16 %v3414_v63  ;;  %v5090_v26 = vrot.slane %v4579_v17, 11 }
 0x2eb   : > { %9588 = vst [vmem:[#allocation6_spill] sm:$0xff] %v8459_v41  ;;  %v5553_v37 = vpop.eup %5552  ;;  %v8473_v4 = vmul.f32 %v5551_v11, %v8283_v28  ;;  %v5139_v15 = vpack.c.bf16 %v8459_v41, %v8459_v41  ;;  %v4587_v11 = vshll.u32 %v5138_v45, 16 }
 0x2ec   : > { %9589 = vst [vmem:[#allocation79_spill] sm:$0xff] %v8468_v57  ;;  %v5555_v60 = vpop.eup %5554  ;;  %v8478_v16 = vmul.f32 %v5553_v37, %v8289_v62  ;;  %v5140_v23 = vpack.c.bf16 %v8468_v57, %v8468_v57  ;;  %v4586_v28 = vrot.slane %v4584_v24, 7  ;;  %v8489_v24 = vmul.f32 %v5821_v35, %v2586_v44 }
 0x2ed   : > { %9590 = vst [vmem:[#allocation21_spill] sm:$0xff] %v8473_v4  ;;  %v5141_v32 = vpack.c.bf16 %v8473_v4, %v8473_v4  ;;  %v4593_v46 = vshrl.u32 %v5139_v15, 16  ;;  %v5557_v33 = vpop.eup %5556  ;;  %v4596_v41 = vshll.u32 %v5139_v15, 16  ;;  %v979_v25 = vmul.f32 %v5555_v60, %v8241_v3 }
 0x2ee   : > { %9591 = vst [vmem:[#allocation22_spill] sm:$0xff] %v8478_v16  ;;  %v5142_v29 = vpack.c.bf16 %v8478_v16, %v8478_v16  ;;  %v4601_v62 = vshrl.u32 %v5140_v23, 16  ;;  %v4589_v37 = vor.u32 %v4587_v11, %v4586_v28  ;;  %v4591_v19 = vrot.slane %v4586_v28, 4  ;;  %v8494_v28 = vld [vmem:[#allocation2 + $0xc0] sm:$0x80] }
 0x2ef   : > { %v4595_v13 = vrot.slane %v4593_v46, 7  ;;  %v4606_v57 = vshrl.u32 %v5141_v32, 16  ;;  %v4609_v51 = vshll.u32 %v5141_v32, 16  ;;  %v5559_v45 = vpop.eup %5558  ;;  %v980_v23 = vmul.f32 %v5557_v33, %v8318_v34 }
 0x2f0   : > { %v4615_v63 = vshrl.u32 %v5142_v29, 16  ;;  %v4590_v4 = vsel %vm6842_vm6, %v5090_v26, %v4589_v37  ;;  %v5091_v11 = vrot.slane %v4601_v62, 11  ;;  %v4618_v16 = vshll.u32 %v5142_v29, 16  ;;  %v9594_v37 = vld [vmem:[#allocation3_spill] sm:$0xff] }
 0x2f1   : > { %v4598_v17 = vor.u32 %v4596_v41, %v4595_v13  ;;  %v4608_v15 = vrot.slane %v4606_v57, 7  ;;  %v5561_v46 = vpop.eup %5560  ;;  %4682 = vst [vmem:[%s6850_s14 + $0x70] sm:$0xf] %v4590_v4  ;;  %v8498_v3 = vmul.f32 %v8001_v1, %v3430_v53  ;;  %v1150_v13 = vpack.c.bf16 %v980_v23, %v979_v25 }
 0x2f2   : > { %v4617_v32 = vrot.slane %v4615_v63, 7  ;;  %v977_v34 = vmul.f32 %v5559_v45, %v8262_v40  ;;  %v978_v33 = vmul.f32 %v5561_v46, %v8347_v31 }
 0x2f3   : > { %9592 = vst [vmem:[#allocation40_spill] sm:$0xff] %v8498_v3  ;;  %v4599_v44 = vsel %vm6842_vm6, %v4591_v19, %v4598_v17  ;;  %v4611_v26 = vor.u32 %v4609_v51, %v4608_v15  ;;  %v4613_v60 = vrot.slane %v4608_v15, 4  ;;  %v1272_v1 = vrot.slane %v1150_v13, 4 }
 0x2f4   : > { %v4620_v41 = vor.u32 %v4618_v16, %v4617_v32  ;;  %4683 = vst [vmem:[%s6850_s14 + $0x74] sm:$0xf] %v4599_v44  ;;  %v8508_v53 = vunpack.c.l.bf16 %v1150_v13  ;;  %v8510_v29 = vunpack.c.h.bf16 %v1150_v13  ;;  %v8515_v25 = vpack.c.bf16 %v978_v33, %v977_v34 }
 0x2f5   : > { %v4612_v4 = vsel %vm6842_vm6, %v5091_v11, %v4611_v26  ;;  %v9593_v16 = vrot.slane %v8405_v58, 4  ;;  %v1353_v62 = vunpack.c.l.bf16 %v1272_v1  ;;  %v9595_v11 = vld [vmem:[#allocation4_spill] sm:$0xff]  ;;  %v9596_v26 = vrot.slane %v8416_v5, 4 }
 0x2f6   : > { %v4621_v19 = vsel %vm6842_vm6, %v4613_v60, %v4620_v41  ;;  %4684 = vst [vmem:[%s6850_s14 + $0x78] sm:$0xf] %v4612_v4  ;;  %v1526_v63 = vmul.f32 %v9594_v37, %v8508_v53  ;;  %v1527_v45 = vmul.f32 %v9594_v37, %v8510_v29  ;;  %v1780_v23 = vmul.f32 %v9586_v59, %v8508_v53 }
 0x2f7   : > { %4685 = vst [vmem:[%s6850_s14 + $0x7c] sm:$0xf] %v4621_v19  ;;  %v1273_v51 = vsel %vm1243_vm0, %v9593_v16, %v1272_v1  ;;  %v1781_v46 = vmul.f32 %v9586_v59, %v8510_v29  ;;  %v1405_v32 = vmul.f32 %v9595_v11, %v1353_v62  ;;  %v2117_v60 = vsel %vm1243_vm0, %v9596_v26, %v1272_v1 }
 0x2f8   : > { %v1351_v17 = vunpack.c.l.bf16 %v1273_v51  ;;  %v1352_v15 = vunpack.c.h.bf16 %v1273_v51  ;;  %v1600_v58 = vrot.slane %v1526_v63, 1  ;;  %v1601_v44 = vrot.slane %v1527_v45, 1 }
 0x2f9   : > { %v1895_v34 = vrot.slane %v1780_v23, 2  ;;  %v1896_v33 = vrot.slane %v1781_v46, 2  ;;  %v2195_v16 = vunpack.c.l.bf16 %v2117_v60  ;;  %v2196_v51 = vunpack.c.h.bf16 %v2117_v60 }
 0x2fa   : > { %v1403_v13 = vmul.f32 %v9595_v11, %v1351_v17  ;;  %v1404_v41 = vmul.f32 %v9595_v11, %v1352_v15  ;;  %v1602_v4 = vsel %vm1572_vm1, %v1600_v58, %v1601_v44  ;;  %v1698_v19 = vadd.f32 %v1601_v44, %v1405_v32 }
 0x2fb   : > { %v1897_v63 = vsel %vm1849_vm2, %v1895_v34, %v1896_v33  ;;  %v9597_v45 = vrot.slane %v8431_v50, 2  ;;  %v8543_v17 = vmul.f32 %v5870_v2, %v2195_v16  ;;  %v8546_v15 = vmul.f32 %v5870_v2, %v2196_v51 }
 0x2fc   : > { %v1696_v31 = vadd.f32 %v1600_v58, %v1403_v13  ;;  %v1697_v40 = vadd.f32 %v1602_v4, %v1404_v41  ;;  %v8549_v23 = vmul.f32 %v5870_v2, %v1353_v62  ;;  %v8553_v58 = vmul.f32 %v5874_v20, %v8508_v53 }
 0x2fd   : > { %v1899_v5 = vsel %vm1849_vm2, %v1896_v33, %v9597_v45  ;;  %v8557_v50 = vmul.f32 %v5874_v20, %v8510_v29  ;;  %v8562_v60 = vmul.f32 %v5821_v35, %v8508_v53  ;;  %v2624_v13 = vmul.f32 %v5821_v35, %v8510_v29 }
 0x2fe   : > { %v2007_v26 = vadd.f32 %v1899_v5, %v1698_v19  ;;  %v2005_v46 = vadd.f32 %v1895_v34, %v1696_v31  ;;  %v2006_v32 = vadd.f32 %v1897_v63, %v1697_v40  ;;  %v9598_v31 = vrot.slane %v8423_v42, 4  ;;  %v9603_v5 = vld [vmem:[#allocation63_spill] sm:$0xff] }
 0x2ff   : > { %v9090_v33 = vrot.slane %v8553_v58, 1  ;;  %v9089_v4 = vrot.slane %v8557_v50, 1  ;;  %v9088_v51 = vrot.slane %v8562_v60, 2  ;;  %v2736_v63 = vrot.slane %v2624_v13, 2 }
 0x300   : > { %v2300_v44 = vadd.f32 %v8343_v56, %v2007_v26  ;;  %v2959_v40 = vsel %vm1243_vm0, %v9598_v31, %v1272_v1  ;;  %v2298_v41 = vadd.f32 %v8352_v38, %v2005_v46  ;;  %v2299_v34 = vadd.f32 %v8355_v18, %v2006_v32  ;;  %v9599_v56 = vld [vmem:[#allocation60_spill] sm:$0xff]  ;;  %v9601_v38 = vld [vmem:[#allocation59_spill] sm:$0xff] }
 0x301   : > { %v9600_v19 = vrot.slane %v9599_v56, 1  ;;  %v3037_v45 = vunpack.c.l.bf16 %v2959_v40  ;;  %v8581_v42 = vsel %vm1572_vm1, %v9090_v33, %v9089_v4  ;;  %v9602_v18 = vrot.slane %v9601_v38, 1 }
 0x302   : > { %v2543_v26 = vadd.f32 %v9603_v5, %v2299_v34  ;;  %v3038_v46 = vunpack.c.h.bf16 %v2959_v40  ;;  %v8589_v32 = vsel %vm1849_vm2, %v9088_v51, %v2736_v63  ;;  %v9607_v34 = vld [vmem:[#allocation65_spill] sm:$0xff]  ;;  %v8607_v5 = vmul.f32 %v9204_v14, %v1353_v62 }
 0x303   : > { %v2544_v16 = vadd.f32 %v9600_v19, %v2300_v44  ;;  %v2542_v1 = vadd.f32 %v9602_v18, %v2298_v41  ;;  %v9604_v44 = vrot.slane %v8435_v39, 2  ;;  %v8598_v56 = vmul.f32 %v9204_v14, %v3037_v45  ;;  %v9605_v19 = vld [vmem:[#allocation61_spill] sm:$0xff] }
 0x304   : > { %v9606_v41 = vrot.slane %v9605_v19, 2  ;;  %v2851_v40 = vadd.f32 %v9607_v34, %v2543_v26  ;;  %v8604_v18 = vmul.f32 %v9204_v14, %v3038_v46  ;;  %v9608_v39 = vld [vmem:[#allocation29_spill] sm:$0xff]  ;;  %v8632_v46 = vrot.slane %v8515_v25, 4 }
 0x305   : > { %v8594_v13 = vsel %vm1849_vm2, %v2736_v63, %v9604_v44  ;;  %v2852_v31 = vadd.f32 %v8372_v54, %v2544_v16  ;;  %v8612_v63 = vmul.f32 %v5892_v36, %v8508_v53  ;;  %v8616_v54 = vmul.f32 %v5892_v36, %v8510_v29  ;;  %v8621_v16 = vld [vmem:[%s8935_s3 + $0x8] ss:$0 sm:$0xff]  ;;  %v9609_v19 = vld [vmem:[#allocation49_spill] sm:$0xff] }
 0x306   : > { %v2850_v38 = vadd.f32 %v9606_v41, %v2542_v1  ;;  %v8625_v45 = vmul.f32 %v8621_v16, %v8508_v53  ;;  %v3144_v1 = vadd.f32 %v8328_v48, %v2851_v40  ;;  %v3466_v26 = vmul.f32 %v8621_v16, %v8510_v29 }
 0x307   : > { %v3145_v51 = vadd.f32 %v9608_v39, %v2852_v31  ;;  %v9092_v44 = vrot.slane %v8612_v63, 1  ;;  %v9091_v31 = vrot.slane %v8616_v54, 1  ;;  %v9610_v41 = vrot.slane %v9609_v19, 1  ;;  %v9611_v39 = vld [vmem:[#allocation48_spill] sm:$0xff] }
 0x308   : > { %v3143_v62 = vadd.f32 %v8248_v7, %v2850_v38  ;;  %v9093_v53 = vrot.slane %v8625_v45, 2  ;;  %v9612_v4 = vrot.slane %v9611_v39, 1  ;;  %v9613_v38 = vld [vmem:[#allocation55_spill] sm:$0xff]  ;;  %v3576_v40 = vrot.slane %v3466_v26, 2 }
 0x309   : > { %v3389_v34 = vadd.f32 %v9610_v41, %v3145_v51  ;;  %v3388_v48 = vadd.f32 %v9613_v38, %v3144_v1  ;;  %v9614_v29 = vrot.slane %v8425_v43, 4  ;;  %v8651_v19 = vsel %vm1572_vm1, %v9092_v44, %v9091_v31  ;;  %v9616_v1 = vld [vmem:[#allocation50_spill] sm:$0xff] }
 0x30a   : > { %v3387_v7 = vadd.f32 %v9612_v4, %v3143_v62  ;;  %v8657_v4 = vsel %vm1849_vm2, %v9093_v53, %v3576_v40  ;;  %v9615_v43 = vrot.slane %v8438_v12, 2  ;;  %v9617_v26 = vrot.slane %v9616_v1, 2 }
 0x30b   : > { %v1270_v33 = vsel %vm1243_vm0, %v9614_v29, %v8632_v46  ;;  %v3697_v51 = vadd.f32 %v8339_v0, %v3389_v34  ;;  %v9618_v29 = vld [vmem:[#allocation57_spill] sm:$0xff]  ;;  %v8671_v0 = vunpack.c.l.bf16 %v8632_v46 }
 0x30c   : > { %v1348_v41 = vunpack.c.l.bf16 %v1270_v33  ;;  %v1349_v39 = vunpack.c.h.bf16 %v1270_v33  ;;  %v8662_v62 = vsel %vm1849_vm2, %v3576_v40, %v9615_v43  ;;  %v3695_v38 = vadd.f32 %v9617_v26, %v3387_v7 }
 0x30d   : > { %v3696_v31 = vadd.f32 %v9618_v29, %v3388_v48  ;;  %v8668_v44 = vadd.f32 %v8141_v55, %v3697_v51  ;;  %v8682_v7 = vunpack.c.l.bf16 %v8515_v25  ;;  %v8685_v48 = vunpack.c.h.bf16 %v8515_v25 }
 0x30e   : > { %v1400_v33 = vmul.f32 %v9595_v11, %v1348_v41  ;;  %v1401_v34 = vmul.f32 %v9595_v11, %v1349_v39  ;;  %v8676_v12 = vadd.f32 %v8141_v55, %v3695_v38  ;;  %v1402_v43 = vmul.f32 %v9595_v11, %v8671_v0 }
 0x30f   : > { %9619 = vst [vmem:[#allocation69_spill] sm:$0xff] %v8668_v44  ;;  %v8679_v40 = vadd.f32 %v8141_v55, %v3696_v31  ;;  %v5009_v51 = vmul.f32 -1.442695, %v8668_v44  ;;  %v9622_v41 = vrot.slane %v8442_v6, 4  ;;  %v2246_v55 = vmul.f32 %v5870_v2, %v8671_v0 }
 0x310   : > { %9620 = vst [vmem:[#allocation77_spill] sm:$0xff] %v8676_v12  ;;  %v5007_v31 = vmul.f32 -1.442695, %v8676_v12  ;;  %v1524_v25 = vmul.f32 %v9594_v37, %v8682_v7  ;;  %v1525_v26 = vmul.f32 %v9594_v37, %v8685_v48  ;;  %v1777_v11 = vmul.f32 %v9586_v59, %v8682_v7 }
 0x311   : > { %9621 = vst [vmem:[#allocation33_spill] sm:$0xff] %v8679_v40  ;;  %v2114_v39 = vsel %vm1243_vm0, %v9622_v41, %v8632_v46  ;;  %v5008_v1 = vmul.f32 -1.442695, %v8679_v40  ;;  %5562 = vpow2.f32 %v5009_v51  ;;  %v1778_v6 = vmul.f32 %v9586_v59, %v8685_v48 }
 0x312   : > { %v2192_v38 = vunpack.c.l.bf16 %v2114_v39  ;;  %5564 = vpow2.f32 %v5007_v31  ;;  %v1597_v29 = vrot.slane %v1524_v25, 1  ;;  %v1598_v41 = vrot.slane %v1525_v26, 1  ;;  %v9624_v25 = vld [vmem:[#allocation45_spill] sm:$0xff] }
 0x313   : > { %v2193_v53 = vunpack.c.h.bf16 %v2114_v39  ;;  %5566 = vpow2.f32 %v5008_v1  ;;  %v1890_v57 = vrot.slane %v1777_v11, 2  ;;  %v1891_v30 = vrot.slane %v1778_v6, 2  ;;  %v9625_v11 = vld [vmem:[#allocation92_spill] sm:$0xff] }
 0x314   : > { %v2244_v61 = vmul.f32 %v5870_v2, %v2192_v38  ;;  %v1599_v21 = vsel %vm1572_vm1, %v1597_v29, %v1598_v41  ;;  %v1693_v37 = vadd.f32 %v1597_v29, %v1400_v33  ;;  %v1695_v51 = vadd.f32 %v1598_v41, %v1402_v43  ;;  %v9626_v38 = vld [vmem:[#allocation91_spill] sm:$0xff] }
 0x315   : > { %v2245_v44 = vmul.f32 %v5870_v2, %v2193_v53  ;;  %v1694_v40 = vadd.f32 %v1599_v21, %v1401_v34  ;;  %v1892_v12 = vsel %vm1849_vm2, %v1890_v57, %v1891_v30  ;;  %v9623_v59 = vrot.slane %v8450_v22, 2 }
 0x316   : > { %v2292_v39 = vadd.f32 %v2244_v61, %v9624_v25  ;;  %v2002_v1 = vadd.f32 %v1890_v57, %v1693_v37  ;;  %v2294_v3 = vadd.f32 %v2246_v55, %v9626_v38  ;;  %v2369_v33 = vmul.f32 %v5874_v20, %v8682_v7 }
 0x317   : > { %v1894_v31 = vsel %vm1849_vm2, %v1891_v30, %v9623_v59  ;;  %v2293_v6 = vadd.f32 %v2245_v44, %v9625_v11  ;;  %v2003_v8 = vadd.f32 %v1892_v12, %v1694_v40  ;;  %v2370_v2 = vmul.f32 %v5874_v20, %v8685_v48 }
 0x318   : > { %v2004_v26 = vadd.f32 %v1894_v31, %v1695_v51  ;;  %v2620_v21 = vmul.f32 %v5821_v35, %v8682_v7  ;;  %v2295_v30 = vadd.f32 %v8543_v17, %v2002_v1  ;;  %v2621_v22 = vmul.f32 %v5821_v35, %v8685_v48 }
 0x319   : > { %v9627_v57 = vrot.slane %v8494_v28, 4  ;;  %v2296_v53 = vadd.f32 %v8546_v15, %v2003_v8  ;;  %v2440_v34 = vrot.slane %v2369_v33, 1  ;;  %v2441_v12 = vrot.slane %v2370_v2, 1 }
 0x31a   : > { %v2297_v61 = vadd.f32 %v8549_v23, %v2004_v26  ;;  %v2730_v20 = vrot.slane %v2620_v21, 2  ;;  %v9628_v40 = vrot.slane %v8553_v58, 1  ;;  %v9629_v17 = vrot.slane %v8557_v50, 1 }
 0x31b   : > { %v2956_v44 = vsel %vm1243_vm0, %v9627_v57, %v8632_v46  ;;  %v2731_v23 = vrot.slane %v2621_v22, 2  ;;  %v5563_v41 = vpop.eup %5562  ;;  %v2442_v35 = vsel %vm1572_vm1, %v2440_v34, %v2441_v12  ;;  %v2536_v37 = vadd.f32 %v2440_v34, %v2292_v39 }
 0x31c   : > { %v2539_v43 = vadd.f32 %v9628_v40, %v2295_v30  ;;  %v2541_v55 = vadd.f32 %v9629_v17, %v2297_v61  ;;  %v3034_v29 = vunpack.c.l.bf16 %v2956_v44  ;;  %v2538_v28 = vadd.f32 %v2441_v12, %v2294_v3  ;;  %v5565_v51 = vpop.eup %5564  ;;  %v9636_v12 = vld [vmem:[#allocation70_spill] sm:$0xff] }
 0x31d   : > { %v2540_v46 = vadd.f32 %v8581_v42, %v2296_v53  ;;  %v3944_v8 = vadd.f32 1.0, %v5563_v41  ;;  %v2537_v15 = vadd.f32 %v2442_v35, %v2293_v6  ;;  %v2732_v59 = vsel %vm1849_vm2, %v2730_v20, %v2731_v23  ;;  %v5567_v50 = vpop.eup %5566 }
 0x31e   : > { %v9630_v58 = vrot.slane %v8489_v24, 2  ;;  %v3942_v25 = vadd.f32 1.0, %v5565_v51  ;;  %v2844_v1 = vadd.f32 %v2730_v20, %v2536_v37  ;;  %v9631_v11 = vrot.slane %v8562_v60, 2 }
 0x31f   : > { %v3943_v39 = vadd.f32 1.0, %v5567_v50  ;;  %5568 = vrcp.f32 %v3944_v8  ;;  %v2845_v3 = vadd.f32 %v2732_v59, %v2537_v15  ;;  %v2848_v42 = vadd.f32 %v8589_v32, %v2540_v46  ;;  %v9640_v8 = vld [vmem:[#allocation67_spill] sm:$0xff] }
 0x320   : > { %v2734_v31 = vsel %vm1849_vm2, %v2731_v23, %v9630_v58  ;;  %v2847_v38 = vadd.f32 %v9631_v11, %v2539_v43  ;;  %5570 = vrcp.f32 %v3942_v25  ;;  %v2849_v6 = vadd.f32 %v8594_v13, %v2541_v55  ;;  %v9637_v43 = vld [vmem:[#allocation66_spill] sm:$0xff]  ;;  %v9642_v59 = vld [vmem:[#allocation71_spill] sm:$0xff] }
 0x321   : > { %v2846_v26 = vadd.f32 %v2734_v31, %v2538_v28  ;;  %v3035_v33 = vunpack.c.h.bf16 %v2956_v44  ;;  %v3086_v24 = vmul.f32 %v9204_v14, %v3034_v29  ;;  %5572 = vrcp.f32 %v3943_v39 }
 0x322   : > { %v3088_v2 = vmul.f32 %v9204_v14, %v8671_v0  ;;  %v3137_v21 = vadd.f32 %v8598_v56, %v2844_v1  ;;  %v3138_v60 = vadd.f32 %v8604_v18, %v2845_v3  ;;  %v3140_v22 = vadd.f32 %v8358_v52, %v2847_v38  ;;  %v5620_v1 = vld [vmem:[%s8936_s4] ss:$0 sm:$0xff] }
 0x323   : > { %v3087_v30 = vmul.f32 %v9204_v14, %v3035_v33  ;;  %v3134_v61 = vadd.f32 %v3086_v24, %v8390_v49  ;;  %v3139_v32 = vadd.f32 %v8607_v5, %v2846_v26  ;;  %v3141_v57 = vadd.f32 %v8375_v27, %v2848_v42  ;;  %v9634_v27 = vld [vmem:[#allocation64_spill] sm:$0xff] }
 0x324   : > { %v3136_v13 = vadd.f32 %v3088_v2, %v8401_v10  ;;  %v3142_v44 = vadd.f32 %v8362_v47, %v2849_v6  ;;  %v3212_v0 = vmul.f32 %v5892_v36, %v8682_v7  ;;  %v3213_v14 = vmul.f32 %v5892_v36, %v8685_v48 }
 0x325   : > { %v3135_v56 = vadd.f32 %v3087_v30, %v8397_v9  ;;  %v9632_v49 = vrot.slane %v8612_v63, 1  ;;  %v3382_v5 = vadd.f32 %v8651_v19, %v3138_v60  ;;  %v9633_v10 = vrot.slane %v8616_v54, 1 }
 0x326   : > { %v3282_v52 = vrot.slane %v3212_v0, 1  ;;  %v9635_v34 = vrot.slane %v9634_v27, 1  ;;  %v3385_v20 = vadd.f32 %v9636_v12, %v3141_v57  ;;  %v3283_v40 = vrot.slane %v3213_v14, 1 }
 0x327   : > { %v3381_v18 = vadd.f32 %v9632_v49, %v3137_v21  ;;  %v3383_v53 = vadd.f32 %v9633_v10, %v3139_v32  ;;  %v9638_v9 = vrot.slane %v9637_v43, 1  ;;  %v3462_v36 = vmul.f32 %v8621_v16, %v8682_v7  ;;  %v9646_v32 = vld [vmem:[#allocation77_spill] sm:$0xff] }
 0x328   : > { %v3384_v47 = vadd.f32 %v9635_v34, %v3140_v22  ;;  %v3463_v63 = vmul.f32 %v8621_v16, %v8685_v48  ;;  %v3378_v19 = vadd.f32 %v3282_v52, %v3134_v61  ;;  %v9639_v55 = vrot.slane %v8625_v45, 2  ;;  %v9643_v48 = vld [vmem:[#allocation39_spill] sm:$0xff]  ;;  %v9648_v49 = vld [vmem:[#allocation69_spill] sm:$0xff] }
 0x329   : > { %v3386_v17 = vadd.f32 %v9638_v9, %v3142_v44  ;;  %v3690_v23 = vadd.f32 %v8657_v4, %v3382_v5  ;;  %v3691_v29 = vadd.f32 %v8662_v62, %v3383_v53  ;;  %v3284_v41 = vsel %vm1572_vm1, %v3282_v52, %v3283_v40  ;;  %v5569_v46 = vpop.eup %5568  ;;  %v9644_v4 = vld [vmem:[#allocation40_spill] sm:$0xff] }
 0x32a   : > { %v3689_v54 = vadd.f32 %v9639_v55, %v3381_v18  ;;  %v3380_v35 = vadd.f32 %v3283_v40, %v3136_v13  ;;  %v3570_v37 = vrot.slane %v3462_v36, 2  ;;  %v3571_v28 = vrot.slane %v3463_v63, 2  ;;  %v5571_v45 = vpop.eup %5570 }
 0x32b   : > { %v3379_v51 = vadd.f32 %v3284_v41, %v3135_v56  ;;  %v9641_v7 = vrot.slane %v9640_v8, 2  ;;  %v3693_v16 = vadd.f32 %v9642_v59, %v3385_v20  ;;  %v3694_v58 = vadd.f32 %v9643_v48, %v3386_v17  ;;  %v5573_v11 = vpop.eup %5572  ;;  %v9647_v56 = vld [vmem:[#allocation33_spill] sm:$0xff] }
 0x32c   : > { %v3572_v31 = vsel %vm1849_vm2, %v3570_v37, %v3571_v28  ;;  %v9645_v50 = vrot.slane %v9644_v4, 2  ;;  %v3686_v25 = vadd.f32 %v3570_v37, %v3378_v19  ;;  %v8792_v26 = vadd.f32 %v5620_v1, %v3689_v54  ;;  %v9657_v41 = vld [vmem:[#allocation85_spill] sm:$0xff] }
 0x32d   : > { %v3692_v15 = vadd.f32 %v9641_v7, %v3384_v47  ;;  %v3687_v38 = vadd.f32 %v3572_v31, %v3379_v51  ;;  %v8794_v3 = vadd.f32 %v5620_v1, %v3690_v23  ;;  %v8798_v6 = vadd.f32 %v5620_v1, %v3691_v29 }
 0x32e   : > { %v3574_v62 = vsel %vm1849_vm2, %v3571_v28, %v9645_v50  ;;  %v8796_v42 = vadd.f32 %v5620_v1, %v3686_v25  ;;  %v5001_v21 = vmul.f32 -1.442695, %v8792_v26  ;;  %v8807_v60 = vadd.f32 %v5620_v1, %v3693_v16 }
 0x32f   : > { %v3688_v39 = vadd.f32 %v3574_v62, %v3380_v35  ;;  %v8800_v33 = vadd.f32 %v5620_v1, %v3687_v38  ;;  %v8804_v2 = vadd.f32 %v5620_v1, %v3692_v15  ;;  %v8809_v30 = vadd.f32 %v5620_v1, %v3694_v58 }
 0x330   : > { %v4998_v61 = vmul.f32 -1.442695, %v8796_v42  ;;  %v8813_v22 = vmul.f32 %v5571_v45, %v9646_v32  ;;  %5574 = vpow2.f32 %v5001_v21  ;;  %v5002_v44 = vmul.f32 -1.442695, %v8794_v3 }
 0x331   : > { %v8802_v24 = vadd.f32 %v5620_v1, %v3688_v39  ;;  %v4999_v13 = vmul.f32 -1.442695, %v8800_v33  ;;  %v5003_v0 = vmul.f32 -1.442695, %v8798_v6  ;;  %v8820_v14 = vmul.f32 %v5573_v11, %v9647_v56 }
 0x332   : > { %5576 = vpow2.f32 %v4998_v61  ;;  %v8823_v18 = vmul.f32 %v5569_v46, %v9648_v49  ;;  %v5004_v5 = vmul.f32 -1.442695, %v8804_v2  ;;  %v5122_v52 = vpack.c.bf16 %v8813_v22, %v8813_v22 }
 0x333   : > { %v5000_v57 = vmul.f32 -1.442695, %v8802_v24  ;;  %5578 = vpow2.f32 %v4999_v13  ;;  %v5005_v10 = vmul.f32 -1.442695, %v8807_v60  ;;  %v5123_v53 = vpack.c.bf16 %v8820_v14, %v8820_v14 }
 0x334   : > { %v5124_v27 = vpack.c.bf16 %v8823_v18, %v8823_v18  ;;  %v5006_v34 = vmul.f32 -1.442695, %v8809_v30  ;;  %v4469_v47 = vshrl.u32 %v5122_v52, 16  ;;  %v8845_v13 = vsel %vm4686_vm3, %v8813_v22, 0.0 }
 0x335   : > { %5580 = vpow2.f32 %v5000_v57  ;;  %v4474_v12 = vshrl.u32 %v5123_v53, 16  ;;  %v4477_v40 = vshll.u32 %v5123_v53, 16 }
 0x336   : > { %5582 = vpow2.f32 %v5002_v44  ;;  %v4483_v20 = vshrl.u32 %v5124_v27, 16  ;;  %v4486_v17 = vshll.u32 %v5124_v27, 16  ;;  %v5085_v36 = vrot.slane %v4469_v47, 11 }
 0x337   : > { %5584 = vpow2.f32 %v5003_v0  ;;  %v4476_v43 = vrot.slane %v4474_v12, 7 }
 0x338   : > { %5586 = vpow2.f32 %v5004_v5  ;;  %v4485_v9 = vrot.slane %v4483_v20, 7 }
 0x339   : > { %5588 = vpow2.f32 %v5005_v10  ;;  %v4479_v63 = vor.u32 %v4477_v40, %v4476_v43  ;;  %v4481_v19 = vrot.slane %v4476_v43, 4 }
 0x33a   : > { %5590 = vpow2.f32 %v5006_v34  ;;  %v4488_v55 = vor.u32 %v4486_v17, %v4485_v9  ;;  %v5575_v54 = vpop.eup %5574  ;;  %v9651_v34 = vld [vmem:[#allocation35_spill] sm:$0xff] }
 0x33b   : > { %v3936_v29 = vadd.f32 1.0, %v5575_v54  ;;  %v4480_v35 = vsel %vm6842_vm6, %v5085_v36, %v4479_v63 }
 0x33c   : > { %v5577_v23 = vpop.eup %5576  ;;  %v4489_v37 = vsel %vm6842_vm6, %v4481_v19, %v4488_v55  ;;  %4672 = vst [vmem:[%s6850_s14 + $0x48] sm:$0xf] %v4480_v35 }
 0x33d   : > { %v5579_v28 = vpop.eup %5578  ;;  %v3933_v46 = vadd.f32 1.0, %v5577_v23  ;;  %4673 = vst [vmem:[%s6850_s14 + $0x4c] sm:$0xf] %v4489_v37  ;;  %5592 = vrcp.f32 %v3936_v29 }
 0x33e   : > { %v3934_v8 = vadd.f32 1.0, %v5579_v28 }
 0x33f   : > { %v5581_v51 = vpop.eup %5580  ;;  %5594 = vrcp.f32 %v3933_v46 }
 0x340   : > { %v5583_v7 = vpop.eup %5582  ;;  %v3935_v15 = vadd.f32 1.0, %v5581_v51  ;;  %5596 = vrcp.f32 %v3934_v8 }
 0x341   : > { %v5585_v59 = vpop.eup %5584  ;;  %v3937_v16 = vadd.f32 1.0, %v5583_v7 }
 0x342   : > { %v5587_v48 = vpop.eup %5586  ;;  %v3938_v58 = vadd.f32 1.0, %v5585_v59  ;;  %5598 = vrcp.f32 %v3935_v15 }
 0x343   : > { %v5589_v45 = vpop.eup %5588  ;;  %v3939_v31 = vadd.f32 1.0, %v5587_v48  ;;  %5600 = vrcp.f32 %v3937_v16 }
 0x344   : > { %v5591_v4 = vpop.eup %5590  ;;  %v3940_v50 = vadd.f32 1.0, %v5589_v45  ;;  %5602 = vrcp.f32 %v3938_v58 }
 0x345   : > { %v3941_v62 = vadd.f32 1.0, %v5591_v4  ;;  %5604 = vrcp.f32 %v3939_v31 }
 0x346   : > { %5606 = vrcp.f32 %v3940_v50 }
 0x347   : > { %5608 = vrcp.f32 %v3941_v62  ;;  %v5593_v25 = vpop.eup %5592 }
 0x348   : > { %v4080_v11 = vmul.f32 %v5593_v25, %v8792_v26 }
 0x349   : > { %v5595_v1 = vpop.eup %5594 }
 0x34a   : > { %v5597_v38 = vpop.eup %5596  ;;  %v4077_v39 = vmul.f32 %v5595_v1, %v8796_v42  ;;  %v5116_v32 = vpack.c.bf16 %v4080_v11, %v4080_v11  ;;  %v4700_v26 = vsel %vm4686_vm3, %v4080_v11, 0.0 }
 0x34b   : > { %v4078_v61 = vmul.f32 %v5597_v38, %v8800_v33  ;;  %v9650_v33 = vld [vmem:[#allocation47_spill] sm:$0xff] }
 0x34c   : > { %v5599_v21 = vpop.eup %5598  ;;  %v5113_v0 = vpack.c.bf16 %v4077_v39, %v4077_v39  ;;  %v4698_v56 = vsel %vm4686_vm3, %v4077_v39, 0.0  ;;  %v4425_v52 = vshrl.u32 %v5116_v32, 16 }
 0x34d   : > { %v5601_v57 = vpop.eup %5600  ;;  %v8848_v44 = vmul.f32 %v5599_v21, %v8802_v24  ;;  %v5114_v5 = vpack.c.bf16 %v4078_v61, %v4078_v61  ;;  %v4699_v10 = vadd.f32 %v4698_v56, %v9650_v33  ;;  %v4723_v47 = vadd.f32 %v9651_v34, %v4078_v61 }
 0x34e   : > { %v5603_v49 = vpop.eup %5602  ;;  %v4081_v42 = vmul.f32 %v5601_v57, %v8794_v3  ;;  %v4403_v24 = vshrl.u32 %v5113_v0, 16  ;;  %v5083_v37 = vrot.slane %v4425_v52, 11 }
 0x34f   : > { %v5605_v53 = vpop.eup %5604  ;;  %v4082_v22 = vmul.f32 %v5603_v49, %v8798_v6  ;;  %v5115_v27 = vpack.c.bf16 %v8848_v44, %v8848_v44  ;;  %v4408_v43 = vshrl.u32 %v5114_v5, 16  ;;  %v4411_v9 = vshll.u32 %v5114_v5, 16 }
 0x350   : > { %v5607_v12 = vpop.eup %5606  ;;  %v4083_v20 = vmul.f32 %v5605_v53, %v8804_v2  ;;  %v5117_v40 = vpack.c.bf16 %v4081_v42, %v4081_v42  ;;  %v5082_v63 = vrot.slane %v4403_v24, 11  ;;  %v4701_v21 = vadd.f32 %v4700_v26, %v4699_v10 }
 0x351   : > { %v5609_v3 = vpop.eup %5608  ;;  %v4084_v17 = vmul.f32 %v5607_v12, %v8807_v60  ;;  %v5118_v36 = vpack.c.bf16 %v4082_v22, %v4082_v22  ;;  %v4417_v19 = vshrl.u32 %v5115_v27, 16  ;;  %v4410_v54 = vrot.slane %v4408_v43, 7  ;;  %v9654_v43 = vld [vmem:[#allocation83_spill] sm:$0xff] }
 0x352   : > { %v4085_v6 = vmul.f32 %v5609_v3, %v8809_v30  ;;  %v5119_v55 = vpack.c.bf16 %v4083_v20, %v4083_v20  ;;  %v4420_v23 = vshll.u32 %v5115_v27, 16  ;;  %v4430_v28 = vshrl.u32 %v5117_v40, 16  ;;  %v9652_v27 = vld [vmem:[#allocation34_spill] sm:$0xff]  ;;  %v9655_v3 = vld [vmem:[#allocation24_spill] sm:$0xff] }
 0x353   : > { %v5120_v29 = vpack.c.bf16 %v4084_v17, %v4084_v17  ;;  %v4419_v35 = vrot.slane %v4417_v19, 7  ;;  %v4413_v2 = vor.u32 %v4411_v9, %v4410_v54  ;;  %v4415_v51 = vrot.slane %v4410_v54, 4  ;;  %v9656_v19 = vld [vmem:[#allocation78_spill] sm:$0xff] }
 0x354   : > { %v5121_v46 = vpack.c.bf16 %v4085_v6, %v4085_v6  ;;  %v4433_v8 = vshll.u32 %v5117_v40, 16  ;;  %v4432_v15 = vrot.slane %v4430_v28, 7  ;;  %v4439_v60 = vshrl.u32 %v5118_v36, 16  ;;  %v9660_v28 = vld [vmem:[#allocation31_spill] sm:$0xff] }
 0x355   : > { %v4422_v7 = vor.u32 %v4420_v23, %v4419_v35  ;;  %v4442_v59 = vshll.u32 %v5118_v36, 16  ;;  %v4414_v30 = vsel %vm6842_vm6, %v5082_v63, %v4413_v2  ;;  %v4447_v16 = vshrl.u32 %v5119_v55, 16  ;;  %v9659_v35 = vld [vmem:[#allocation84_spill] sm:$0xff] }
 0x356   : > { %v4452_v48 = vshrl.u32 %v5120_v29, 16  ;;  %v4455_v58 = vshll.u32 %v5120_v29, 16  ;;  %v4435_v31 = vor.u32 %v4433_v8, %v4432_v15  ;;  %v4437_v4 = vrot.slane %v4432_v15, 4  ;;  %4666 = vst [vmem:[%s6850_s14 + $0x30] sm:$0xf] %v4414_v30 }
 0x357   : > { %v4423_v45 = vsel %vm6842_vm6, %v4415_v51, %v4422_v7  ;;  %v4441_v50 = vrot.slane %v4439_v60, 7  ;;  %v5084_v62 = vrot.slane %v4447_v16, 11  ;;  %v4461_v1 = vshrl.u32 %v5121_v46, 16  ;;  %v9661_v51 = vld [vmem:[#allocation8_spill] sm:$0xff]  ;;  %v9662_v7 = vld [vmem:[#allocation30_spill] sm:$0xff] }
 0x358   : > { %v4454_v25 = vrot.slane %v4452_v48, 7  ;;  %v4464_v11 = vshll.u32 %v5121_v46, 16  ;;  %4667 = vst [vmem:[%s6850_s14 + $0x34] sm:$0xf] %v4423_v45  ;;  %v4436_v38 = vsel %vm6842_vm6, %v5083_v37, %v4435_v31  ;;  %v4702_v61 = vsel %vm4686_vm3, %v4083_v20, 0.0  ;;  %v9663_v60 = vld [vmem:[#allocation56_spill] sm:$0xff] }
 0x359   : > { %v4444_v39 = vor.u32 %v4442_v59, %v4441_v50  ;;  %v4463_v0 = vrot.slane %v4461_v1, 7  ;;  %4668 = vst [vmem:[%s6850_s14 + $0x38] sm:$0xf] %v4436_v38  ;;  %v4724_v56 = vadd.f32 %v4723_v47, %v4081_v42  ;;  %v4703_v5 = vadd.f32 %v4702_v61, %v4701_v21  ;;  %v9653_v47 = vld [vmem:[#allocation73_spill] sm:$0xff]  ;;  %v9664_v16 = vld [vmem:[#allocation76_spill] sm:$0xff]  ;;  %v9665_v45 = vld [vmem:[#allocation79_spill] sm:$0xff] }
 0x35a   : > { %v4457_v32 = vor.u32 %v4455_v58, %v4454_v25  ;;  %v4459_v57 = vrot.slane %v4454_v25, 4  ;;  %v4744_v52 = vsel %vm1572_vm1, %v8848_v44, 0.0  ;;  %v4746_v33 = vsel %vm1572_vm1, %v4082_v22, 0.0  ;;  %v9667_v25 = vld [vmem:[#allocation72_spill] sm:$0xff]  ;;  %v9668_v38 = vld [vmem:[#allocation21_spill] sm:$0xff]  ;;  %v9669_v61 = vld [vmem:[#allocation6_spill] sm:$0xff] }
 0x35b   : > { %v4445_v49 = vsel %vm6842_vm6, %v4437_v4, %v4444_v39  ;;  %v4466_v10 = vor.u32 %v4464_v11, %v4463_v0  ;;  %v4725_v53 = vadd.f32 %v4724_v56, %v4084_v17  ;;  %v4745_v24 = vadd.f32 %v4744_v52, %v9652_v27  ;;  %v9666_v4 = vld [vmem:[#allocation9_spill] sm:$0xff] }
 0x35c   : > { %v4458_v26 = vsel %vm6842_vm6, %v5084_v62, %v4457_v32  ;;  %4669 = vst [vmem:[%s6850_s14 + $0x3c] sm:$0xf] %v4445_v49  ;;  %v4705_v42 = vadd.f32 %v8845_v13, %v4703_v5  ;;  %v4748_v34 = vsel %vm1572_vm1, %v4085_v6, 0.0  ;;  %v4706_v12 = vsel %vm4686_vm3, %v9653_v47, 0.0  ;;  %v9670_v49 = vld [vmem:[#allocation22_spill] sm:$0xff] }
 0x35d   : > { %4670 = vst [vmem:[%s6850_s14 + $0x40] sm:$0xf] %v4458_v26  ;;  %v4467_v44 = vsel %vm6842_vm6, %v4459_v57, %v4466_v10  ;;  %v4726_v22 = vadd.f32 %v4725_v53, %v8820_v14  ;;  %v4747_v20 = vadd.f32 %v4746_v33, %v4745_v24  ;;  %v4708_v9 = vsel %vm4686_vm3, %v9654_v43, 0.0  ;;  %v9658_v14 = vld [vmem:[#allocation81_spill] sm:$0xff] }
 0x35e   : > { %4671 = vst [vmem:[%s6850_s14 + $0x44] sm:$0xf] %v4467_v44  ;;  %v4707_v40 = vadd.f32 %v4706_v12, %v4705_v42  ;;  %v4750_v63 = vsel %vm1572_vm1, %v8823_v18, 0.0  ;;  %v4710_v6 = vsel %vm4686_vm3, %v9656_v19, 0.0  ;;  %v4752_v23 = vsel %vm1572_vm1, %v9658_v14, 0.0 }
 0x35f   : > { %v4727_v17 = vadd.f32 %v4726_v22, %v9655_v3  ;;  %v4749_v36 = vadd.f32 %v4748_v34, %v4747_v20  ;;  %v4712_v37 = vsel %vm4686_vm3, %v9659_v35, 0.0  ;;  %v4754_v8 = vsel %vm1572_vm1, %v9661_v51, 0.0 }
 0x360   : > { %v4709_v13 = vadd.f32 %v4708_v9, %v4707_v40  ;;  %v4714_v15 = vsel %vm4686_vm3, %v9662_v7, 0.0  ;;  %v4756_v48 = vsel %vm1572_vm1, %v9664_v16, 0.0  ;;  %v4716_v31 = vsel %vm4686_vm3, %v9665_v45, 0.0 }
 0x361   : > { %v4728_v55 = vadd.f32 %v4727_v17, %v9657_v41  ;;  %v4751_v54 = vadd.f32 %v4750_v63, %v4749_v36  ;;  %v4758_v1 = vsel %vm1572_vm1, %v9667_v25, 0.0  ;;  %v4760_v32 = vsel %vm1572_vm1, %v9669_v61, 0.0 }
 0x362   : > { %v4711_v29 = vadd.f32 %v4710_v6, %v4709_v13  ;;  %v4762_v5 = vsel %vm1572_vm1, %v9670_v49, 0.0 }
 0x363   : > { %v4729_v46 = vadd.f32 %v4728_v55, %v9660_v28  ;;  %v4753_v2 = vadd.f32 %v4752_v23, %v4751_v54 }
 0x364   : > { %v4713_v18 = vadd.f32 %v4712_v37, %v4711_v29 }
 0x365   : > { %v4730_v59 = vadd.f32 %v4729_v46, %v9663_v60  ;;  %v4755_v30 = vadd.f32 %v4754_v8, %v4753_v2 }
 0x366   : > { %v4715_v58 = vadd.f32 %v4714_v15, %v4713_v18 }
 0x367   : > { %v4731_v50 = vadd.f32 %v4730_v59, %v9666_v4  ;;  %v4757_v62 = vadd.f32 %v4756_v48, %v4755_v30 }
 0x368   : > { %v4717_v11 = vadd.f32 %v4716_v31, %v4715_v58 }
 0x369   : > { %v4732_v39 = vadd.f32 %v4731_v50, %v9668_v38  ;;  %v4759_v21 = vadd.f32 %v4758_v1, %v4757_v62 }
 0x36a   : > { %v4768_v57 = vrot.slane %v4717_v11, 7 }
 0x36b   : > { %v4761_v0 = vadd.f32 %v4760_v32, %v4759_v21  ;;  %v4769_v56 = vrot.slane %v4732_v39, 7 }
 0x36d   : > { %v4763_v52 = vadd.f32 %v4762_v5, %v4761_v0  ;;  %v4770_v33 = vsel %vm4767_vm7, %v4768_v57, %v4769_v56 }
 0x36f   : > { %v4771_v26 = vrot.slane %v4763_v52, 7 }
 0x371   : > { %v4772_v10 = vsel %vm4767_vm7, %v4769_v56, %v4771_v26 }
 0x372   : > { %v4775_v53 = vadd.f32 %v4772_v10, %v4770_v33 }
 0x374   : > { %v4776_v27 = vrot.slane %v4775_v53, 4 }
 0x376   : > { %v4777_v24 = vadd.f32 %v4776_v27, %v4775_v53 }
 0x378   : > { %v4778_v42 = vrot.slane %v4777_v24, 2 }
 0x37a   : > { %v4779_v34 = vadd.f32 %v4778_v42, %v4777_v24 }
 0x37c   : > { %v4780_v47 = vrot.slane %v4779_v34, 1 }
 0x37e   : > { %v4781_v12 = vadd.f32 %v4780_v47, %v4779_v34 }
 0x380   : > { %4782 = vst [vmem:[%s293_s15] sm:$0x1] %v4781_v12 }
 0x381 PF: > { %s17_s23 = sadd.s32 1, %s5643_s23   ;;  %s9671_s21 = smov %s5639_s22 }
 0x382   : > { %p14_p5 = scmp.ge.s32.totalorder %s17_s23, 4   ;;  %s9672_s22 = smov %s9674_s24 }
 0x384   :  { %16 = sbr.rel (!%p14_p5) target bundleno = 2 (0x2), region = 85 }

</bundles_post_ra>
